<compile_context>
chip_gen: v7x
topology: tpu7x:2x2x1
jax: 0.10.0
libtpu: 0.0.40
codegen_flags: <defaults>
</compile_context>

<pallas_src>
import jax
import jax.numpy as jnp
from jax.experimental import pallas as pl
from jax.experimental.pallas import tpu as pltpu

EPS = 1e-5
LANE = 128


def _round_up(x, m):
    return ((x + m - 1) // m) * m


def _conv3x3_fused(x_img, w_ref, H, W, Cin, Kpad):
    """3x3 'same' conv of one padded image as a single MXU matmul.

    x_img: (H+2, W+2, Cin) f32 value (already zero-padded borders).
    w_ref: (Kpad, Cpad) Ref; row (dy*3+dx)*Cin + c holds weight[:, c, dy, dx],
           zero beyond 9*Cin.
    Returns y: (H*W, Cpad) f32, rows in (h, w) order, no bias.
    """
    taps = []
    for dy in range(3):
        for dx in range(3):
            taps.append(x_img[dy:dy + H, dx:dx + W, :])       # (H, W, Cin)
    pad = Kpad - 9 * Cin
    if pad:
        taps.append(jnp.zeros((H, W, pad), jnp.float32))
    patches = jnp.concatenate(taps, axis=-1)                   # (H, W, Kpad)
    patches = patches.reshape(H * W, Kpad)                     # lane-dense
    return jnp.dot(patches, w_ref[...], preferred_element_type=jnp.float32)


@jax.jit
def conv_bn_relu(x_nchw, weight, bias, gamma, beta):
    """ConvBNRelu forward.  x_nchw: (N, Cin, H, W); weight: (Cout, Cin, 3, 3).

    `bias` is accepted for nn.Conv2d API parity but unused: under training-
    mode BatchNorm the conv bias cancels exactly in (y - mean).
    """
    del bias
    N, Cin, H, W = x_nchw.shape
    Cout = weight.shape[0]
    Cpad = _round_up(Cout, LANE)          # lane-dense matmul output width
    K = 9 * Cin
    Kpad = _round_up(K, LANE)             # lane-dense fused contraction
    Hp, Wp = H + 2, W + 2
    HW = H * W

    # ---- glue (NCHW API): NCHW -> zero-padded NHWC --------------------------
    x_nhwc = jnp.transpose(x_nchw, (0, 2, 3, 1)).astype(jnp.float32)
    x_pad = jnp.pad(x_nhwc, ((0, 0), (1, 1), (1, 1), (0, 0)))
    # TODO(synk): padding could be done in-kernel (masked border taps) to save
    # one HBM round trip of the input.

    # (Cout, Cin, 3, 3) -> (9*Cin, Cout) im2col weight matrix, zero-padded.
    w_k = jnp.transpose(weight, (2, 3, 1, 0)).astype(jnp.float32)   # kh,kw,ci,co
    w_k = w_k.reshape(K, Cout)
    w_k = jnp.pad(w_k, ((0, Kpad - K), (0, Cpad - Cout)))

    gamma_p = jnp.pad(gamma.astype(jnp.float32), (0, Cpad - Cout))
    beta_p = jnp.pad(beta.astype(jnp.float32), (0, Cpad - Cout))

    cparams = pltpu.CompilerParams(
        dimension_semantics=("parallel",),
        vmem_limit_bytes=32 * 1024 * 1024,
    )

    # ---- pass 1: per-image per-channel sum / sum-of-squares -----------------
    def stats_kernel(x_ref, w_ref, sum_ref, sq_ref):
        y = _conv3x3_fused(x_ref[0], w_ref, H, W, Cin, Kpad)     # (HW, Cpad)
        sum_ref[0] = jnp.sum(y, axis=0, keepdims=True)
        sq_ref[0] = jnp.sum(y * y, axis=0, keepdims=True)

    part_sum, part_sq = pl.pallas_call(
        stats_kernel,
        out_shape=(jax.ShapeDtypeStruct((N, 1, Cpad), jnp.float32),
                   jax.ShapeDtypeStruct((N, 1, Cpad), jnp.float32)),
        grid=(N,),
        in_specs=[
            pl.BlockSpec((1, Hp, Wp, Cin), lambda n: (n, 0, 0, 0)),
            pl.BlockSpec((Kpad, Cpad), lambda n: (0, 0)),
        ],
        out_specs=(pl.BlockSpec((1, 1, Cpad), lambda n: (n, 0, 0)),
                   pl.BlockSpec((1, 1, Cpad), lambda n: (n, 0, 0))),
        compiler_params=cparams,
    )(x_pad, w_k)

    # ---- tiny cross-image reduction + BN affine folding (XLA) ---------------
    count = jnp.float32(N * HW)
    mean = jnp.sum(part_sum[:, 0, :], axis=0) / count                # (Cpad,)
    ex2 = jnp.sum(part_sq[:, 0, :], axis=0) / count
    var = jnp.maximum(ex2 - mean * mean, 0.0)                        # biased
    inv_std = jax.lax.rsqrt(var + EPS)
    scale = (gamma_p * inv_std).reshape(1, Cpad)
    shift = (beta_p - gamma_p * mean * inv_std).reshape(1, Cpad)

    # ---- pass 2: conv (recompute; K tiny) + fused scale/shift + ReLU --------
    def apply_kernel(x_ref, w_ref, scale_ref, shift_ref, o_ref):
        y = _conv3x3_fused(x_ref[0], w_ref, H, W, Cin, Kpad)     # (HW, Cpad)
        res = jnp.maximum(y * scale_ref[...] + shift_ref[...], 0.0)
        o_ref[0] = res[:, :Cout].astype(o_ref.dtype)             # exact bytes

    out_flat = pl.pallas_call(
        apply_kernel,
        out_shape=jax.ShapeDtypeStruct((N, HW, Cout), jnp.float32),
        grid=(N,),
        in_specs=[
            pl.BlockSpec((1, Hp, Wp, Cin), lambda n: (n, 0, 0, 0)),
            pl.BlockSpec((Kpad, Cpad), lambda n: (0, 0)),
            pl.BlockSpec((1, Cpad), lambda n: (0, 0)),
            pl.BlockSpec((1, Cpad), lambda n: (0, 0)),
        ],
        out_specs=pl.BlockSpec((1, HW, Cout), lambda n: (n, 0, 0)),
        compiler_params=cparams,
    )(x_pad, w_k, scale, shift)

    # ---- glue: back to NCHW --------------------------------------------------
    out_nhwc = out_flat.reshape(N, H, W, Cout)
    return jnp.transpose(out_nhwc, (0, 3, 1, 2))


def _reference(x_nchw, weight, bias, gamma, beta):
    """Pure-JAX reference mirroring PyTorch Conv2d + BatchNorm2d(train) + ReLU."""
    y = jax.lax.conv_general_dilated(
        x_nchw.astype(jnp.float32), weight.astype(jnp.float32),
        window_strides=(1, 1), padding=((1, 1), (1, 1)),
        dimension_numbers=("NCHW", "OIHW", "NCHW"),
        precision=jax.lax.Precision.HIGHEST)
    y = y + bias.reshape(1, -1, 1, 1)
    mean = jnp.mean(y, axis=(0, 2, 3), keepdims=True)
    var = jnp.mean((y - mean) ** 2, axis=(0, 2, 3), keepdims=True)   # biased
    y = (y - mean) * jax.lax.rsqrt(var + EPS)
    y = gamma.reshape(1, -1, 1, 1) * y + beta.reshape(1, -1, 1, 1)
    return jnp.maximum(y, 0.0)


if __name__ == "__main__":
    key = jax.random.PRNGKey(0)
    k_x, k_w, k_b, k_g, k_be = jax.random.split(key, 5)

    N, Cin, Cout, H, W = 2, 4, 8, 16, 16

    x = jax.random.normal(k_x, (N, Cin, H, W), dtype=jnp.float32)
    # Deterministic synthetic parameters (no checkpoint load).
    weight = 0.1 * jax.random.normal(k_w, (Cout, Cin, 3, 3), dtype=jnp.float32)
    bias = 0.01 * jax.random.normal(k_b, (Cout,), dtype=jnp.float32)
    gamma = 1.0 + 0.1 * jax.random.normal(k_g, (Cout,), dtype=jnp.float32)
    beta = 0.05 * jax.random.normal(k_be, (Cout,), dtype=jnp.float32)

    out = jax.block_until_ready(conv_bn_relu(x, weight, bias, gamma, beta))
    ref = jax.block_until_ready(_reference(x, weight, bias, gamma, beta))

    assert out.shape == (N, Cout, H, W)
    err = float(jnp.max(jnp.abs(out - ref)))
    assert jnp.allclose(out, ref, atol=2e-3, rtol=2e-3), f"max abs err {err}"

    print("KERNEL_OK")
</pallas_src>

<mosaic_0001>
module attributes {stable_mosaic.version = 11 : i64} {
  func.func @apply_kernel(%arg0: i32, %arg1: memref<1x18x18x4xf32, #tpu.memory_space<vmem>>, %arg2: memref<128x128xf32, #tpu.memory_space<vmem>>, %arg3: memref<1x128xf32, #tpu.memory_space<vmem>>, %arg4: memref<1x128xf32, #tpu.memory_space<vmem>>, %arg5: memref<1x256x8xf32, #tpu.memory_space<vmem>>) attributes {dimension_semantics = [#tpu.dimension_semantics<parallel>], iteration_bounds = array<i64: 2>, scalar_prefetch = 0 : i64, scratch_operands = 0 : i64, tpu.core_type = #tpu.core_type<tc>, window_params = [{transform_indices = @transform_0, window_bounds = array<i64: 1, 18, 18, 4>}, {pipeline_mode = #tpu.pipeline_mode<synchronous>, transform_indices = @transform_1, window_bounds = array<i64: 128, 128>}, {pipeline_mode = #tpu.pipeline_mode<synchronous>, transform_indices = @transform_2, window_bounds = array<i64: 1, 128>}, {pipeline_mode = #tpu.pipeline_mode<synchronous>, transform_indices = @transform_3, window_bounds = array<i64: 1, 128>}, {transform_indices = @transform_4, window_bounds = array<i64: 1, 256, 8>}]} {
    %c0 = arith.constant 0 : index
    %c0_0 = arith.constant 0 : index
    %c0_1 = arith.constant 0 : index
    %c0_2 = arith.constant 0 : index
    %0 = vector.load %arg1[%c0, %c0_0, %c0_1, %c0_2] : memref<1x18x18x4xf32, #tpu.memory_space<vmem>>, vector<1x18x18x4xf32>
    %1 = vector.shape_cast %0 : vector<1x18x18x4xf32> to vector<18x18x4xf32>
    %2 = vector.extract_strided_slice %1 {offsets = [0, 0, 0], sizes = [16, 16, 4], strides = [1, 1, 1]} : vector<18x18x4xf32> to vector<16x16x4xf32>
    %3 = vector.extract_strided_slice %1 {offsets = [0, 1, 0], sizes = [16, 16, 4], strides = [1, 1, 1]} : vector<18x18x4xf32> to vector<16x16x4xf32>
    %4 = vector.extract_strided_slice %1 {offsets = [0, 2, 0], sizes = [16, 16, 4], strides = [1, 1, 1]} : vector<18x18x4xf32> to vector<16x16x4xf32>
    %5 = vector.extract_strided_slice %1 {offsets = [1, 0, 0], sizes = [16, 16, 4], strides = [1, 1, 1]} : vector<18x18x4xf32> to vector<16x16x4xf32>
    %6 = vector.extract_strided_slice %1 {offsets = [1, 1, 0], sizes = [16, 16, 4], strides = [1, 1, 1]} : vector<18x18x4xf32> to vector<16x16x4xf32>
    %7 = vector.extract_strided_slice %1 {offsets = [1, 2, 0], sizes = [16, 16, 4], strides = [1, 1, 1]} : vector<18x18x4xf32> to vector<16x16x4xf32>
    %8 = vector.extract_strided_slice %1 {offsets = [2, 0, 0], sizes = [16, 16, 4], strides = [1, 1, 1]} : vector<18x18x4xf32> to vector<16x16x4xf32>
    %9 = vector.extract_strided_slice %1 {offsets = [2, 1, 0], sizes = [16, 16, 4], strides = [1, 1, 1]} : vector<18x18x4xf32> to vector<16x16x4xf32>
    %10 = vector.extract_strided_slice %1 {offsets = [2, 2, 0], sizes = [16, 16, 4], strides = [1, 1, 1]} : vector<18x18x4xf32> to vector<16x16x4xf32>
    %cst = arith.constant 0.000000e+00 : f32
    %11 = vector.broadcast %cst : f32 to vector<16x16x92xf32>
    %12 = tpu.concatenate %2, %3, %4, %5, %6, %7, %8, %9, %10, %11 in 2 : vector<16x16x4xf32>, vector<16x16x4xf32>, vector<16x16x4xf32>, vector<16x16x4xf32>, vector<16x16x4xf32>, vector<16x16x4xf32>, vector<16x16x4xf32>, vector<16x16x4xf32>, vector<16x16x4xf32>, vector<16x16x92xf32> -> vector<16x16x128xf32>
    %13 = vector.shape_cast %12 : vector<16x16x128xf32> to vector<256x128xf32>
    %c0_3 = arith.constant 0 : index
    %c0_4 = arith.constant 0 : index
    %14 = vector.load %arg2[%c0_3, %c0_4] : memref<128x128xf32, #tpu.memory_space<vmem>>, vector<128x128xf32>
    %cst_5 = arith.constant dense<0.000000e+00> : vector<256x128xf32>
    %15 = tpu.matmul %13, %14, %cst_5 {dimension_numbers = #tpu.dot_dimension_numbers<[1], [0], [0], [1], [0, 0, 1, 1], [], []>} : vector<256x128xf32>, vector<128x128xf32>, vector<256x128xf32> -> vector<256x128xf32>
    %c0_6 = arith.constant 0 : index
    %c0_7 = arith.constant 0 : index
    %16 = vector.load %arg3[%c0_6, %c0_7] : memref<1x128xf32, #tpu.memory_space<vmem>>, vector<1x128xf32>
    %17 = vector.broadcast %16 : vector<1x128xf32> to vector<256x128xf32>
    %18 = arith.mulf %15, %17 : vector<256x128xf32>
    %c0_8 = arith.constant 0 : index
    %c0_9 = arith.constant 0 : index
    %19 = vector.load %arg4[%c0_8, %c0_9] : memref<1x128xf32, #tpu.memory_space<vmem>>, vector<1x128xf32>
    %20 = vector.broadcast %19 : vector<1x128xf32> to vector<256x128xf32>
    %21 = arith.addf %18, %20 : vector<256x128xf32>
    %cst_10 = arith.constant 0.000000e+00 : f32
    %22 = vector.broadcast %cst_10 : f32 to vector<256x128xf32>
    %23 = arith.maximumf %21, %22 : vector<256x128xf32>
    %24 = vector.extract_strided_slice %23 {offsets = [0, 0], sizes = [256, 8], strides = [1, 1]} : vector<256x128xf32> to vector<256x8xf32>
    %c0_11 = arith.constant 0 : index
    %c0_12 = arith.constant 0 : index
    %c0_13 = arith.constant 0 : index
    %25 = vector.load %arg5[%c0_11, %c0_12, %c0_13] : memref<1x256x8xf32, #tpu.memory_space<vmem>>, vector<1x256x8xf32>
    %26 = vector.shape_cast %25 : vector<1x256x8xf32> to vector<256x8xf32>
    %27 = vector.shape_cast %24 : vector<256x8xf32> to vector<1x256x8xf32>
    tpu.vector_store %arg5[%c0_11, %c0_12, %c0_13], %27 {strides = array<i32>} : memref<1x256x8xf32, #tpu.memory_space<vmem>>, vector<1x256x8xf32>,
    return
  }
  func.func @transform_0(%arg0: i32) -> (i32, i32, i32, i32) {
    %c0_i32 = arith.constant 0 : i32
    %c0_i32_0 = arith.constant 0 : i32
    %c0_i32_1 = arith.constant 0 : i32
    %c0_i32_2 = arith.constant 0 : i32
    return %arg0, %c0_i32, %c0_i32_0, %c0_i32_1 : i32, i32, i32, i32
  }
  func.func @transform_1(%arg0: i32) -> (i32, i32) {
    %c0_i32 = arith.constant 0 : i32
    %c0_i32_0 = arith.constant 0 : i32
    %c0_i32_1 = arith.constant 0 : i32
    return %c0_i32, %c0_i32_0 : i32, i32
  }
  func.func @transform_2(%arg0: i32) -> (i32, i32) {
    %c0_i32 = arith.constant 0 : i32
    %c0_i32_0 = arith.constant 0 : i32
    %c0_i32_1 = arith.constant 0 : i32
    return %c0_i32, %c0_i32_0 : i32, i32
  }
  func.func @transform_3(%arg0: i32) -> (i32, i32) {
    %c0_i32 = arith.constant 0 : i32
    %c0_i32_0 = arith.constant 0 : i32
    %c0_i32_1 = arith.constant 0 : i32
    return %c0_i32, %c0_i32_0 : i32, i32
  }
  func.func @transform_4(%arg0: i32) -> (i32, i32, i32) {
    %c0_i32 = arith.constant 0 : i32
    %c0_i32_0 = arith.constant 0 : i32
    %c0_i32_1 = arith.constant 0 : i32
    return %arg0, %c0_i32, %c0_i32_0 : i32, i32, i32
  }
}

module attributes {stable_mosaic.version = 11 : i64} {
  func.func @stats_kernel(%arg0: i32, %arg1: memref<1x18x18x4xf32, #tpu.memory_space<vmem>>, %arg2: memref<128x128xf32, #tpu.memory_space<vmem>>, %arg3: memref<1x1x128xf32, #tpu.memory_space<vmem>>, %arg4: memref<1x1x128xf32, #tpu.memory_space<vmem>>) attributes {dimension_semantics = [#tpu.dimension_semantics<parallel>], iteration_bounds = array<i64: 2>, scalar_prefetch = 0 : i64, scratch_operands = 0 : i64, tpu.core_type = #tpu.core_type<tc>, window_params = [{transform_indices = @transform_0, window_bounds = array<i64: 1, 18, 18, 4>}, {pipeline_mode = #tpu.pipeline_mode<synchronous>, transform_indices = @transform_1, window_bounds = array<i64: 128, 128>}, {transform_indices = @transform_2, window_bounds = array<i64: 1, 1, 128>}, {transform_indices = @transform_3, window_bounds = array<i64: 1, 1, 128>}]} {
    %c0 = arith.constant 0 : index
    %c0_0 = arith.constant 0 : index
    %c0_1 = arith.constant 0 : index
    %c0_2 = arith.constant 0 : index
    %0 = vector.load %arg1[%c0, %c0_0, %c0_1, %c0_2] : memref<1x18x18x4xf32, #tpu.memory_space<vmem>>, vector<1x18x18x4xf32>
    %1 = vector.shape_cast %0 : vector<1x18x18x4xf32> to vector<18x18x4xf32>
    %2 = vector.extract_strided_slice %1 {offsets = [0, 0, 0], sizes = [16, 16, 4], strides = [1, 1, 1]} : vector<18x18x4xf32> to vector<16x16x4xf32>
    %3 = vector.extract_strided_slice %1 {offsets = [0, 1, 0], sizes = [16, 16, 4], strides = [1, 1, 1]} : vector<18x18x4xf32> to vector<16x16x4xf32>
    %4 = vector.extract_strided_slice %1 {offsets = [0, 2, 0], sizes = [16, 16, 4], strides = [1, 1, 1]} : vector<18x18x4xf32> to vector<16x16x4xf32>
    %5 = vector.extract_strided_slice %1 {offsets = [1, 0, 0], sizes = [16, 16, 4], strides = [1, 1, 1]} : vector<18x18x4xf32> to vector<16x16x4xf32>
    %6 = vector.extract_strided_slice %1 {offsets = [1, 1, 0], sizes = [16, 16, 4], strides = [1, 1, 1]} : vector<18x18x4xf32> to vector<16x16x4xf32>
    %7 = vector.extract_strided_slice %1 {offsets = [1, 2, 0], sizes = [16, 16, 4], strides = [1, 1, 1]} : vector<18x18x4xf32> to vector<16x16x4xf32>
    %8 = vector.extract_strided_slice %1 {offsets = [2, 0, 0], sizes = [16, 16, 4], strides = [1, 1, 1]} : vector<18x18x4xf32> to vector<16x16x4xf32>
    %9 = vector.extract_strided_slice %1 {offsets = [2, 1, 0], sizes = [16, 16, 4], strides = [1, 1, 1]} : vector<18x18x4xf32> to vector<16x16x4xf32>
    %10 = vector.extract_strided_slice %1 {offsets = [2, 2, 0], sizes = [16, 16, 4], strides = [1, 1, 1]} : vector<18x18x4xf32> to vector<16x16x4xf32>
    %cst = arith.constant 0.000000e+00 : f32
    %11 = vector.broadcast %cst : f32 to vector<16x16x92xf32>
    %12 = tpu.concatenate %2, %3, %4, %5, %6, %7, %8, %9, %10, %11 in 2 : vector<16x16x4xf32>, vector<16x16x4xf32>, vector<16x16x4xf32>, vector<16x16x4xf32>, vector<16x16x4xf32>, vector<16x16x4xf32>, vector<16x16x4xf32>, vector<16x16x4xf32>, vector<16x16x4xf32>, vector<16x16x92xf32> -> vector<16x16x128xf32>
    %13 = vector.shape_cast %12 : vector<16x16x128xf32> to vector<256x128xf32>
    %c0_3 = arith.constant 0 : index
    %c0_4 = arith.constant 0 : index
    %14 = vector.load %arg2[%c0_3, %c0_4] : memref<128x128xf32, #tpu.memory_space<vmem>>, vector<128x128xf32>
    %cst_5 = arith.constant dense<0.000000e+00> : vector<256x128xf32>
    %15 = tpu.matmul %13, %14, %cst_5 {dimension_numbers = #tpu.dot_dimension_numbers<[1], [0], [0], [1], [0, 0, 1, 1], [], []>} : vector<256x128xf32>, vector<128x128xf32>, vector<256x128xf32> -> vector<256x128xf32>
    %cst_6 = arith.constant dense<0.000000e+00> : vector<128xf32>
    %16 = vector.multi_reduction <add>, %15, %cst_6 [0] : vector<256x128xf32> to vector<128xf32>
    %17 = vector.shape_cast %16 : vector<128xf32> to vector<1x128xf32>
    %c0_7 = arith.constant 0 : index
    %c0_8 = arith.constant 0 : index
    %c0_9 = arith.constant 0 : index
    %18 = vector.load %arg3[%c0_7, %c0_8, %c0_9] : memref<1x1x128xf32, #tpu.memory_space<vmem>>, vector<1x1x128xf32>
    %19 = vector.shape_cast %18 : vector<1x1x128xf32> to vector<1x128xf32>
    %20 = vector.shape_cast %17 : vector<1x128xf32> to vector<1x1x128xf32>
    tpu.vector_store %arg3[%c0_7, %c0_8, %c0_9], %20 {strides = array<i32>} : memref<1x1x128xf32, #tpu.memory_space<vmem>>, vector<1x1x128xf32>,
    %21 = arith.mulf %15, %15 : vector<256x128xf32>
    %cst_10 = arith.constant dense<0.000000e+00> : vector<128xf32>
    %22 = vector.multi_reduction <add>, %21, %cst_10 [0] : vector<256x128xf32> to vector<128xf32>
    %23 = vector.shape_cast %22 : vector<128xf32> to vector<1x128xf32>
    %c0_11 = arith.constant 0 : index
    %c0_12 = arith.constant 0 : index
    %c0_13 = arith.constant 0 : index
    %24 = vector.load %arg4[%c0_11, %c0_12, %c0_13] : memref<1x1x128xf32, #tpu.memory_space<vmem>>, vector<1x1x128xf32>
    %25 = vector.shape_cast %24 : vector<1x1x128xf32> to vector<1x128xf32>
    %26 = vector.shape_cast %23 : vector<1x128xf32> to vector<1x1x128xf32>
    tpu.vector_store %arg4[%c0_11, %c0_12, %c0_13], %26 {strides = array<i32>} : memref<1x1x128xf32, #tpu.memory_space<vmem>>, vector<1x1x128xf32>,
    return
  }
  func.func @transform_0(%arg0: i32) -> (i32, i32, i32, i32) {
    %c0_i32 = arith.constant 0 : i32
    %c0_i32_0 = arith.constant 0 : i32
    %c0_i32_1 = arith.constant 0 : i32
    %c0_i32_2 = arith.constant 0 : i32
    return %arg0, %c0_i32, %c0_i32_0, %c0_i32_1 : i32, i32, i32, i32
  }
  func.func @transform_1(%arg0: i32) -> (i32, i32) {
    %c0_i32 = arith.constant 0 : i32
    %c0_i32_0 = arith.constant 0 : i32
    %c0_i32_1 = arith.constant 0 : i32
    return %c0_i32, %c0_i32_0 : i32, i32
  }
  func.func @transform_2(%arg0: i32) -> (i32, i32, i32) {
    %c0_i32 = arith.constant 0 : i32
    %c0_i32_0 = arith.constant 0 : i32
    %c0_i32_1 = arith.constant 0 : i32
    return %arg0, %c0_i32, %c0_i32_0 : i32, i32, i32
  }
  func.func @transform_3(%arg0: i32) -> (i32, i32, i32) {
    %c0_i32 = arith.constant 0 : i32
    %c0_i32_0 = arith.constant 0 : i32
    %c0_i32_1 = arith.constant 0 : i32
    return %arg0, %c0_i32, %c0_i32_0 : i32, i32, i32
  }
}

</mosaic_0001>

<bundles_post_ra>
// kernel: conv_bn_relu.3
= control target key start
LH: loop header
LB: loop body
LE: loop exit
PB: predicated region body
PF: predicated region fallthrough
CT: control target
= control target key end

     0   :  { %s2292_s15 = smov 0   ;;  %s4159_s0 = inlined_call_operand.vmem [shape: f32[2,18,18,4], index: 0, kind: input, shape index: {}]   ;;  %s4160_s1 = inlined_call_operand.vmem [shape: f32[128,128], index: 1, kind: input, shape index: {}]   ;;  %s4161_s2 = inlined_call_operand.vmem [shape: f32[1,128], index: 2, kind: input, shape index: {}]   ;;  %s4162_s3 = inlined_call_operand.vmem [shape: f32[1,128], index: 3, kind: input, shape index: {}]   ;;  %s4163_s4 = inlined_call_operand.vmem [shape: f32[2,256,8], index: 4, kind: output, shape index: {}]  }
   0x1 LB: > { %s1991_s16 = sadd.s32 4294967295, %s2257_s15   ;;  %p1995_p0 = scmp.ge.s32.totalorder %s2257_s15, 1  ;;  %s2257_s15 = sphi %s2292_s15, %s14_s15  }
   0x2   : > { %p162_p1 = scmp.lt.s32.totalorder %s2257_s15, 3 }
   0x4   : > { %p163_p2 = pnand %p1995_p0, %p162_p1 }
   0x6   : > { %166 = sbr.rel (%p163_p2) target bundleno = 868 (0x364), region = 36 }
   0xd   : > { %p188_p3 = scmp.lt.s32.totalorder %s1991_s16, 1  ;;  %vm300_vm0 = vcmask 1046528   ;;  %s2259_s21 = smov 4   ;;  %vm477_vm1 = vcmask 1045504   ;;  %vm1256_vm2 = vcmask 31744   ;;  %vm1289_vm3 = vcmask 64512  }
   0xe   : > { %s2260_s22 = smov 8   ;;  %s2261_s23 = smov 12   ;;  %vm1322_vm4 = vcmask 97280   ;;  %vm1355_vm5 = vcmask 130048   ;;  %vm1388_vm6 = vcmask 162816   ;;  %vm1421_vm7 = vcmask 195584  }
   0xf   : > { %s4447_s16 = smov (!%p188_p3, %s1991_s16), 1  ;;  %s2262_s24 = smov 16   ;;  %vm1454_vm8 = vcmask 228352   ;;  %vm1487_vm9 = vcmask 261120   ;;  %vm1520_vm10 = vcmask 293888  }
  0x10   : > { %s2212_s17 = smul.u32 432, %s4447_s16  ;;  %s2263_s11 = smov 20  }
  0x11   : > { %s2265_s7 = smov 28   ;;  %s2266_s13 = smov 32  }
  0x12   : > { %s2306_s20 = scalar_lea.vmem %s4159_s0, %s2212_s17  ;;  %s2035_s17 = sshll.u32 %s4447_s16, 8 }
  0x13   : > { %v2309_v0 = vld [vmem:[%s2306_s20 + $0x18] sm:$0xff]  ;;  %v2312_v1 = vld [vmem:[%s2306_s20 + $0x20] sm:$0xff]  ;;  %v2320_v5 = vld [vmem:[%s2306_s20 + $0x8] sm:$0xff] }
  0x14   : > { %v2315_v2 = vld [vmem:[%s2306_s20] sm:$0xff]  ;;  %v306_v3 = vrot.slane %v2309_v0, 1  ;;  %v307_v4 = vrot.slane %v2312_v1, 1  ;;  %v2324_v7 = vld [vmem:[%s2306_s20 + $0x28] sm:$0x3]  ;;  %v302_v8 = vrot.slane %v2320_v5, 1 }
  0x15   : > { %v301_v6 = vrot.slane %v2315_v2, 1  ;;  %v309_v9 = vrot.slane %v2324_v7, 1  ;;  %v2329_v10 = vld [vmem:[%s2306_s20 + $0x10] sm:$0x3]  ;;  %v2332_v11 = vld [vmem:[%s2306_s20 + $0x38] sm:$0xff]  ;;  %v2362_v24 = vld [vmem:[%s2306_s20 + $0x48] sm:$0xff] }
  0x16   : > { %v2335_v12 = vsel %vm300_vm0, %v306_v3, %v307_v4  ;;  %v304_v13 = vrot.slane %v2329_v10, 1  ;;  %v2339_v14 = vld [vmem:[%s2306_s20 + $0x40] sm:$0x3]  ;;  %v2342_v15 = vld [vmem:[%s2306_s20 + $0x30] sm:$0xff]  ;;  %v312_v18 = vrot.slane %v2332_v11, 1  ;;  %v316_v29 = vrot.slane %v2362_v24, 1 }
  0x17   : > { %385 = vrot.lane.b32.xlu1 %v2335_v12, %s2259_s21  ;;  %v303_v16 = vsel %vm300_vm0, %v301_v6, %v302_v8  ;;  %v2349_v17 = vsel %vm300_vm0, %v307_v4, %v309_v9  ;;  %v314_v19 = vrot.slane %v2339_v14, 1  ;;  %v311_v21 = vrot.slane %v2342_v15, 1  ;;  %v2356_v22 = vld [vmem:[%s2306_s20 + $0x50] sm:$0xff]  ;;  %v2359_v23 = vld [vmem:[%s2306_s20 + $0x58] sm:$0x3]  ;;  %v2377_v30 = vld [vmem:[%s2306_s20 + $0x68] sm:$0xff] }
  0x18   : > { %381 = vrot.lane.b32.xlu0 %v303_v16, %s2259_s21  ;;  %v305_v20 = vsel %vm300_vm0, %v302_v8, %v304_v13  ;;  %v317_v26 = vrot.slane %v2356_v22, 1  ;;  %v319_v27 = vrot.slane %v2359_v23, 1  ;;  %v2380_v31 = vld [vmem:[%s2306_s20 + $0x70] sm:$0x3]  ;;  %v2383_v32 = vld [vmem:[%s2306_s20 + $0x60] sm:$0xff]  ;;  %v322_v34 = vrot.slane %v2377_v30, 1 }
  0x19   : > { %v2368_v25 = vsel %vm300_vm0, %v312_v18, %v314_v19  ;;  %v2373_v28 = vsel %vm300_vm0, %v311_v21, %v312_v18  ;;  %v324_v35 = vrot.slane %v2380_v31, 1  ;;  %v321_v37 = vrot.slane %v2383_v32, 1  ;;  %v2399_v38 = vld [vmem:[%s2306_s20 + $0x80] sm:$0xff]  ;;  %v2402_v39 = vld [vmem:[%s2306_s20 + $0x88] sm:$0x3]  ;;  %v2405_v40 = vld [vmem:[%s2306_s20 + $0x78] sm:$0xff] }
  0x1a   : > { %v2390_v33 = vsel %vm300_vm0, %v317_v26, %v319_v27  ;;  %v2395_v36 = vsel %vm300_vm0, %v316_v29, %v317_v26  ;;  %v327_v42 = vrot.slane %v2399_v38, 1  ;;  %v329_v43 = vrot.slane %v2402_v39, 1  ;;  %v2421_v46 = vld [vmem:[%s2306_s20 + $0x98] sm:$0xff]  ;;  %v2424_v47 = vld [vmem:[%s2306_s20 + $0xa0] sm:$0x3]  ;;  %v2427_v48 = vld [vmem:[%s2306_s20 + $0x90] sm:$0xff] }
  0x1b   : > { %387 = vrot.lane.b32.xlu1 %v2349_v17, %s2259_s21  ;;  %4269 = vst [vmem:[#allocation2_spill] sm:$0xff] %v2390_v33  ;;  %4270 = vst [vmem:[#allocation3_spill] sm:$0xff] %v2395_v36  ;;  %v2412_v41 = vsel %vm300_vm0, %v322_v34, %v324_v35  ;;  %v2417_v44 = vsel %vm300_vm0, %v321_v37, %v322_v34  ;;  %v326_v45 = vrot.slane %v2405_v40, 1  ;;  %v332_v50 = vrot.slane %v2421_v46, 1  ;;  %v2443_v54 = vld [vmem:[%s2306_s20 + $0xb0] sm:$0xff]  ;;  %v2449_v56 = vld [vmem:[%s2306_s20 + $0xa8] sm:$0xff] }
  0x1c   : > { %383 = vrot.lane.b32.xlu0 %v305_v20, %s2259_s21  ;;  %4271 = vst [vmem:[#allocation4_spill] sm:$0xff] %v2412_v41  ;;  %4272 = vst [vmem:[#allocation5_spill] sm:$0xff] %v2417_v44  ;;  %v2434_v49 = vsel %vm300_vm0, %v327_v42, %v329_v43  ;;  %v334_v51 = vrot.slane %v2424_v47, 1  ;;  %v331_v53 = vrot.slane %v2427_v48, 1  ;;  %v2446_v55 = vld [vmem:[%s2306_s20 + $0xb8] sm:$0x3] }
  0x1d   : > { %4273 = vst [vmem:[#allocation6_spill] sm:$0xff] %v2434_v49  ;;  %v2439_v52 = vsel %vm300_vm0, %v326_v45, %v327_v42  ;;  %v337_v58 = vrot.slane %v2443_v54, 1  ;;  %v339_v59 = vrot.slane %v2446_v55, 1  ;;  %v336_v61 = vrot.slane %v2449_v56, 1  ;;  %v2465_v62 = vld [vmem:[%s2306_s20 + $0xc8] sm:$0xff]  ;;  %v2471_v3 = vld [vmem:[%s2306_s20 + $0xc0] sm:$0xff] }
  0x1e   : > { %4274 = vst [vmem:[#allocation7_spill] sm:$0xff] %v2439_v52  ;;  %v2456_v57 = vsel %vm300_vm0, %v332_v50, %v334_v51  ;;  %v2461_v60 = vsel %vm300_vm0, %v331_v53, %v332_v50  ;;  %v2468_v63 = vld [vmem:[%s2306_s20 + $0xd0] sm:$0x3]  ;;  %v342_v6 = vrot.slane %v2465_v62, 1  ;;  %v341_v13 = vrot.slane %v2471_v3, 1  ;;  %v2487_v16 = vld [vmem:[%s2306_s20 + $0xe0] sm:$0xff] }
  0x1f   : > { %391 = vrot.lane.b32.xlu1 %v2368_v25, %s2259_s21  ;;  %4275 = vst [vmem:[#allocation8_spill] sm:$0xff] %v2456_v57  ;;  %4276 = vst [vmem:[#allocation9_spill] sm:$0xff] %v2461_v60  ;;  %v2478_v4 = vsel %vm300_vm0, %v337_v58, %v339_v59  ;;  %v344_v8 = vrot.slane %v2468_v63, 1  ;;  %v2483_v9 = vsel %vm300_vm0, %v336_v61, %v337_v58  ;;  %v2490_v18 = vld [vmem:[%s2306_s20 + $0xe8] sm:$0x3]  ;;  %v2493_v19 = vld [vmem:[%s2306_s20 + $0xd8] sm:$0xff] }
  0x20   : > { %389 = vrot.lane.b32.xlu0 %v2373_v28, %s2259_s21  ;;  %4277 = vst [vmem:[#allocation10_spill] sm:$0xff] %v2478_v4  ;;  %4278 = vst [vmem:[#allocation11_spill] sm:$0xff] %v2483_v9  ;;  %v347_v21 = vrot.slane %v2487_v16, 1  ;;  %v349_v26 = vrot.slane %v2490_v18, 1  ;;  %v2505_v27 = vsel %vm300_vm0, %v341_v13, %v342_v6  ;;  %v346_v29 = vrot.slane %v2493_v19, 1  ;;  %v2509_v34 = vld [vmem:[%s2306_s20 + $0xf8] sm:$0xff] }
  0x21   : > { %v2500_v20 = vsel %vm300_vm0, %v342_v6, %v344_v8  ;;  %4280 = vst [vmem:[#allocation13_spill] sm:$0xff] %v2505_v27  ;;  %v2512_v35 = vld [vmem:[%s2306_s20 + $0x100] sm:$0x3]  ;;  %v2515_v37 = vld [vmem:[%s2306_s20 + $0xf0] sm:$0xff]  ;;  %v352_v43 = vrot.slane %v2509_v34, 1  ;;  %v2537_v59 = vld [vmem:[%s2306_s20 + $0x108] sm:$0xff] }
  0x22   : > { %4279 = vst [vmem:[#allocation12_spill] sm:$0xff] %v2500_v20  ;;  %v2522_v42 = vsel %vm300_vm0, %v347_v21, %v349_v26  ;;  %v354_v45 = vrot.slane %v2512_v35, 1  ;;  %v2527_v50 = vsel %vm300_vm0, %v346_v29, %v347_v21  ;;  %v351_v51 = vrot.slane %v2515_v37, 1  ;;  %v2531_v53 = vld [vmem:[%s2306_s20 + $0x110] sm:$0xff]  ;;  %v2534_v58 = vld [vmem:[%s2306_s20 + $0x118] sm:$0x3] }
  0x23   : > { %395 = vrot.lane.b32.xlu1 %v2390_v33, %s2259_s21  ;;  %4281 = vst [vmem:[#allocation14_spill] sm:$0xff] %v2522_v42  ;;  %4282 = vst [vmem:[#allocation15_spill] sm:$0xff] %v2527_v50  ;;  %v357_v6 = vrot.slane %v2531_v53, 1  ;;  %v359_v8 = vrot.slane %v2534_v58, 1  ;;  %v356_v21 = vrot.slane %v2537_v59, 1  ;;  %v2553_v26 = vld [vmem:[%s2306_s20 + $0x128] sm:$0xff] }
  0x24   : > { %393 = vrot.lane.b32.xlu0 %v2395_v36, %s2259_s21  ;;  %v2544_v61 = vsel %vm300_vm0, %v352_v43, %v354_v45  ;;  %v2549_v13 = vsel %vm300_vm0, %v351_v51, %v352_v43  ;;  %4285 = vst [vmem:[#allocation18_spill] sm:$0xff] %v2553_v26  ;;  %v2556_v29 = vld [vmem:[%s2306_s20 + $0x130] sm:$0x3]  ;;  %v362_v43 = vrot.slane %v2553_v26, 1 }
  0x25   : > { %4283 = vst [vmem:[#allocation16_spill] sm:$0xff] %v2544_v61  ;;  %4284 = vst [vmem:[#allocation17_spill] sm:$0xff] %v2549_v13  ;;  %v2566_v45 = vsel %vm300_vm0, %v357_v6, %v359_v8  ;;  %v364_v51 = vrot.slane %v2556_v29, 1  ;;  %v2603_v33 = vld [vmem:[%s2306_s20 + $0x150] sm:$0xff] }
  0x26   : > { %4287 = vst [vmem:[#allocation20_spill] sm:$0xff] %v2566_v45  ;;  %4294 = vst [vmem:[#allocation27_spill] sm:$0xff] %v2603_v33 }
  0x27   : > { %399 = vrot.lane.b32.xlu1 %v2412_v41, %s2259_s21  ;;  %v2588_v8 = vsel %vm300_vm0, %v362_v43, %v364_v51  ;;  %v2597_v41 = vld [vmem:[%s2306_s20 + $0x158] sm:$0xff] }
  0x28   : > { %397 = vrot.lane.b32.xlu0 %v2417_v44, %s2259_s21  ;;  %4291 = vst [vmem:[#allocation24_spill] sm:$0xff] %v2588_v8  ;;  %4293 = vst [vmem:[#allocation26_spill] sm:$0xff] %v2597_v41  ;;  %v2600_v44 = vld [vmem:[%s2306_s20 + $0x160] sm:$0x3] }
  0x2b   : > { %403 = vrot.lane.b32.xlu1 %v2434_v49, %s2259_s21 }
  0x2c   : > { %401 = vrot.lane.b32.xlu0 %v2439_v52, %s2259_s21 }
  0x2f   : > { %407 = vrot.lane.b32.xlu1 %v2456_v57, %s2259_s21  ;;  %v2578_v57 = vld [vmem:[%s2306_s20 + $0x148] sm:$0x3] }
  0x30   : > { %405 = vrot.lane.b32.xlu0 %v2461_v60, %s2259_s21  ;;  %v2581_v60 = vld [vmem:[%s2306_s20 + $0x138] sm:$0xff] }
  0x31   : > { %4290 = vst [vmem:[#allocation23_spill] sm:$0xff] %v2581_v60  ;;  %v366_v52 = vrot.slane %v2581_v60, 1 }
  0x33   : > { %411 = vrot.lane.b32.xlu1 %v2478_v4, %s2259_s21 }
  0x34   : > { %409 = vrot.lane.b32.xlu0 %v2483_v9, %s2259_s21  ;;  %v2575_v9 = vld [vmem:[%s2306_s20 + $0x140] sm:$0xff] }
  0x35   : > { %4289 = vst [vmem:[#allocation22_spill] sm:$0xff] %v2575_v9 }
  0x37   : > { %415 = vrot.lane.b32.xlu1 %v2500_v20, %s2259_s21  ;;  %v2559_v20 = vld [vmem:[%s2306_s20 + $0x120] sm:$0xff] }
  0x38   : > { %413 = vrot.lane.b32.xlu0 %v2505_v27, %s2259_s21  ;;  %4286 = vst [vmem:[#allocation19_spill] sm:$0xff] %v2559_v20  ;;  %v2571_v27 = vsel %vm300_vm0, %v356_v21, %v357_v6  ;;  %v361_v4 = vrot.slane %v2559_v20, 1  ;;  %v367_v6 = vrot.slane %v2575_v9, 1  ;;  %v369_v21 = vrot.slane %v2578_v57, 1 }
  0x39   : > { %4288 = vst [vmem:[#allocation21_spill] sm:$0xff] %v2571_v27 }
  0x3a   : > { %v2593_v49 = vsel %vm300_vm0, %v361_v4, %v362_v43  ;;  %v2610_v51 = vsel %vm300_vm0, %v367_v6, %v369_v21  ;;  %v372_v4 = vrot.slane %v2597_v41, 1  ;;  %v374_v43 = vrot.slane %v2600_v44, 1 }
  0x3b   : > { %419 = vrot.lane.b32.xlu1 %v2522_v42, %s2259_s21  ;;  %4292 = vst [vmem:[#allocation25_spill] sm:$0xff] %v2593_v49  ;;  %4295 = vst [vmem:[#allocation28_spill] sm:$0xff] %v2610_v51 }
  0x3c   : > { %417 = vrot.lane.b32.xlu0 %v2527_v50, %s2259_s21  ;;  %v2632_v21 = vsel %vm300_vm0, %v372_v4, %v374_v43  ;;  %v479_v43 = vrot.slane %v2320_v5, 2  ;;  %v486_v5 = vrot.slane %v2324_v7, 2  ;;  %v488_v7 = vrot.slane %v2342_v15, 2 }
  0x3d   : > { %4299 = vst [vmem:[#allocation32_spill] sm:$0xff] %v2632_v21 }
  0x3f   : > { %423 = vrot.lane.b32.xlu1 %v2544_v61, %s2259_s21  ;;  %v2619_v61 = vld [vmem:[%s2306_s20 + $0x170] sm:$0xff] }
  0x40   : > { %421 = vrot.lane.b32.xlu0 %v2549_v13, %s2259_s21  ;;  %4297 = vst [vmem:[#allocation30_spill] sm:$0xff] %v2619_v61  ;;  %v2622_v13 = vld [vmem:[%s2306_s20 + $0x178] sm:$0x3] }
  0x43   : > { %427 = vrot.lane.b32.xlu1 %v2566_v45, %s2259_s21  ;;  %v2615_v45 = vsel %vm300_vm0, %v366_v52, %v367_v6  ;;  %v377_v52 = vrot.slane %v2619_v61, 1  ;;  %v379_v6 = vrot.slane %v2622_v13, 1 }
  0x44   : > { %425 = vrot.lane.b32.xlu0 %v2571_v27, %s2259_s21  ;;  %4296 = vst [vmem:[#allocation29_spill] sm:$0xff] %v2615_v45  ;;  %v371_v27 = vrot.slane %v2603_v33, 1 }
  0x47   : > { %431 = vrot.lane.b32.xlu1 %v2588_v8, %s2259_s21  ;;  %v2625_v8 = vld [vmem:[%s2306_s20 + $0x168] sm:$0xff] }
  0x48   : > { %429 = vrot.lane.b32.xlu0 %v2593_v49, %s2259_s21  ;;  %4298 = vst [vmem:[#allocation31_spill] sm:$0xff] %v2625_v8  ;;  %v2637_v49 = vsel %vm300_vm0, %v371_v27, %v372_v4  ;;  %v376_v42 = vrot.slane %v2625_v8, 1  ;;  %v478_v27 = vrot.slane %v2315_v2, 2 }
  0x49   : > { %4300 = vst [vmem:[#allocation33_spill] sm:$0xff] %v2637_v49 }
  0x4a   : > { %v2650_v36 = vsel %vm300_vm0, %v376_v42, %v377_v52  ;;  %v483_v42 = vrot.slane %v2309_v0, 2 }
  0x4b   : > { %435 = vrot.lane.b32.xlu1 %v2610_v51, %s2259_s21  ;;  %v2645_v51 = vsel %vm300_vm0, %v377_v52, %v379_v6  ;;  %4302 = vst [vmem:[#allocation35_spill] sm:$0xff] %v2650_v36  ;;  %v484_v6 = vrot.slane %v2312_v1, 2  ;;  %v489_v52 = vrot.slane %v2332_v11, 2 }
  0x4c   : > { %433 = vrot.lane.b32.xlu0 %v2615_v45, %s2259_s21  ;;  %4301 = vst [vmem:[#allocation34_spill] sm:$0xff] %v2645_v51  ;;  %v481_v45 = vrot.slane %v2329_v10, 2  ;;  %v480_v10 = vsel %vm477_vm1, %v478_v27, %v479_v43  ;;  %v494_v27 = vrot.slane %v2356_v22, 2 }
  0x4d   : > { %v2665_v2 = vsel %vm477_vm1, %v484_v6, %v486_v5 }
  0x4e   : > { %v482_v4 = vsel %vm477_vm1, %v479_v43, %v481_v45  ;;  %v491_v45 = vrot.slane %v2339_v14, 2  ;;  %v2683_v14 = vsel %vm477_vm1, %v488_v7, %v489_v52  ;;  %v504_v7 = vrot.slane %v2399_v38, 2 }
  0x4f   : > { %439 = vrot.lane.b32.xlu1 %v2632_v21, %s2259_s21  ;;  %v516_v21 = vrot.slane %v2446_v55, 2 }
  0x50   : > { %437 = vrot.lane.b32.xlu0 %v2637_v49, %s2259_s21  ;;  %v2678_v43 = vsel %vm477_vm1, %v489_v52, %v491_v45  ;;  %v498_v52 = vrot.slane %v2383_v32, 2  ;;  %v521_v49 = vrot.slane %v2468_v63, 2 }
  0x53   : > { %443 = vrot.lane.b32.xlu1 %v2645_v51, %s2259_s21  ;;  %v2670_v51 = vsel %vm477_vm1, %v483_v42, %v484_v6  ;;  %v493_v6 = vrot.slane %v2362_v24, 2  ;;  %v501_v42 = vrot.slane %v2380_v31, 2 }
  0x54   : > { %441 = vrot.lane.b32.xlu0 %v2650_v36, %s2259_s21  ;;  %v511_v36 = vrot.slane %v2424_v47, 2  ;;  %s3963_s21 = scalar_lea.vmem %s4163_s4, %s2035_s17 }
  0x57   : > { %560 = vrot.lane.b32.xlu1 %v482_v4, %s2260_s22  ;;  %v496_v4 = vrot.slane %v2359_v23, 2  ;;  %v2696_v23 = vsel %vm477_vm1, %v493_v6, %v494_v27 }
  0x58   : > { %558 = vrot.lane.b32.xlu0 %v480_v10, %s2260_s22  ;;  %v499_v10 = vrot.slane %v2377_v30, 2 }
  0x59   : > { %v2691_v5 = vsel %vm477_vm1, %v494_v27, %v496_v4  ;;  %v506_v4 = vrot.slane %v2402_v39, 2  ;;  %v503_v27 = vrot.slane %v2405_v40, 2 }
  0x5a   : > { %v2704_v45 = vsel %vm477_vm1, %v499_v10, %v501_v42  ;;  %v2709_v31 = vsel %vm477_vm1, %v498_v52, %v499_v10  ;;  %v509_v42 = vrot.slane %v2421_v46, 2  ;;  %v508_v10 = vrot.slane %v2427_v48, 2 }
  0x5b   : > { %564 = vrot.lane.b32.xlu1 %v2665_v2, %s2260_s22  ;;  %4303 = vst [vmem:[#allocation36_spill] sm:$0xff] %v2704_v45  ;;  %4304 = vst [vmem:[#allocation37_spill] sm:$0xff] %v2709_v31  ;;  %v2717_v6 = vsel %vm477_vm1, %v504_v7, %v506_v4  ;;  %v2722_v39 = vsel %vm477_vm1, %v503_v27, %v504_v7  ;;  %v514_v4 = vrot.slane %v2443_v54, 2  ;;  %v513_v7 = vrot.slane %v2449_v56, 2 }
  0x5c   : > { %562 = vrot.lane.b32.xlu0 %v2670_v51, %s2260_s22  ;;  %4305 = vst [vmem:[#allocation38_spill] sm:$0xff] %v2717_v6  ;;  %4306 = vst [vmem:[#allocation39_spill] sm:$0xff] %v2722_v39  ;;  %v2730_v52 = vsel %vm477_vm1, %v509_v42, %v511_v36  ;;  %v2735_v47 = vsel %vm477_vm1, %v508_v10, %v509_v42  ;;  %v519_v36 = vrot.slane %v2465_v62, 2  ;;  %v518_v42 = vrot.slane %v2471_v3, 2 }
  0x5d   : > { %4307 = vst [vmem:[#allocation40_spill] sm:$0xff] %v2730_v52  ;;  %4308 = vst [vmem:[#allocation41_spill] sm:$0xff] %v2735_v47  ;;  %v2743_v27 = vsel %vm477_vm1, %v514_v4, %v516_v21  ;;  %v2748_v55 = vsel %vm477_vm1, %v513_v7, %v514_v4  ;;  %v524_v21 = vrot.slane %v2487_v16, 2  ;;  %v523_v4 = vrot.slane %v2493_v19, 2 }
  0x5e   : > { %4309 = vst [vmem:[#allocation42_spill] sm:$0xff] %v2743_v27  ;;  %4310 = vst [vmem:[#allocation43_spill] sm:$0xff] %v2748_v55  ;;  %v2756_v10 = vsel %vm477_vm1, %v519_v36, %v521_v49  ;;  %v2761_v63 = vsel %vm477_vm1, %v518_v42, %v519_v36  ;;  %v529_v49 = vrot.slane %v2509_v34, 2  ;;  %v528_v36 = vrot.slane %v2515_v37, 2 }
  0x5f   : > { %568 = vrot.lane.b32.xlu1 %v2678_v43, %s2260_s22  ;;  %4311 = vst [vmem:[#allocation44_spill] sm:$0xff] %v2756_v10  ;;  %4312 = vst [vmem:[#allocation45_spill] sm:$0xff] %v2761_v63 }
  0x60   : > { %566 = vrot.lane.b32.xlu0 %v2683_v14, %s2260_s22 }
  0x63   : > { %572 = vrot.lane.b32.xlu1 %v2691_v5, %s2260_s22 }
  0x64   : > { %570 = vrot.lane.b32.xlu0 %v2696_v23, %s2260_s22 }
  0x67   : > { %576 = vrot.lane.b32.xlu1 %v2704_v45, %s2260_s22 }
  0x68   : > { %574 = vrot.lane.b32.xlu0 %v2709_v31, %s2260_s22 }
  0x6b   : > { %580 = vrot.lane.b32.xlu1 %v2717_v6, %s2260_s22 }
  0x6c   : > { %578 = vrot.lane.b32.xlu0 %v2722_v39, %s2260_s22 }
  0x6f   : > { %584 = vrot.lane.b32.xlu1 %v2730_v52, %s2260_s22  ;;  %v526_v52 = vrot.slane %v2490_v18, 2  ;;  %v2774_v18 = vsel %vm477_vm1, %v523_v4, %v524_v21 }
  0x70   : > { %582 = vrot.lane.b32.xlu0 %v2735_v47, %s2260_s22  ;;  %4314 = vst [vmem:[#allocation47_spill] sm:$0xff] %v2774_v18  ;;  %v551_v47 = vrot.slane %v2600_v44, 2  ;;  %v554_v44 = vrot.slane %v2619_v61, 2 }
  0x71   : > { %v2769_v7 = vsel %vm477_vm1, %v524_v21, %v526_v52  ;;  %v534_v52 = vrot.slane %v2531_v53, 2  ;;  %v533_v21 = vrot.slane %v2537_v59, 2 }
  0x72   : > { %4313 = vst [vmem:[#allocation46_spill] sm:$0xff] %v2769_v7 }
  0x73   : > { %588 = vrot.lane.b32.xlu1 %v2743_v27, %s2260_s22  ;;  %v531_v27 = vrot.slane %v2512_v35, 2  ;;  %v2787_v35 = vsel %vm477_vm1, %v528_v36, %v529_v49 }
  0x74   : > { %586 = vrot.lane.b32.xlu0 %v2748_v55, %s2260_s22  ;;  %v546_v55 = vrot.slane %v2578_v57, 2 }
  0x75   : > { %v2782_v42 = vsel %vm477_vm1, %v529_v49, %v531_v27  ;;  %v539_v27 = vrot.slane %v2553_v26, 2  ;;  %v538_v49 = vrot.slane %v2559_v20, 2 }
  0x77   : > { %592 = vrot.lane.b32.xlu1 %v2756_v10, %s2260_s22  ;;  %v536_v10 = vrot.slane %v2534_v58, 2  ;;  %v2800_v58 = vsel %vm477_vm1, %v533_v21, %v534_v52 }
  0x78   : > { %590 = vrot.lane.b32.xlu0 %v2761_v63, %s2260_s22  ;;  %v541_v63 = vrot.slane %v2556_v29, 2  ;;  %v2813_v29 = vsel %vm477_vm1, %v538_v49, %v539_v27 }
  0x79   : > { %v2795_v4 = vsel %vm477_vm1, %v534_v52, %v536_v10  ;;  %v544_v10 = vrot.slane %v2575_v9, 2  ;;  %4316 = vst [vmem:[#allocation49_spill] sm:$0xff] %v2813_v29  ;;  %v543_v52 = vrot.slane %v2581_v60, 2 }
  0x7a   : > { %v2808_v36 = vsel %vm477_vm1, %v539_v27, %v541_v63  ;;  %v549_v63 = vrot.slane %v2597_v41, 2  ;;  %v548_v27 = vrot.slane %v2603_v33, 2 }
  0x7b   : > { %596 = vrot.lane.b32.xlu1 %v2769_v7, %s2260_s22  ;;  %4315 = vst [vmem:[#allocation48_spill] sm:$0xff] %v2808_v36  ;;  %v2821_v21 = vsel %vm477_vm1, %v544_v10, %v546_v55  ;;  %v2828_v57 = vsel %vm477_vm1, %v543_v52, %v544_v10  ;;  %v553_v52 = vrot.slane %v2625_v8, 2 }
  0x7c   : > { %594 = vrot.lane.b32.xlu0 %v2774_v18, %s2260_s22  ;;  %4317 = vst [vmem:[#allocation50_spill] sm:$0xff] %v2821_v21  ;;  %4319 = vst [vmem:[#allocation52_spill] sm:$0xff] %v2828_v57  ;;  %v2838_v55 = vsel %vm477_vm1, %v549_v63, %v551_v47  ;;  %v2845_v10 = vsel %vm477_vm1, %v548_v27, %v549_v63 }
  0x7d   : > { %4321 = vst [vmem:[#allocation54_spill] sm:$0xff] %v2838_v55  ;;  %4323 = vst [vmem:[#allocation56_spill] sm:$0xff] %v2845_v10 }
  0x7f   : > { %600 = vrot.lane.b32.xlu1 %v2782_v42, %s2260_s22 }
  0x80   : > { %598 = vrot.lane.b32.xlu0 %v2787_v35, %s2260_s22 }
  0x83   : > { %604 = vrot.lane.b32.xlu1 %v2795_v4, %s2260_s22 }
  0x84   : > { %602 = vrot.lane.b32.xlu0 %v2800_v58, %s2260_s22 }
  0x87   : > { %608 = vrot.lane.b32.xlu1 %v2808_v36, %s2260_s22 }
  0x88   : > { %606 = vrot.lane.b32.xlu0 %v2813_v29, %s2260_s22 }
  0x89   : > { %v2825_v6 = vpop.permute.xlu1 %385 }
  0x8a   : > { %4318 = vst [vmem:[#allocation51_spill] sm:$0xff] %v2825_v6  ;;  %v2831_v49 = vpop.permute.xlu0 %381  ;;  %v556_v6 = vrot.slane %v2622_v13, 2  ;;  %v2860_v13 = vsel %vm477_vm1, %v553_v52, %v554_v44 }
  0x8b   : > { %4320 = vst [vmem:[#allocation53_spill] sm:$0xff] %v2831_v49  ;;  %612 = vrot.lane.b32.xlu1 %v2821_v21, %s2260_s22  ;;  %4326 = vst [vmem:[#allocation59_spill] sm:$0xff] %v2860_v13 }
  0x8c   : > { %610 = vrot.lane.b32.xlu0 %v2828_v57, %s2260_s22  ;;  %v2855_v47 = vsel %vm477_vm1, %v554_v44, %v556_v6 }
  0x8d   : > { %v2842_v39 = vpop.permute.xlu1 %387  ;;  %4325 = vst [vmem:[#allocation58_spill] sm:$0xff] %v2855_v47 }
  0x8e   : > { %4322 = vst [vmem:[#allocation55_spill] sm:$0xff] %v2842_v39  ;;  %v2848_v49 = vpop.permute.xlu0 %383 }
  0x8f   : > { %4324 = vst [vmem:[#allocation57_spill] sm:$0xff] %v2848_v49  ;;  %616 = vrot.lane.b32.xlu1 %v2838_v55, %s2260_s22 }
  0x90   : > { %614 = vrot.lane.b32.xlu0 %v2845_v10, %s2260_s22 }
  0x91   : > { %v2857_v21 = vpop.permute.xlu1 %391 }
  0x92   : > { %v2862_v63 = vpop.permute.xlu0 %389 }
  0x93   : > { %620 = vrot.lane.b32.xlu1 %v2855_v47, %s2260_s22 }
  0x94   : > { %618 = vrot.lane.b32.xlu0 %v2860_v13, %s2260_s22 }
  0x95   : > { %v2868_v27 = vpop.permute.xlu1 %395 }
  0x96   : > { %v2870_v55 = vpop.permute.xlu0 %393 }
  0x97   : > { %658 = vrot.lane.b32.xlu1 %v2312_v1, %s2261_s23 }
  0x98   : > { %656 = vrot.lane.b32.xlu0 %v2309_v0, %s2261_s23 }
  0x99   : > { %v2876_v6 = vpop.permute.xlu1 %399 }
  0x9a   : > { %v2878_v44 = vpop.permute.xlu0 %397 }
  0x9b   : > { %662 = vrot.lane.b32.xlu1 %v2332_v11, %s2261_s23 }
  0x9c   : > { %660 = vrot.lane.b32.xlu0 %v2342_v15, %s2261_s23 }
  0x9d   : > { %v2884_v52 = vpop.permute.xlu1 %403 }
  0x9e   : > { %v2886_v47 = vpop.permute.xlu0 %401 }
  0x9f   : > { %666 = vrot.lane.b32.xlu1 %v2356_v22, %s2261_s23 }
  0xa0   : > { %664 = vrot.lane.b32.xlu0 %v2362_v24, %s2261_s23 }
  0xa1   : > { %v2892_v0 = vpop.permute.xlu1 %407 }
  0xa2   : > { %v2894_v1 = vpop.permute.xlu0 %405 }
  0xa3   : > { %670 = vrot.lane.b32.xlu1 %v2377_v30, %s2261_s23 }
  0xa4   : > { %668 = vrot.lane.b32.xlu0 %v2383_v32, %s2261_s23 }
  0xa5   : > { %v2900_v13 = vpop.permute.xlu1 %411 }
  0xa6   : > { %v2902_v39 = vpop.permute.xlu0 %409 }
  0xa7   : > { %674 = vrot.lane.b32.xlu1 %v2399_v38, %s2261_s23 }
  0xa8   : > { %672 = vrot.lane.b32.xlu0 %v2405_v40, %s2261_s23 }
  0xa9   : > { %v2908_v10 = vpop.permute.xlu1 %415 }
  0xaa   : > { %4327 = vst [vmem:[#allocation60_spill] sm:$0xff] %v2908_v10  ;;  %v2910_v57 = vpop.permute.xlu0 %413 }
  0xab   : > { %4328 = vst [vmem:[#allocation61_spill] sm:$0xff] %v2910_v57  ;;  %678 = vrot.lane.b32.xlu1 %v2421_v46, %s2261_s23 }
  0xac   : > { %676 = vrot.lane.b32.xlu0 %v2427_v48, %s2261_s23 }
  0xad   : > { %v2916_v49 = vpop.permute.xlu1 %419 }
  0xae   : > { %4329 = vst [vmem:[#allocation62_spill] sm:$0xff] %v2916_v49  ;;  %v2918_v45 = vpop.permute.xlu0 %417 }
  0xaf   : > { %4330 = vst [vmem:[#allocation63_spill] sm:$0xff] %v2918_v45  ;;  %682 = vrot.lane.b32.xlu1 %v2443_v54, %s2261_s23 }
  0xb0   : > { %680 = vrot.lane.b32.xlu0 %v2449_v56, %s2261_s23 }
  0xb1   : > { %v2924_v36 = vpop.permute.xlu1 %423 }
  0xb2   : > { %v2926_v10 = vpop.permute.xlu0 %421 }
  0xb3   : > { %686 = vrot.lane.b32.xlu1 %v2465_v62, %s2261_s23 }
  0xb4   : > { %684 = vrot.lane.b32.xlu0 %v2471_v3, %s2261_s23 }
  0xb5   : > { %v2932_v57 = vpop.permute.xlu1 %427 }
  0xb6   : > { %v2934_v49 = vpop.permute.xlu0 %425 }
  0xb7   : > { %4331 = vst [vmem:[#allocation64_spill] sm:$0xff] %v2934_v49  ;;  %690 = vrot.lane.b32.xlu1 %v2487_v16, %s2261_s23  ;;  %v4354_v49 = vld [vmem:[#allocation16_spill] sm:$0xff] }
  0xb8   : > { %688 = vrot.lane.b32.xlu0 %v2493_v19, %s2261_s23 }
  0xb9   : > { %v2940_v45 = vpop.permute.xlu1 %431 }
  0xba   : > { %4332 = vst [vmem:[#allocation65_spill] sm:$0xff] %v2940_v45  ;;  %v2942_v31 = vpop.permute.xlu0 %429 }
  0xbb   : > { %4333 = vst [vmem:[#allocation66_spill] sm:$0xff] %v2942_v31  ;;  %694 = vrot.lane.b32.xlu1 %v2509_v34, %s2261_s23 }
  0xbc   : > { %692 = vrot.lane.b32.xlu0 %v2515_v37, %s2261_s23 }
  0xbd   : > { %v2948_v62 = vpop.permute.xlu1 %435 }
  0xbe   : > { %4334 = vst [vmem:[#allocation67_spill] sm:$0xff] %v2948_v62  ;;  %v2950_v3 = vpop.permute.xlu0 %433 }
  0xbf   : > { %4335 = vst [vmem:[#allocation68_spill] sm:$0xff] %v2950_v3  ;;  %698 = vrot.lane.b32.xlu1 %v2531_v53, %s2261_s23 }
  0xc0   : > { %696 = vrot.lane.b32.xlu0 %v2537_v59, %s2261_s23 }
  0xc1   : > { %v2956_v16 = vpop.permute.xlu1 %439 }
  0xc2   : > { %4336 = vst [vmem:[#allocation69_spill] sm:$0xff] %v2956_v16  ;;  %v2958_v19 = vpop.permute.xlu0 %437 }
  0xc3   : > { %4337 = vst [vmem:[#allocation70_spill] sm:$0xff] %v2958_v19  ;;  %702 = vrot.lane.b32.xlu1 %v2553_v26, %s2261_s23  ;;  %v1557_v26 = vld [vmem:[%s4160_s1 + $0x20] sm:$0xff] }
  0xc4   : > { %700 = vrot.lane.b32.xlu0 %v2559_v20, %s2261_s23  ;;  %v1559_v20 = vld [vmem:[%s4160_s1 + $0x30] sm:$0xff] }
  0xc5   : > { %v2964_v29 = vpop.permute.xlu1 %443 }
  0xc6   : > { %4338 = vst [vmem:[#allocation71_spill] sm:$0xff] %v2964_v29  ;;  %v2966_v3 = vpop.permute.xlu0 %441 }
  0xc7   : > { %4339 = vst [vmem:[#allocation72_spill] sm:$0xff] %v2966_v3  ;;  %706 = vrot.lane.b32.xlu1 %v2575_v9, %s2261_s23  ;;  %v2989_v3 = vld [vmem:[%s2306_s20 + $0x188] sm:$0xff] }
  0xc8   : > { %704 = vrot.lane.b32.xlu0 %v2581_v60, %s2261_s23  ;;  %4344 = vst [vmem:[#allocation77_spill] sm:$0xff] %v2989_v3  ;;  %v1556_v60 = vld [vmem:[%s4160_s1 + $0x18] sm:$0xff]  ;;  %v4346_v9 = vld [vmem:[#allocation3_spill] sm:$0xff] }
  0xc9   : > { %v2972_v16 = vpop.permute.xlu1 %560 }
  0xca   : > { %4340 = vst [vmem:[#allocation73_spill] sm:$0xff] %v2972_v16  ;;  %v2974_v19 = vpop.permute.xlu0 %558 }
  0xcb   : > { %4341 = vst [vmem:[#allocation74_spill] sm:$0xff] %v2974_v19  ;;  %710 = vrot.lane.b32.xlu1 %v2597_v41, %s2261_s23  ;;  %v2994_v19 = vld [vmem:[%s2306_s20 + $0x180] sm:$0xff] }
  0xcc   : > { %708 = vrot.lane.b32.xlu0 %v2603_v33, %s2261_s23  ;;  %4345 = vst [vmem:[#allocation78_spill] sm:$0xff] %v2994_v19 }
  0xcd   : > { %v2980_v62 = vpop.permute.xlu1 %564 }
  0xce   : > { %4342 = vst [vmem:[#allocation75_spill] sm:$0xff] %v2980_v62  ;;  %v2982_v29 = vpop.permute.xlu0 %562 }
  0xcf   : > { %4343 = vst [vmem:[#allocation76_spill] sm:$0xff] %v2982_v29  ;;  %714 = vrot.lane.b32.xlu1 %v2619_v61, %s2261_s23 }
  0xd0   : > { %712 = vrot.lane.b32.xlu0 %v2625_v8, %s2261_s23 }
  0xd1   : > { %v2991_v16 = vpop.permute.xlu1 %568 }
  0xd2   : > { %v2996_v41 = vpop.permute.xlu0 %566 }
  0xd3   : > { %718 = vrot.lane.b32.xlu1 %v2989_v3, %s2261_s23  ;;  %v1553_v3 = vld [vmem:[%s4160_s1] sm:$0xff] }
  0xd4   : > { %716 = vrot.lane.b32.xlu0 %v2994_v19, %s2261_s23  ;;  %v1554_v19 = vld [vmem:[%s4160_s1 + $0x8] sm:$0xff]  ;;  %s2264_s23 = smov 24  }
  0xd5   : > { %v3002_v62 = vpop.permute.xlu1 %572  ;;  %v2164_v33 = vpack.c.bf16 %v1554_v19, %v1553_v3 }
  0xd6   : > { %v3004_v29 = vpop.permute.xlu0 %570 }
  0xd7   : > { %760 = vrot.lane.b32.xlu1 %v2349_v17, %s2262_s24  ;;  %2165 = vmatprep.subr.bf16.mxu0 %v2164_v33  ;;  %v1555_v17 = vld [vmem:[%s4160_s1 + $0x10] sm:$0xff] }
  0xd8   : > { %758 = vrot.lane.b32.xlu0 %v2335_v12, %s2262_s24  ;;  %2167 = vmatpush3.bf16.msra.mxu0 %v2164_v33  ;;  %v2168_v19 = vpack.c.bf16 %v1556_v60, %v1555_v17  ;;  %v1558_v60 = vld [vmem:[%s4160_s1 + $0x28] sm:$0xff] }
  0xd9   : > { %v3010_v8 = vpop.permute.xlu1 %576  ;;  %2196 = vmatprep.subr.bf16.mxu1 %v2164_v33  ;;  %v2172_v17 = vpack.c.bf16 %v1558_v60, %v1557_v26  ;;  %v1560_v26 = vld [vmem:[%s4160_s1 + $0x38] sm:$0xff] }
  0xda   : > { %v3018_v61 = vpop.permute.xlu0 %574  ;;  %2204 = vmatpush3.bf16.msra.mxu1 %v2164_v33  ;;  %2169 = vmatprep.subr.bf16.mxu0 %v2168_v19  ;;  %v2176_v60 = vpack.c.bf16 %v1560_v26, %v1559_v20  ;;  %v1562_v20 = vld [vmem:[%s4160_s1 + $0x48] sm:$0xff] }
  0xdb   : > { %764 = vrot.lane.b32.xlu1 %v2368_v25, %s2262_s24  ;;  %2197 = vmatprep.subr.bf16.mxu1 %v2168_v19 }
  0xdc   : > { %762 = vrot.lane.b32.xlu0 %v2373_v28, %s2262_s24  ;;  %2171 = vmatpush3.bf16.msra.mxu0 %v2168_v19 }
  0xdd   : > { %v3024_v12 = vpop.permute.xlu1 %580  ;;  %2173 = vmatprep.subr.bf16.mxu0 %v2172_v17 }
  0xde   : > { %v3032_v3 = vpop.permute.xlu0 %578  ;;  %2205 = vmatpush3.bf16.msra.mxu1 %v2168_v19 }
  0xdf   : > { %790 = vrot.lane.b32.xlu1 %v2527_v50, %s2262_s24  ;;  %v4347_v50 = vld [vmem:[#allocation14_spill] sm:$0xff]  ;;  %2198 = vmatprep.subr.bf16.mxu1 %v2172_v17 }
  0xe0   : > { %766 = vrot.lane.b32.xlu0 %v4346_v9, %s2262_s24  ;;  %2175 = vmatpush3.bf16.msra.mxu0 %v2172_v17 }
  0xe1   : > { %v3038_v31 = vpop.permute.xlu1 %584  ;;  %2177 = vmatprep.subr.bf16.mxu0 %v2176_v60 }
  0xe2   : > { %v3046_v33 = vpop.permute.xlu0 %582  ;;  %2206 = vmatpush3.bf16.msra.mxu1 %v2172_v17 }
  0xe3   : > { %859 = vrot.lane.b32.xlu1 %v2670_v51, %s2263_s11  ;;  %2199 = vmatprep.subr.bf16.mxu1 %v2176_v60 }
  0xe4   : > { %792 = vrot.lane.b32.xlu0 %v4347_v50, %s2262_s24  ;;  %2179 = vmatpush3.bf16.msra.mxu0 %v2176_v60  ;;  %v1561_v50 = vld [vmem:[%s4160_s1 + $0x40] sm:$0xff] }
  0xe5   : > { %v3052_v45 = vpop.permute.xlu1 %588  ;;  %v2180_v26 = vpack.c.bf16 %v1562_v20, %v1561_v50  ;;  %v1564_v50 = vld [vmem:[%s4160_s1 + $0x58] sm:$0xff] }
  0xe6   : > { %v3060_v19 = vpop.permute.xlu0 %586  ;;  %2207 = vmatpush3.bf16.msra.mxu1 %v2176_v60 }
  0xe7   : > { %861 = vrot.lane.b32.xlu1 %v2665_v2, %s2263_s11  ;;  %2181 = vmatprep.subr.bf16.mxu0 %v2180_v26 }
  0xe8   : > { %891 = vrot.lane.b32.xlu0 %v2774_v18, %s2263_s11  ;;  %2183 = vmatpush3.bf16.msra.mxu0 %v2180_v26  ;;  %v1563_v18 = vld [vmem:[%s4160_s1 + $0x50] sm:$0xff] }
  0xe9   : > { %v3066_v51 = vpop.permute.xlu1 %592  ;;  %2200 = vmatprep.subr.bf16.mxu1 %v2180_v26  ;;  %v2184_v20 = vpack.c.bf16 %v1564_v50, %v1563_v18  ;;  %v1566_v18 = vld [vmem:[%s4160_s1 + $0x68] sm:$0xff] }
  0xea   : > { %4348 = vst [vmem:[#allocation3_spill] sm:$0xff] %v3066_v51  ;;  %v3074_v17 = vpop.permute.xlu0 %590  ;;  %2208 = vmatpush3.bf16.msra.mxu1 %v2180_v26  ;;  %v1567_v51 = vld [vmem:[%s4160_s1 + $0x70] sm:$0xff] }
  0xeb   : > { %4349 = vst [vmem:[#allocation79_spill] sm:$0xff] %v3074_v17  ;;  %957 = vrot.lane.b32.xlu1 %v2342_v15, %s2264_s23  ;;  %2185 = vmatprep.subr.bf16.mxu0 %v2184_v20 }
  0xec   : > { %893 = vrot.lane.b32.xlu0 %v2769_v7, %s2263_s11  ;;  %2187 = vmatpush3.bf16.msra.mxu0 %v2184_v20 }
  0xed   : > { %v3080_v2 = vpop.permute.xlu1 %596  ;;  %2201 = vmatprep.subr.bf16.mxu1 %v2184_v20 }
  0xee   : > { %4350 = vst [vmem:[#allocation80_spill] sm:$0xff] %v3080_v2  ;;  %v3088_v60 = vpop.permute.xlu0 %594  ;;  %v1565_v2 = vld [vmem:[%s4160_s1 + $0x60] sm:$0xff]  ;;  %2209 = vmatpush3.bf16.msra.mxu1 %v2184_v20 }
  0xef   : > { %4351 = vst [vmem:[#allocation81_spill] sm:$0xff] %v3088_v60  ;;  %959 = vrot.lane.b32.xlu1 %v2332_v11, %s2264_s23  ;;  %v2188_v50 = vpack.c.bf16 %v1566_v18, %v1565_v2  ;;  %v1568_v2 = vld [vmem:[%s4160_s1 + $0x78] sm:$0xff] }
  0xf0   : > { %989 = vrot.lane.b32.xlu0 %v2515_v37, %s2264_s23  ;;  %v2192_v18 = vpack.c.bf16 %v1568_v2, %v1567_v51 }
  0xf1   : > { %v3094_v7 = vpop.permute.xlu1 %600  ;;  %2189 = vmatprep.subr.bf16.mxu0 %v2188_v50  ;;  %2202 = vmatprep.subr.bf16.mxu1 %v2188_v50 }
  0xf2   : > { %v3102_v26 = vpop.permute.xlu0 %598  ;;  %2191 = vmatpush3.bf16.msra.mxu0 %v2188_v50  ;;  %2210 = vmatpush3.bf16.msra.mxu1 %v2188_v50 }
  0xf3   : > { %1059 = vrot.lane.b32.xlu1 %v2373_v28, %s2265_s7  ;;  %v4353_v28 = vld [vmem:[#allocation17_spill] sm:$0xff]  ;;  %2193 = vmatprep.subr.bf16.mxu0 %v2192_v18 }
  0xf4   : > { %991 = vrot.lane.b32.xlu0 %v2509_v34, %s2264_s23  ;;  %2203 = vmatprep.subr.bf16.mxu1 %v2192_v18 }
  0xf5   : > { %v3108_v60 = vpop.permute.xlu1 %604 }
  0xf6   : > { %4352 = vst [vmem:[#allocation82_spill] sm:$0xff] %v3108_v60  ;;  %v3116_v20 = vpop.permute.xlu0 %602  ;;  %2195 = vmatpush3.bf16.msra.mxu0 %v2192_v18  ;;  %2211 = vmatpush3.bf16.msra.mxu1 %v2192_v18 }
  0xf7   : > { %794 = vrot.lane.b32.xlu1 %v4353_v28, %s2262_s24 }
  0xf8   : > { %1091 = vrot.lane.b32.xlu0 %v4353_v28, %s2265_s7 }
  0xf9   : > { %v3122_v17 = vpop.permute.xlu1 %608 }
  0xfa   : > { %v3124_v60 = vpop.permute.xlu0 %606 }
  0xfb   : > { %1093 = vrot.lane.b32.xlu1 %v4354_v49, %s2265_s7 }
  0xfc   : > { %1061 = vrot.lane.b32.xlu0 %v2368_v25, %s2265_s7 }
  0xfd   : > { %v3130_v51 = vpop.permute.xlu1 %612 }
  0xfe   : > { %v3132_v50 = vpop.permute.xlu0 %610 }
  0xff   : > { %4355 = vst [vmem:[#allocation17_spill] sm:$0xff] %v3132_v50  ;;  %1192 = vrot.lane.b32.xlu1 %v2787_v35, %s2266_s13 }
 0x100   : > { %1160 = vrot.lane.b32.xlu0 %v2683_v14, %s2266_s13 }
 0x101   : > { %v3138_v2 = vpop.permute.xlu1 %616 }
 0x102   : > { %4356 = vst [vmem:[#allocation16_spill] sm:$0xff] %v3138_v2  ;;  %v3140_v18 = vpop.permute.xlu0 %614 }
 0x103   : > { %863 = vrot.lane.b32.xlu1 %v2683_v14, %s2263_s11 }
 0x104   : > { %796 = vrot.lane.b32.xlu0 %v4354_v49, %s2262_s24 }
 0x105   : > { %v3146_v25 = vpop.permute.xlu1 %620 }
 0x106   : > { %v3148_v28 = vpop.permute.xlu0 %618 }
 0x107   : > { %1162 = vrot.lane.b32.xlu1 %v2678_v43, %s2266_s13 }
 0x108   : > { %895 = vrot.lane.b32.xlu0 %v2787_v35, %s2263_s11  ;;  %v1262_v35 = vsel %vm1256_vm2, %v2332_v11, %v2857_v21 }
 0x109   : > { %v3154_v50 = vpop.permute.xlu1 %658 }
 0x10a   : > { %4357 = vst [vmem:[#allocation83_spill] sm:$0xff] %v3154_v50  ;;  %v3156_v2 = vpop.permute.xlu0 %656 }
 0x10b   : > { %4358 = vst [vmem:[#allocation84_spill] sm:$0xff] %v3156_v2  ;;  %865 = vrot.lane.b32.xlu1 %v2678_v43, %s2263_s11  ;;  %v1261_v43 = vsel %vm1256_vm2, %v2342_v15, %v2862_v63  ;;  %v1264_v15 = vsel %vm1256_vm2, %v2356_v22, %v2868_v27 }
 0x10c   : > { %1194 = vrot.lane.b32.xlu0 %v2782_v42, %s2266_s13  ;;  %v1294_v50 = vsel %vm1289_vm3, %v1261_v43, %v2996_v41  ;;  %v1263_v41 = vsel %vm1256_vm2, %v2362_v24, %v2870_v55 }
 0x10d   : > { %v3162_v14 = vpop.permute.xlu1 %662 }
 0x10e   : > { %4359 = vst [vmem:[#allocation85_spill] sm:$0xff] %v3162_v14  ;;  %v3164_v49 = vpop.permute.xlu0 %660  ;;  %v1295_v14 = vsel %vm1289_vm3, %v1262_v35, %v2991_v16  ;;  %v1296_v16 = vsel %vm1289_vm3, %v1263_v41, %v3004_v29  ;;  %v1265_v29 = vsel %vm1256_vm2, %v2383_v32, %v2878_v44  ;;  %v1268_v32 = vsel %vm1256_vm2, %v2399_v38, %v2884_v52  ;;  %v4362_v52 = vld [vmem:[#allocation20_spill] sm:$0xff] }
 0x10f   : > { %4360 = vst [vmem:[#allocation86_spill] sm:$0xff] %v3164_v49  ;;  %961 = vrot.lane.b32.xlu1 %v2362_v24, %s2264_s23  ;;  %v1266_v24 = vsel %vm1256_vm2, %v2377_v30, %v2876_v6  ;;  %v4361_v6 = vld [vmem:[#allocation21_spill] sm:$0xff] }
 0x110   : > { %897 = vrot.lane.b32.xlu0 %v2782_v42, %s2263_s11  ;;  %v1297_v42 = vsel %vm1289_vm3, %v1264_v15, %v3002_v62  ;;  %v1299_v55 = vsel %vm1289_vm3, %v1266_v24, %v3010_v8  ;;  %v1298_v62 = vsel %vm1289_vm3, %v1265_v29, %v3018_v61  ;;  %v1267_v61 = vsel %vm1256_vm2, %v2405_v40, %v2886_v47  ;;  %v4363_v47 = vld [vmem:[#allocation2_spill] sm:$0xff] }
 0x111   : > { %v667_v49 = vpop.permute.xlu1 %666  ;;  %v1301_v8 = vsel %vm1289_vm3, %v1268_v32, %v3024_v12  ;;  %v1300_v35 = vsel %vm1289_vm3, %v1267_v61, %v3032_v3  ;;  %v1270_v40 = vsel %vm1256_vm2, %v2421_v46, %v2892_v0  ;;  %v1269_v12 = vsel %vm1256_vm2, %v2427_v48, %v2894_v1  ;;  %v2229_v61 = vld [vmem:[%s2306_s20 + $0x60] sm:$0xff] }
 0x112   : > { %v3181_v2 = vsel %vm1322_vm4, %v1295_v14, %v667_v49  ;;  %v665_v11 = vpop.permute.xlu0 %664  ;;  %v1303_v3 = vsel %vm1289_vm3, %v1270_v40, %v3038_v31  ;;  %v1302_v41 = vsel %vm1289_vm3, %v1269_v12, %v3046_v33  ;;  %v1272_v48 = vsel %vm1256_vm2, %v2443_v54, %v2900_v13  ;;  %v4370_v12 = vld [vmem:[#allocation67_spill] sm:$0xff] }
 0x113   : > { %v3184_v21 = vsel %vm1322_vm4, %v1294_v50, %v665_v11  ;;  %963 = vrot.lane.b32.xlu1 %v2356_v22, %s2264_s23  ;;  %v1271_v31 = vsel %vm1256_vm2, %v2449_v56, %v2902_v39  ;;  %v1305_v0 = vsel %vm1289_vm3, %v1272_v48, %v3052_v45 }
 0x114   : > { %993 = vrot.lane.b32.xlu0 %v2537_v59, %s2264_s23  ;;  %v1304_v33 = vsel %vm1289_vm3, %v1271_v31, %v3060_v19  ;;  %v1278_v19 = vsel %vm1256_vm2, %v2509_v34, %v2924_v36 }
 0x115   : > { %v671_v63 = vpop.permute.xlu1 %670 }
 0x116   : > { %v3201_v50 = vsel %vm1322_vm4, %v1297_v42, %v671_v63  ;;  %v669_v14 = vpop.permute.xlu0 %668 }
 0x117   : > { %v3204_v22 = vsel %vm1322_vm4, %v1296_v16, %v669_v14  ;;  %1063 = vrot.lane.b32.xlu1 %v4346_v9, %s2265_s7 }
 0x118   : > { %995 = vrot.lane.b32.xlu0 %v2531_v53, %s2264_s23 }
 0x119   : > { %v675_v27 = vpop.permute.xlu1 %674 }
 0x11a   : > { %v3221_v9 = vsel %vm1322_vm4, %v1299_v55, %v675_v27  ;;  %v673_v49 = vpop.permute.xlu0 %672 }
 0x11b   : > { %v3224_v30 = vsel %vm1322_vm4, %v1298_v62, %v673_v49  ;;  %798 = vrot.lane.b32.xlu1 %v4361_v6, %s2262_s24 }
 0x11c   : > { %1095 = vrot.lane.b32.xlu0 %v4361_v6, %s2265_s7 }
 0x11d   : > { %v679_v44 = vpop.permute.xlu1 %678 }
 0x11e   : > { %v3241_v43 = vsel %vm1322_vm4, %v1301_v8, %v679_v44  ;;  %v677_v11 = vpop.permute.xlu0 %676  ;;  %v4369_v8 = vld [vmem:[#allocation66_spill] sm:$0xff] }
 0x11f   : > { %v3244_v38 = vsel %vm1322_vm4, %v1300_v35, %v677_v11  ;;  %1097 = vrot.lane.b32.xlu1 %v4362_v52, %s2265_s7 }
 0x120   : > { %1065 = vrot.lane.b32.xlu0 %v4363_v47, %s2265_s7 }
 0x121   : > { %v683_v15 = vpop.permute.xlu1 %682 }
 0x122   : > { %v3261_v42 = vsel %vm1322_vm4, %v1303_v3, %v683_v15  ;;  %v681_v63 = vpop.permute.xlu0 %680  ;;  %v4371_v3 = vld [vmem:[#allocation22_spill] sm:$0xff] }
 0x123   : > { %v3264_v46 = vsel %vm1322_vm4, %v1302_v41, %v681_v63  ;;  %1196 = vrot.lane.b32.xlu1 %v2800_v58, %s2266_s13  ;;  %v1284_v15 = vsel %vm1256_vm2, %v4371_v3, %v4370_v12  ;;  %v2230_v41 = vld [vmem:[%s2306_s20 + $0x68] sm:$0xff] }
 0x124   : > { %1164 = vrot.lane.b32.xlu0 %v2696_v23, %s2266_s13  ;;  %v4373_v63 = vld [vmem:[#allocation23_spill] sm:$0xff]  ;;  %v1317_v48 = vsel %vm1289_vm3, %v1284_v15, %v3130_v51  ;;  %v4378_v51 = vld [vmem:[#allocation5_spill] sm:$0xff]  ;;  %v4386_v15 = vld [vmem:[#allocation24_spill] sm:$0xff] }
 0x125   : > { %v687_v1 = vpop.permute.xlu1 %686 }
 0x126   : > { %v3281_v16 = vsel %vm1322_vm4, %v1305_v0, %v687_v1  ;;  %v685_v14 = vpop.permute.xlu0 %684  ;;  %v4374_v0 = vld [vmem:[#allocation17_spill] sm:$0xff] }
 0x127   : > { %v3284_v54 = vsel %vm1322_vm4, %v1304_v33, %v685_v14  ;;  %800 = vrot.lane.b32.xlu1 %v4362_v52, %s2262_s24 }
 0x128   : > { %768 = vrot.lane.b32.xlu0 %v4363_v47, %s2262_s24 }
 0x129   : > { %v3290_v56 = vpop.permute.xlu1 %690 }
 0x12a   : > { %v3292_v45 = vpop.permute.xlu0 %688 }
 0x12b   : > { %899 = vrot.lane.b32.xlu1 %v2800_v58, %s2263_s11  ;;  %v1277_v58 = vsel %vm1256_vm2, %v2515_v37, %v2926_v10  ;;  %v1280_v37 = vsel %vm1256_vm2, %v2531_v53, %v2932_v57  ;;  %v4365_v10 = vld [vmem:[#allocation82_spill] sm:$0xff]  ;;  %v4367_v57 = vld [vmem:[#allocation65_spill] sm:$0xff] }
 0x12c   : > { %867 = vrot.lane.b32.xlu0 %v2696_v23, %s2263_s11  ;;  %v1311_v23 = vsel %vm1289_vm3, %v1278_v19, %v3094_v7  ;;  %v1310_v29 = vsel %vm1289_vm3, %v1277_v58, %v3102_v26  ;;  %v4364_v7 = vld [vmem:[#allocation64_spill] sm:$0xff]  ;;  %v1313_v26 = vsel %vm1289_vm3, %v1280_v37, %v4365_v10  ;;  %v4375_v58 = vld [vmem:[#allocation25_spill] sm:$0xff]  ;;  %v4380_v37 = vld [vmem:[#allocation27_spill] sm:$0xff] }
 0x12d   : > { %v3298_v39 = vpop.permute.xlu1 %694  ;;  %v1279_v36 = vsel %vm1256_vm2, %v2537_v59, %v4364_v7  ;;  %v4368_v59 = vld [vmem:[#allocation18_spill] sm:$0xff] }
 0x12e   : > { %v3300_v13 = vpop.permute.xlu0 %692  ;;  %v1312_v49 = vsel %vm1289_vm3, %v1279_v36, %v3116_v20  ;;  %v1282_v32 = vsel %vm1256_vm2, %v4368_v59, %v4367_v57  ;;  %v4381_v36 = vld [vmem:[#allocation16_spill] sm:$0xff]  ;;  %v4382_v57 = vld [vmem:[#allocation71_spill] sm:$0xff] }
 0x12f   : > { %1198 = vrot.lane.b32.xlu1 %v2795_v4, %s2266_s13  ;;  %v1315_v44 = vsel %vm1289_vm3, %v1282_v32, %v3122_v17  ;;  %v4372_v17 = vld [vmem:[#allocation68_spill] sm:$0xff] }
 0x130   : > { %1166 = vrot.lane.b32.xlu0 %v2691_v5, %s2266_s13 }
 0x131   : > { %v699_v24 = vpop.permute.xlu1 %698 }
 0x132   : > { %v3317_v55 = vsel %vm1322_vm4, %v1311_v23, %v699_v24  ;;  %v697_v27 = vpop.permute.xlu0 %696  ;;  %v4376_v23 = vld [vmem:[#allocation69_spill] sm:$0xff]  ;;  %v4377_v24 = vld [vmem:[#allocation26_spill] sm:$0xff] }
 0x133   : > { %v3320_v34 = vsel %vm1322_vm4, %v1310_v29, %v697_v27  ;;  %901 = vrot.lane.b32.xlu1 %v2795_v4, %s2263_s11  ;;  %v1286_v29 = vsel %vm1256_vm2, %v4377_v24, %v4376_v23  ;;  %v4379_v27 = vld [vmem:[#allocation70_spill] sm:$0xff]  ;;  %v4390_v23 = vld [vmem:[#allocation48_spill] sm:$0xff] }
 0x134   : > { %869 = vrot.lane.b32.xlu0 %v2691_v5, %s2263_s11  ;;  %v4366_v5 = vld [vmem:[#allocation19_spill] sm:$0xff]  ;;  %v1285_v7 = vsel %vm1256_vm2, %v4380_v37, %v4379_v27  ;;  %v1319_v10 = vsel %vm1289_vm3, %v1286_v29, %v4381_v36  ;;  %v4391_v24 = vld [vmem:[#allocation36_spill] sm:$0xff] }
 0x135   : > { %v703_v62 = vpop.permute.xlu1 %702  ;;  %v1281_v20 = vsel %vm1256_vm2, %v4366_v5, %v4369_v8  ;;  %v4385_v8 = vld [vmem:[#allocation31_spill] sm:$0xff] }
 0x136   : > { %v3337_v4 = vsel %vm1322_vm4, %v1313_v26, %v703_v62  ;;  %v701_v6 = vpop.permute.xlu0 %700  ;;  %v1314_v11 = vsel %vm1289_vm3, %v1281_v20, %v3124_v60  ;;  %v1283_v60 = vsel %vm1256_vm2, %v4373_v63, %v4372_v17  ;;  %v1318_v62 = vsel %vm1289_vm3, %v1285_v7, %v3140_v18  ;;  %v2231_v7 = vld [vmem:[%s2306_s20 + $0x78] sm:$0xff] }
 0x137   : > { %v3340_v53 = vsel %vm1322_vm4, %v1312_v49, %v701_v6  ;;  %997 = vrot.lane.b32.xlu1 %v4366_v5, %s2264_s23  ;;  %v1316_v1 = vsel %vm1289_vm3, %v1283_v60, %v4374_v0  ;;  %v4388_v60 = vld [vmem:[#allocation49_spill] sm:$0xff] }
 0x138   : > { %965 = vrot.lane.b32.xlu0 %v2229_v61, %s2264_s23  ;;  %v4384_v61 = vld [vmem:[#allocation72_spill] sm:$0xff] }
 0x139   : > { %v707_v35 = vpop.permute.xlu1 %706  ;;  %v1287_v18 = vsel %vm1256_vm2, %v4385_v8, %v4384_v61  ;;  %v3477_v61 = vld [vmem:[%s2306_s20 + $0xc0] sm:$0xff]  ;;  %v4394_v8 = vld [vmem:[#allocation61_spill] sm:$0xff] }
 0x13a   : > { %v3357_v52 = vsel %vm1322_vm4, %v1315_v44, %v707_v35  ;;  %v705_v40 = vpop.permute.xlu0 %704  ;;  %v1320_v35 = vsel %vm1289_vm3, %v1287_v18, %v3148_v28  ;;  %v4389_v28 = vld [vmem:[#allocation37_spill] sm:$0xff]  ;;  %v2234_v18 = vld [vmem:[%s2306_s20] sm:$0xff] }
 0x13b   : > { %v3360_v47 = vsel %vm1322_vm4, %v1314_v11, %v705_v40  ;;  %999 = vrot.lane.b32.xlu1 %v4368_v59, %s2264_s23  ;;  %v4383_v59 = vld [vmem:[#allocation30_spill] sm:$0xff] }
 0x13c   : > { %967 = vrot.lane.b32.xlu0 %v2230_v41, %s2264_s23  ;;  %v1288_v32 = vsel %vm1256_vm2, %v4383_v59, %v4382_v57  ;;  %v4387_v41 = vld [vmem:[#allocation4_spill] sm:$0xff]  ;;  %v4392_v57 = vld [vmem:[#allocation29_spill] sm:$0xff] }
 0x13d   : > { %v711_v31 = vpop.permute.xlu1 %710  ;;  %v1321_v20 = vsel %vm1289_vm3, %v1288_v32, %v3146_v25 }
 0x13e   : > { %v3377_v33 = vsel %vm1322_vm4, %v1317_v48, %v711_v31  ;;  %v709_v14 = vpop.permute.xlu0 %708 }
 0x13f   : > { %v3380_v19 = vsel %vm1322_vm4, %v1316_v1, %v709_v14  ;;  %1099 = vrot.lane.b32.xlu1 %v4375_v58, %s2265_s7 }
 0x140   : > { %1067 = vrot.lane.b32.xlu0 %v4378_v51, %s2265_s7 }
 0x141   : > { %v715_v26 = vpop.permute.xlu1 %714 }
 0x142   : > { %v3397_v49 = vsel %vm1322_vm4, %v1319_v10, %v715_v26  ;;  %v713_v6 = vpop.permute.xlu0 %712  ;;  %v2232_v26 = vld [vmem:[%s2306_s20 + $0x80] sm:$0xff] }
 0x143   : > { %v3400_v5 = vsel %vm1322_vm4, %v1318_v62, %v713_v6  ;;  %802 = vrot.lane.b32.xlu1 %v4375_v58, %s2262_s24 }
 0x144   : > { %770 = vrot.lane.b32.xlu0 %v4378_v51, %s2262_s24 }
 0x145   : > { %v719_v44 = vpop.permute.xlu1 %718 }
 0x146   : > { %v3417_v11 = vsel %vm1322_vm4, %v1321_v20, %v719_v44  ;;  %v717_v40 = vpop.permute.xlu0 %716  ;;  %v4395_v20 = vld [vmem:[#allocation53_spill] sm:$0xff] }
 0x147   : > { %v3420_v12 = vsel %vm1322_vm4, %v1320_v35, %v717_v40  ;;  %1101 = vrot.lane.b32.xlu1 %v4386_v15, %s2265_s7  ;;  %v1257_v44 = vsel %vm1256_vm2, %v2234_v18, %v4395_v20  ;;  %v4396_v35 = vld [vmem:[#allocation79_spill] sm:$0xff]  ;;  %v4400_v18 = vld [vmem:[#allocation6_spill] sm:$0xff] }
 0x148   : > { %1069 = vrot.lane.b32.xlu0 %v4387_v41, %s2265_s7 }
 0x149   : > { %v3426_v17 = vpop.permute.xlu1 %760 }
 0x14a   : > { %v759_v25 = vpop.permute.xlu0 %758 }
 0x14b   : > { %1200 = vrot.lane.b32.xlu1 %v4388_v60, %s2266_s13 }
 0x14c   : > { %1168 = vrot.lane.b32.xlu0 %v4389_v28, %s2266_s13 }
 0x14d   : > { %v3432_v48 = vpop.permute.xlu1 %764 }
 0x14e   : > { %v3434_v31 = vpop.permute.xlu0 %762 }
 0x14f   : > { %804 = vrot.lane.b32.xlu1 %v4386_v15, %s2262_s24  ;;  %v4397_v15 = vld [vmem:[#allocation74_spill] sm:$0xff] }
 0x150   : > { %772 = vrot.lane.b32.xlu0 %v4387_v41, %s2262_s24  ;;  %v1290_v41 = vsel %vm1289_vm3, %v1257_v44, %v4397_v15  ;;  %v4401_v15 = vld [vmem:[#allocation57_spill] sm:$0xff] }
 0x151   : > { %v791_v0 = vpop.permute.xlu1 %790 }
 0x152   : > { %v3440_v1 = vpop.permute.xlu0 %766 }
 0x153   : > { %903 = vrot.lane.b32.xlu1 %v4388_v60, %s2263_s11 }
 0x154   : > { %871 = vrot.lane.b32.xlu0 %v4389_v28, %s2263_s11 }
 0x155   : > { %v860_v14 = vpop.permute.xlu1 %859 }
 0x156   : > { %v3446_v58 = vpop.permute.xlu0 %792 }
 0x157   : > { %1202 = vrot.lane.b32.xlu1 %v4390_v23, %s2266_s13 }
 0x158   : > { %1170 = vrot.lane.b32.xlu0 %v4391_v24, %s2266_s13 }
 0x159   : > { %v3452_v29 = vpop.permute.xlu1 %861 }
 0x15a   : > { %v892_v51 = vpop.permute.xlu0 %891 }
 0x15b   : > { %905 = vrot.lane.b32.xlu1 %v4390_v23, %s2263_s11  ;;  %v4398_v23 = vld [vmem:[#allocation84_spill] sm:$0xff] }
 0x15c   : > { %873 = vrot.lane.b32.xlu0 %v4391_v24, %s2263_s11  ;;  %v1323_v24 = vsel %vm1322_vm4, %v1290_v41, %v4398_v23 }
 0x15d   : > { %v958_v27 = vpop.permute.xlu1 %957 }
 0x15e   : > { %v3458_v37 = vpop.permute.xlu0 %893 }
 0x15f   : > { %1001 = vrot.lane.b32.xlu1 %v4373_v63, %s2264_s23  ;;  %v4393_v63 = vld [vmem:[#allocation7_spill] sm:$0xff] }
 0x160   : > { %969 = vrot.lane.b32.xlu0 %v2231_v7, %s2264_s23 }
 0x161   : > { %v960_v36 = vpop.permute.xlu1 %959 }
 0x162   : > { %v990_v10 = vpop.permute.xlu0 %989 }
 0x163   : > { %1003 = vrot.lane.b32.xlu1 %v4371_v3, %s2264_s23  ;;  %v1273_v3 = vsel %vm1256_vm2, %v3477_v61, %v4394_v8  ;;  %v4399_v8 = vld [vmem:[#allocation28_spill] sm:$0xff] }
 0x164   : > { %971 = vrot.lane.b32.xlu0 %v2232_v26, %s2264_s23  ;;  %v1306_v40 = vsel %vm1289_vm3, %v1273_v3, %v4396_v35 }
 0x165   : > { %v1060_v62 = vpop.permute.xlu1 %1059  ;;  %v1339_v60 = vsel %vm1322_vm4, %v1306_v40, %v3292_v45  ;;  %v2235_v40 = vld [vmem:[%s2306_s20 + $0x8] sm:$0xff] }
 0x166   : > { %v3468_v6 = vpop.permute.xlu0 %991  ;;  %v1372_v7 = vsel %vm1355_vm5, %v1339_v60, %v791_v0  ;;  %v4405_v60 = vld [vmem:[#allocation83_spill] sm:$0xff] }
 0x167   : > { %1103 = vrot.lane.b32.xlu1 %v4392_v57, %s2265_s7 }
 0x168   : > { %1071 = vrot.lane.b32.xlu0 %v4393_v63, %s2265_s7 }
 0x169   : > { %v3474_v59 = vpop.permute.xlu1 %794 }
 0x16a   : > { %v1092_v32 = vpop.permute.xlu0 %1091 }
 0x16b   : > { %806 = vrot.lane.b32.xlu1 %v4392_v57, %s2262_s24  ;;  %v1356_v57 = vsel %vm1355_vm5, %v1323_v24, %v759_v25 }
 0x16c   : > { %774 = vrot.lane.b32.xlu0 %v4393_v63, %s2262_s24  ;;  %v1405_v63 = vsel %vm1388_vm6, %v1372_v7, %v892_v51  ;;  %v1389_v45 = vsel %vm1388_vm6, %v1356_v57, %v860_v14  ;;  %v1258_v14 = vsel %vm1256_vm2, %v2235_v40, %v4401_v15 }
 0x16d   : > { %v1094_v28 = vpop.permute.xlu1 %1093  ;;  %v1438_v3 = vsel %vm1421_vm7, %v1405_v63, %v990_v10  ;;  %v1422_v0 = vsel %vm1421_vm7, %v1389_v45, %v958_v27  ;;  %v4402_v10 = vld [vmem:[#allocation52_spill] sm:$0xff]  ;;  %v4403_v27 = vld [vmem:[#allocation73_spill] sm:$0xff]  ;;  %v3535_v45 = vld [vmem:[%s2306_s20 + $0xc8] sm:$0xff] }
 0x16e   : > { %v1062_v26 = vpop.permute.xlu0 %1061  ;;  %v1471_v20 = vsel %vm1454_vm8, %v1438_v3, %v1092_v32  ;;  %v1455_v51 = vsel %vm1454_vm8, %v1422_v0, %v1060_v62  ;;  %v1291_v32 = vsel %vm1289_vm3, %v1258_v14, %v4403_v27  ;;  %v4404_v62 = vld [vmem:[#allocation39_spill] sm:$0xff]  ;;  %v4406_v3 = vld [vmem:[#allocation60_spill] sm:$0xff]  ;;  %v4408_v14 = vld [vmem:[#allocation50_spill] sm:$0xff] }
 0x16f   : > { %1105 = vrot.lane.b32.xlu1 %v4399_v8, %s2265_s7  ;;  %v1324_v23 = vsel %vm1322_vm4, %v1291_v32, %v4405_v60  ;;  %v1274_v0 = vsel %vm1256_vm2, %v3535_v45, %v4406_v3  ;;  %v2237_v27 = vld [vmem:[%s2306_s20 + $0x150] sm:$0xff] }
 0x170   : > { %1073 = vrot.lane.b32.xlu0 %v4400_v18, %s2265_s7  ;;  %v1357_v7 = vsel %vm1355_vm5, %v1324_v23, %v3426_v17  ;;  %v4407_v17 = vld [vmem:[#allocation3_spill] sm:$0xff]  ;;  %v2238_v32 = vld [vmem:[%s2306_s20 + $0x90] sm:$0xff]  ;;  %v2239_v23 = vld [vmem:[%s2306_s20 + $0x158] sm:$0xff] }
 0x171   : > { %v1193_v25 = vpop.permute.xlu1 %1192  ;;  %v1390_v63 = vsel %vm1388_vm6, %v1357_v7, %v3452_v29  ;;  %v2240_v7 = vld [vmem:[%s2306_s20 + $0x98] sm:$0xff] }
 0x172   : > { %v1161_v44 = vpop.permute.xlu0 %1160  ;;  %v1504_v35 = vsel %vm1487_vm9, %v1471_v20, %v1193_v25  ;;  %v1423_v20 = vsel %vm1421_vm7, %v1390_v63, %v960_v36  ;;  %v1307_v25 = vsel %vm1289_vm3, %v1274_v0, %v4407_v17  ;;  %v3588_v0 = vld [vmem:[%s2306_s20 + $0xd8] sm:$0xff] }
 0x173   : > { %1204 = vrot.lane.b32.xlu1 %v4402_v10, %s2266_s13  ;;  %v1488_v41 = vsel %vm1487_vm9, %v1455_v51, %v1161_v44  ;;  %2140 = vmatprep.mubr.msk.f32.mxu1 %vm1520_vm10, %v1504_v35  ;;  %v1456_v51 = vsel %vm1454_vm8, %v1423_v20, %v1062_v26  ;;  %v4410_v20 = vld [vmem:[#allocation63_spill] sm:$0xff] }
 0x174   : > { %1172 = vrot.lane.b32.xlu0 %v4404_v62, %s2266_s13  ;;  %2116 = vmatprep.mubr.msk.f32.mxu0 %vm1520_vm10, %v1488_v41  ;;  %v1275_v17 = vsel %vm1256_vm2, %v3588_v0, %v4410_v20 }
 0x175   : > { %v3524_v24 = vpop.permute.xlu1 %863 }
 0x176   : > { %v3528_v57 = vpop.permute.xlu0 %796 }
 0x177   : > { %808 = vrot.lane.b32.xlu1 %v4399_v8, %s2262_s24  ;;  %v1340_v8 = vsel %vm1322_vm4, %v1307_v25, %v3290_v56  ;;  %v4411_v25 = vld [vmem:[#allocation33_spill] sm:$0xff] }
 0x178   : > { %776 = vrot.lane.b32.xlu0 %v4400_v18, %s2262_s24  ;;  %v1373_v40 = vsel %vm1355_vm5, %v1340_v8, %v3446_v58 }
 0x179   : > { %v1163_v29 = vpop.permute.xlu1 %1162  ;;  %v1406_v36 = vsel %vm1388_vm6, %v1373_v40, %v3458_v37  ;;  %v4409_v37 = vld [vmem:[#allocation38_spill] sm:$0xff] }
 0x17a   : > { %v1489_v44 = vsel %vm1487_vm9, %v1456_v51, %v1163_v29  ;;  %v896_v35 = vpop.permute.xlu0 %895  ;;  %v1439_v56 = vsel %vm1421_vm7, %v1406_v36, %v3468_v6  ;;  %v2242_v51 = vld [vmem:[%s2306_s20 + $0x18] sm:$0xff]  ;;  %v4412_v29 = vld [vmem:[#allocation51_spill] sm:$0xff] }
 0x17b   : > { %907 = vrot.lane.b32.xlu1 %v4402_v10, %s2263_s11  ;;  %2117 = vmatmul.mubr.msk.f32.vlgmr.msra.gmra.mrb[0].mxu0 %vm1520_vm10, %v1489_v44  ;;  %v1472_v58 = vsel %vm1454_vm8, %v1439_v56, %v1094_v28  ;;  %v1259_v8 = vsel %vm1256_vm2, %v2242_v51, %v4412_v29  ;;  %v4413_v44 = vld [vmem:[#allocation81_spill] sm:$0xff]  ;;  %v4415_v56 = vld [vmem:[#allocation76_spill] sm:$0xff] }
 0x17c   : > { %875 = vrot.lane.b32.xlu0 %v4404_v62, %s2263_s11  ;;  %v1308_v40 = vsel %vm1289_vm3, %v1275_v17, %v4413_v44  ;;  %v4414_v36 = vld [vmem:[#allocation9_spill] sm:$0xff] }
 0x17d   : > { %v3560_v26 = vpop.permute.xlu1 %865 }
 0x17e   : > { %v1195_v18 = vpop.permute.xlu0 %1194 }
 0x17f   : > { %v1505_v15 = vsel %vm1487_vm9, %v1472_v58, %v1195_v18  ;;  %1206 = vrot.lane.b32.xlu1 %v4408_v14, %s2266_s13  ;;  %v1292_v58 = vsel %vm1289_vm3, %v1259_v8, %v4415_v56  ;;  %v1341_v18 = vsel %vm1322_vm4, %v1308_v40, %v3300_v13  ;;  %v4419_v8 = vld [vmem:[#allocation62_spill] sm:$0xff]  ;;  %v4420_v40 = vld [vmem:[#allocation56_spill] sm:$0xff]  ;;  %v4421_v56 = vld [vmem:[#allocation55_spill] sm:$0xff] }
 0x180   : > { %1174 = vrot.lane.b32.xlu0 %v4409_v37, %s2266_s13  ;;  %2141 = vmatmul.mubr.msk.f32.vlgmr.msra.gmra.mrb[0].mxu1 %vm1520_vm10, %v1505_v15 }
 0x181   : > { %v962_v10 = vpop.permute.xlu1 %961 }
 0x182   : > { %v3569_v6 = vpop.permute.xlu0 %897 }
 0x183   : > { %909 = vrot.lane.b32.xlu1 %v4408_v14, %s2263_s11  ;;  %v4416_v14 = vld [vmem:[#allocation86_spill] sm:$0xff] }
 0x184   : > { %877 = vrot.lane.b32.xlu0 %v4409_v37, %s2263_s11  ;;  %v1325_v37 = vsel %vm1322_vm4, %v1292_v58, %v4416_v14 }
 0x185   : > { %v3575_v28 = vpop.permute.xlu1 %963 }
 0x186   : > { %v994_v41 = vpop.permute.xlu0 %993 }
 0x187   : > { %1005 = vrot.lane.b32.xlu1 %v2237_v27, %s2264_s23  ;;  %v1374_v27 = vsel %vm1355_vm5, %v1341_v18, %v3474_v59  ;;  %v4422_v18 = vld [vmem:[#allocation80_spill] sm:$0xff] }
 0x188   : > { %973 = vrot.lane.b32.xlu0 %v2238_v32, %s2264_s23 }
 0x189   : > { %v1064_v62 = vpop.permute.xlu1 %1063 }
 0x18a   : > { %v996_v60 = vpop.permute.xlu0 %995 }
 0x18b   : > { %1007 = vrot.lane.b32.xlu1 %v2239_v23, %s2264_s23  ;;  %v1358_v23 = vsel %vm1355_vm5, %v1325_v37, %v3434_v31  ;;  %v4423_v37 = vld [vmem:[#allocation41_spill] sm:$0xff] }
 0x18c   : > { %975 = vrot.lane.b32.xlu0 %v2240_v7, %s2264_s23  ;;  %v1407_v7 = vsel %vm1388_vm6, %v1374_v27, %v896_v35  ;;  %v1391_v20 = vsel %vm1388_vm6, %v1358_v23, %v3524_v24  ;;  %v4417_v24 = vld [vmem:[#allocation32_spill] sm:$0xff]  ;;  %v4424_v27 = vld [vmem:[#allocation75_spill] sm:$0xff] }
 0x18d   : > { %v3585_v63 = vpop.permute.xlu1 %798  ;;  %v1440_v13 = vsel %vm1421_vm7, %v1407_v7, %v994_v41  ;;  %v1424_v59 = vsel %vm1421_vm7, %v1391_v20, %v962_v10  ;;  %v4418_v41 = vld [vmem:[#allocation8_spill] sm:$0xff] }
 0x18e   : > { %v1096_v3 = vpop.permute.xlu0 %1095  ;;  %v1457_v35 = vsel %vm1454_vm8, %v1424_v59, %v1064_v62  ;;  %v3636_v62 = vld [vmem:[%s2306_s20 + $0xe0] sm:$0xff] }
 0x18f   : > { %1107 = vrot.lane.b32.xlu1 %v4411_v25, %s2265_s7  ;;  %v1473_v17 = vsel %vm1454_vm8, %v1440_v13, %v1096_v3  ;;  %v1276_v44 = vsel %vm1256_vm2, %v3636_v62, %v4419_v8  ;;  %v4425_v13 = vld [vmem:[#allocation85_spill] sm:$0xff] }
 0x190   : > { %1075 = vrot.lane.b32.xlu0 %v4414_v36, %s2265_s7  ;;  %v1309_v14 = vsel %vm1289_vm3, %v1276_v44, %v4422_v18 }
 0x191   : > { %v1098_v15 = vpop.permute.xlu1 %1097  ;;  %v1342_v7 = vsel %vm1322_vm4, %v1309_v14, %v3298_v39 }
 0x192   : > { %v1066_v32 = vpop.permute.xlu0 %1065 }
 0x193   : > { %810 = vrot.lane.b32.xlu1 %v4411_v25, %s2262_s24 }
 0x194   : > { %778 = vrot.lane.b32.xlu0 %v4414_v36, %s2262_s24  ;;  %v2244_v36 = vld [vmem:[%s2306_s20 + $0x20] sm:$0xff] }
 0x195   : > { %v1197_v31 = vpop.permute.xlu1 %1196  ;;  %v1260_v58 = vsel %vm1256_vm2, %v2244_v36, %v4421_v56  ;;  %v2245_v56 = vld [vmem:[%s2306_s20 + $0x168] sm:$0xff] }
 0x196   : > { %v1506_v51 = vsel %vm1487_vm9, %v1473_v17, %v1197_v31  ;;  %v1165_v25 = vpop.permute.xlu0 %1164  ;;  %v1293_v23 = vsel %vm1289_vm3, %v1260_v58, %v4424_v27  ;;  %v1375_v17 = vsel %vm1355_vm5, %v1342_v7, %v3528_v57  ;;  %v2246_v58 = vld [vmem:[%s2306_s20 + $0xa8] sm:$0xff]  ;;  %v2248_v27 = vld [vmem:[%s2306_s20 + $0xb0] sm:$0xff] }
 0x197   : > { %v1490_v29 = vsel %vm1487_vm9, %v1457_v35, %v1165_v25  ;;  %1109 = vrot.lane.b32.xlu1 %v4417_v24, %s2265_s7  ;;  %2143 = vmatprep.mubr.msk.f32.mxu1 %vm1520_vm10, %v1506_v51  ;;  %v1326_v59 = vsel %vm1322_vm4, %v1293_v23, %v4425_v13  ;;  %v1408_v51 = vsel %vm1388_vm6, %v1375_v17, %v3569_v6  ;;  %v4428_v13 = vld [vmem:[#allocation35_spill] sm:$0xff] }
 0x198   : > { %1077 = vrot.lane.b32.xlu0 %v4418_v41, %s2265_s7  ;;  %2119 = vmatprep.mubr.msk.f32.mxu0 %vm1520_vm10, %v1490_v29  ;;  %v1359_v35 = vsel %vm1355_vm5, %v1326_v59, %v3432_v48  ;;  %v1441_v25 = vsel %vm1421_vm7, %v1408_v51, %v996_v60  ;;  %v4426_v60 = vld [vmem:[#allocation54_spill] sm:$0xff]  ;;  %v4429_v59 = vld [vmem:[#allocation11_spill] sm:$0xff] }
 0x199   : > { %v3631_v10 = vpop.permute.xlu1 %800  ;;  %v1392_v39 = vsel %vm1388_vm6, %v1359_v35, %v3560_v26  ;;  %v1474_v29 = vsel %vm1454_vm8, %v1441_v25, %v1098_v15  ;;  %v4427_v15 = vld [vmem:[#allocation40_spill] sm:$0xff]  ;;  %v1376_v35 = vsel %vm1355_vm5, %v3320_v34, %v3585_v63 }
 0x19a   : > { %v3633_v3 = vpop.permute.xlu0 %768  ;;  %v1425_v57 = vsel %vm1421_vm7, %v1392_v39, %v3575_v28  ;;  %v1360_v39 = vsel %vm1355_vm5, %v3184_v21, %v3440_v1 }
 0x19b   : > { %1208 = vrot.lane.b32.xlu1 %v4420_v40, %s2266_s13  ;;  %v1458_v8 = vsel %vm1454_vm8, %v1425_v57, %v1066_v32 }
 0x19c   : > { %1176 = vrot.lane.b32.xlu0 %v4423_v37, %s2266_s13 }
 0x19d   : > { %v900_v20 = vpop.permute.xlu1 %899 }
 0x19e   : > { %v868_v31 = vpop.permute.xlu0 %867  ;;  %v1409_v25 = vsel %vm1388_vm6, %v1376_v35, %v900_v20 }
 0x19f   : > { %812 = vrot.lane.b32.xlu1 %v4417_v24, %s2262_s24  ;;  %v1393_v57 = vsel %vm1388_vm6, %v1360_v39, %v868_v31  ;;  %v4431_v31 = vld [vmem:[#allocation10_spill] sm:$0xff] }
 0x1a0   : > { %780 = vrot.lane.b32.xlu0 %v4418_v41, %s2262_s24 }
 0x1a1   : > { %v1199_v48 = vpop.permute.xlu1 %1198 }
 0x1a2   : > { %v1507_v6 = vsel %vm1487_vm9, %v1474_v29, %v1199_v48  ;;  %v1167_v44 = vpop.permute.xlu0 %1166 }
 0x1a3   : > { %v1491_v24 = vsel %vm1487_vm9, %v1458_v8, %v1167_v44  ;;  %911 = vrot.lane.b32.xlu1 %v4420_v40, %s2263_s11  ;;  %2144 = vmatmul.mubr.msk.f32.gmra.mrb[2].mxu1 %vm1520_vm10, %v1507_v6  ;;  %v4430_v6 = vld [vmem:[#allocation34_spill] sm:$0xff] }
 0x1a4   : > { %879 = vrot.lane.b32.xlu0 %v4423_v37, %s2263_s11  ;;  %2120 = vmatmul.mubr.msk.f32.gmra.mrb[2].mxu0 %vm1520_vm10, %v1491_v24  ;;  %v2247_v37 = vld [vmem:[%s2306_s20 + $0x170] sm:$0xff] }
 0x1a5   : > { %v902_v26 = vpop.permute.xlu1 %901 }
 0x1a6   : > { %v870_v28 = vpop.permute.xlu0 %869 }
 0x1a7   : > { %1210 = vrot.lane.b32.xlu1 %v4426_v60, %s2266_s13 }
 0x1a8   : > { %1178 = vrot.lane.b32.xlu0 %v4427_v15, %s2266_s13 }
 0x1a9   : > { %v998_v32 = vpop.permute.xlu1 %997 }
 0x1aa   : > { %v966_v41 = vpop.permute.xlu0 %965  ;;  %v1442_v29 = vsel %vm1421_vm7, %v1409_v25, %v998_v32  ;;  %v4436_v25 = vld [vmem:[#allocation78_spill] sm:$0xff] }
 0x1ab   : > { %913 = vrot.lane.b32.xlu1 %v4426_v60, %s2263_s11  ;;  %v1426_v48 = vsel %vm1421_vm7, %v1393_v57, %v966_v41  ;;  %v4432_v60 = vld [vmem:[#allocation59_spill] sm:$0xff]  ;;  %v1377_v41 = vsel %vm1355_vm5, %v3317_v55, %v3631_v10  ;;  %v4437_v57 = vld [vmem:[#allocation77_spill] sm:$0xff] }
 0x1ac   : > { %881 = vrot.lane.b32.xlu0 %v4427_v15, %s2263_s11  ;;  %v4433_v15 = vld [vmem:[#allocation43_spill] sm:$0xff] }
 0x1ad   : > { %v1000_v40 = vpop.permute.xlu1 %999 }
 0x1ae   : > { %v968_v36 = vpop.permute.xlu0 %967 }
 0x1af   : > { %1009 = vrot.lane.b32.xlu1 %v2245_v56, %s2264_s23 }
 0x1b0   : > { %977 = vrot.lane.b32.xlu0 %v2246_v58, %s2264_s23  ;;  %v1361_v58 = vsel %vm1355_vm5, %v3181_v2, %v3633_v3 }
 0x1b1   : > { %v1100_v18 = vpop.permute.xlu1 %1099 }
 0x1b2   : > { %v1068_v14 = vpop.permute.xlu0 %1067  ;;  %v1475_v34 = vsel %vm1454_vm8, %v1442_v29, %v1100_v18  ;;  %v1410_v18 = vsel %vm1388_vm6, %v1377_v41, %v902_v26  ;;  %v754_v29 = vrot.slane %v4437_v57, 1 }
 0x1b3   : > { %1011 = vrot.lane.b32.xlu1 %v2247_v37, %s2264_s23  ;;  %v1459_v8 = vsel %vm1454_vm8, %v1426_v48, %v1068_v14  ;;  %v1394_v14 = vsel %vm1388_vm6, %v1361_v58, %v870_v28  ;;  %v1443_v37 = vsel %vm1421_vm7, %v1410_v18, %v1000_v40  ;;  %v753_v48 = vrot.slane %v4436_v25, 1 }
 0x1b4   : > { %979 = vrot.lane.b32.xlu0 %v2248_v27, %s2264_s23  ;;  %v1427_v27 = vsel %vm1421_vm7, %v1394_v14, %v968_v36  ;;  %v4434_v36 = vld [vmem:[#allocation58_spill] sm:$0xff] }
 0x1b5   : > { %v3697_v23 = vpop.permute.xlu1 %802  ;;  %v2250_v14 = vld [vmem:[%s2306_s20 + $0x180] sm:$0xff] }
 0x1b6   : > { %v3699_v7 = vpop.permute.xlu0 %770 }
 0x1b7   : > { %1111 = vrot.lane.b32.xlu1 %v4428_v13, %s2265_s7  ;;  %v1362_v58 = vsel %vm1355_vm5, %v3204_v22, %v3699_v7 }
 0x1b8   : > { %1079 = vrot.lane.b32.xlu0 %v4429_v59, %s2265_s7 }
 0x1b9   : > { %v1102_v17 = vpop.permute.xlu1 %1101 }
 0x1ba   : > { %v1070_v51 = vpop.permute.xlu0 %1069  ;;  %v1476_v55 = vsel %vm1454_vm8, %v1443_v37, %v1102_v17  ;;  %v854_v37 = vrot.slane %v2250_v14, 2 }
 0x1bb   : > { %814 = vrot.lane.b32.xlu1 %v4428_v13, %s2262_s24  ;;  %v1460_v13 = vsel %vm1454_vm8, %v1427_v27, %v1070_v51 }
 0x1bc   : > { %782 = vrot.lane.b32.xlu0 %v4429_v59, %s2262_s24  ;;  %v4435_v59 = vld [vmem:[#allocation42_spill] sm:$0xff] }
 0x1bd   : > { %v1201_v63 = vpop.permute.xlu1 %1200 }
 0x1be   : > { %v1508_v21 = vsel %vm1487_vm9, %v1475_v34, %v1201_v63  ;;  %v1169_v1 = vpop.permute.xlu0 %1168 }
 0x1bf   : > { %v1492_v20 = vsel %vm1487_vm9, %v1459_v8, %v1169_v1  ;;  %1113 = vrot.lane.b32.xlu1 %v4430_v6, %s2265_s7  ;;  %2146 = vmatprep.mubr.msk.f32.mxu1 %vm1520_vm10, %v1508_v21  ;;  %v755_v8 = vsel %vm300_vm0, %v753_v48, %v754_v29  ;;  %v248_v1 = vld [vmem:[%s2306_s20 + $0x190] sm:$0x3] }
 0x1c0   : > { %1081 = vrot.lane.b32.xlu0 %v4431_v31, %s2265_s7  ;;  %2122 = vmatprep.mubr.msk.f32.mxu0 %vm1520_vm10, %v1492_v20 }
 0x1c1   : > { %v3729_v44 = vpop.permute.xlu1 %804 }
 0x1c2   : > { %v3731_v24 = vpop.permute.xlu0 %772 }
 0x1c3   : > { %1212 = vrot.lane.b32.xlu1 %v4432_v60, %s2266_s13 }
 0x1c4   : > { %1180 = vrot.lane.b32.xlu0 %v4433_v15, %s2266_s13 }
 0x1c5   : > { %v904_v32 = vpop.permute.xlu1 %903 }
 0x1c6   : > { %v872_v56 = vpop.permute.xlu0 %871 }
 0x1c7   : > { %816 = vrot.lane.b32.xlu1 %v4430_v6, %s2262_s24  ;;  %v756_v6 = vrot.slane %v248_v1, 1  ;;  %v1395_v27 = vsel %vm1388_vm6, %v1362_v58, %v872_v56  ;;  %v4439_v56 = vld [vmem:[#allocation12_spill] sm:$0xff] }
 0x1c8   : > { %784 = vrot.lane.b32.xlu0 %v4431_v31, %s2262_s24 }
 0x1c9   : > { %v1203_v10 = vpop.permute.xlu1 %1202 }
 0x1ca   : > { %v1509_v2 = vsel %vm1487_vm9, %v1476_v55, %v1203_v10  ;;  %v1171_v3 = vpop.permute.xlu0 %1170 }
 0x1cb   : > { %v1493_v26 = vsel %vm1487_vm9, %v1460_v13, %v1171_v3  ;;  %915 = vrot.lane.b32.xlu1 %v4432_v60, %s2263_s11  ;;  %2147 = vmatmul.mubr.msk.f32.gmra.mrb[4].mxu1 %vm1520_vm10, %v1509_v2  ;;  %v1378_v60 = vsel %vm1355_vm5, %v3340_v53, %v3697_v23  ;;  %v757_v53 = vsel %vm300_vm0, %v754_v29, %v756_v6 }
 0x1cc   : > { %883 = vrot.lane.b32.xlu0 %v4433_v15, %s2263_s11  ;;  %2123 = vmatmul.mubr.msk.f32.gmra.mrb[4].mxu0 %vm1520_vm10, %v1493_v26  ;;  %v2249_v15 = vld [vmem:[%s2306_s20 + $0x188] sm:$0xff]  ;;  %v1411_v18 = vsel %vm1388_vm6, %v1378_v60, %v904_v32  ;;  %v249_v60 = vld [vmem:[%s2306_s20 + $0x198] sm:$0xff] }
 0x1cd   : > { %v906_v28 = vpop.permute.xlu1 %905  ;;  %v855_v41 = vrot.slane %v2249_v15, 2  ;;  %v250_v15 = vld [vmem:[%s2306_s20 + $0x1a0] sm:$0xff] }
 0x1ce   : > { %v874_v40 = vpop.permute.xlu0 %873 }
 0x1cf   : > { %1214 = vrot.lane.b32.xlu1 %v4434_v36, %s2266_s13  ;;  %v856_v3 = vsel %vm477_vm1, %v854_v37, %v855_v41  ;;  %v251_v37 = vld [vmem:[%s2306_s20 + $0x1a8] sm:$0x3] }
 0x1d0   : > { %1182 = vrot.lane.b32.xlu0 %v4435_v59, %s2266_s13 }
 0x1d1   : > { %v1002_v17 = vpop.permute.xlu1 %1001 }
 0x1d2   : > { %v970_v35 = vpop.permute.xlu0 %969  ;;  %v1444_v55 = vsel %vm1421_vm7, %v1411_v18, %v1002_v17  ;;  %v1055_v18 = vrot.slane %v250_v15, 1 }
 0x1d3   : > { %917 = vrot.lane.b32.xlu1 %v4434_v36, %s2263_s11  ;;  %v1428_v23 = vsel %vm1421_vm7, %v1395_v27, %v970_v35  ;;  %v1379_v35 = vsel %vm1355_vm5, %v3337_v4, %v3729_v44 }
 0x1d4   : > { %885 = vrot.lane.b32.xlu0 %v4435_v59, %s2263_s11  ;;  %v4440_v59 = vld [vmem:[#allocation45_spill] sm:$0xff]  ;;  %v1412_v29 = vsel %vm1388_vm6, %v1379_v35, %v906_v28 }
 0x1d5   : > { %v1004_v51 = vpop.permute.xlu1 %1003 }
 0x1d6   : > { %v972_v39 = vpop.permute.xlu0 %971 }
 0x1d7   : > { %1013 = vrot.lane.b32.xlu1 %v4436_v25, %s2264_s23 }
 0x1d8   : > { %981 = vrot.lane.b32.xlu0 %v3477_v61, %s2264_s23  ;;  %v4438_v61 = vld [vmem:[#allocation13_spill] sm:$0xff] }
 0x1d9   : > { %v1104_v34 = vpop.permute.xlu1 %1103 }
 0x1da   : > { %v1072_v63 = vpop.permute.xlu0 %1071  ;;  %v1477_v10 = vsel %vm1454_vm8, %v1444_v55, %v1104_v34  ;;  %v1445_v34 = vsel %vm1421_vm7, %v1412_v29, %v1004_v51 }
 0x1db   : > { %1015 = vrot.lane.b32.xlu1 %v4437_v57, %s2264_s23  ;;  %v1461_v7 = vsel %vm1454_vm8, %v1428_v23, %v1072_v63  ;;  %v1363_v57 = vsel %vm1355_vm5, %v3201_v50, %v3731_v24  ;;  %v857_v63 = vrot.slane %v248_v1, 2  ;;  %v4441_v1 = vld [vmem:[#allocation44_spill] sm:$0xff] }
 0x1dc   : > { %983 = vrot.lane.b32.xlu0 %v3535_v45, %s2264_s23  ;;  %v1396_v48 = vsel %vm1388_vm6, %v1363_v57, %v874_v40  ;;  %v4443_v57 = vld [vmem:[#allocation14_spill] sm:$0xff] }
 0x1dd   : > { %v3780_v21 = vpop.permute.xlu1 %806  ;;  %v858_v40 = vsel %vm477_vm1, %v855_v41, %v857_v63  ;;  %v1054_v41 = vrot.slane %v249_v60, 1  ;;  %v4444_v63 = vld [vmem:[#allocation47_spill] sm:$0xff] }
 0x1de   : > { %v3783_v20 = vpop.permute.xlu0 %774 }
 0x1df   : > { %1115 = vrot.lane.b32.xlu1 %v755_v8, %s2265_s7  ;;  %v1056_v55 = vsel %vm300_vm0, %v1054_v41, %v1055_v18 }
 0x1e0   : > { %1083 = vrot.lane.b32.xlu0 %v4438_v61, %s2265_s7 }
 0x1e1   : > { %v1106_v31 = vpop.permute.xlu1 %1105 }
 0x1e2   : > { %v1074_v45 = vpop.permute.xlu0 %1073  ;;  %v1478_v4 = vsel %vm1454_vm8, %v1445_v34, %v1106_v31 }
 0x1e3   : > { %818 = vrot.lane.b32.xlu1 %v755_v8, %s2262_s24  ;;  %v1429_v8 = vsel %vm1421_vm7, %v1396_v48, %v972_v39  ;;  %v1158_v48 = vrot.slane %v251_v37, 2 }
 0x1e4   : > { %786 = vrot.lane.b32.xlu0 %v4438_v61, %s2262_s24  ;;  %v1462_v61 = vsel %vm1454_vm8, %v1429_v8, %v1074_v45 }
 0x1e5   : > { %v1205_v22 = vpop.permute.xlu1 %1204 }
 0x1e6   : > { %v1510_v32 = vsel %vm1487_vm9, %v1477_v10, %v1205_v22  ;;  %v1173_v13 = vpop.permute.xlu0 %1172  ;;  %v1155_v22 = vrot.slane %v249_v60, 2 }
 0x1e7   : > { %v1494_v2 = vsel %vm1487_vm9, %v1461_v7, %v1173_v13  ;;  %1117 = vrot.lane.b32.xlu1 %v757_v53, %s2265_s7  ;;  %2149 = vmatprep.mubr.msk.f32.mxu1 %vm1520_vm10, %v1510_v32  ;;  %v1156_v7 = vrot.slane %v250_v15, 2 }
 0x1e8   : > { %1085 = vrot.lane.b32.xlu0 %v4439_v56, %s2265_s7  ;;  %2125 = vmatprep.mubr.msk.f32.mxu0 %vm1520_vm10, %v1494_v2 }
 0x1e9   : > { %v3814_v26 = vpop.permute.xlu1 %808  ;;  %v1157_v29 = vsel %vm477_vm1, %v1155_v22, %v1156_v7  ;;  %v1159_v8 = vsel %vm477_vm1, %v1156_v7, %v1158_v48 }
 0x1ea   : > { %v3816_v36 = vpop.permute.xlu0 %776 }
 0x1eb   : > { %1216 = vrot.lane.b32.xlu1 %v856_v3, %s2266_s13 }
 0x1ec   : > { %1184 = vrot.lane.b32.xlu0 %v4440_v59, %s2266_s13 }
 0x1ed   : > { %v908_v17 = vpop.permute.xlu1 %907 }
 0x1ee   : > { %v876_v25 = vpop.permute.xlu0 %875 }
 0x1ef   : > { %820 = vrot.lane.b32.xlu1 %v757_v53, %s2262_s24  ;;  %v1057_v53 = vrot.slane %v251_v37, 1 }
 0x1f0   : > { %788 = vrot.lane.b32.xlu0 %v4439_v56, %s2262_s24  ;;  %v1364_v56 = vsel %vm1355_vm5, %v3224_v30, %v3783_v20 }
 0x1f1   : > { %v1207_v44 = vpop.permute.xlu1 %1206  ;;  %v1058_v32 = vsel %vm300_vm0, %v1055_v18, %v1057_v53 }
 0x1f2   : > { %v1511_v50 = vsel %vm1487_vm9, %v1478_v4, %v1207_v44  ;;  %v1175_v24 = vpop.permute.xlu0 %1174 }
 0x1f3   : > { %v1495_v28 = vsel %vm1487_vm9, %v1462_v61, %v1175_v24  ;;  %919 = vrot.lane.b32.xlu1 %v856_v3, %s2263_s11  ;;  %2150 = vmatmul.mubr.msk.f32.gmra.mrb[6].mxu1 %vm1520_vm10, %v1511_v50  ;;  %v4445_v61 = vld [vmem:[#allocation46_spill] sm:$0xff]  ;;  %v1381_v24 = vsel %vm1355_vm5, %v3357_v52, %v3814_v26 }
 0x1f4   : > { %887 = vrot.lane.b32.xlu0 %v4440_v59, %s2263_s11  ;;  %2126 = vmatmul.mubr.msk.f32.gmra.mrb[6].mxu0 %vm1520_vm10, %v1495_v28  ;;  %v1397_v59 = vsel %vm1388_vm6, %v1364_v56, %v876_v25 }
 0x1f5   : > { %v910_v51 = vpop.permute.xlu1 %909 }
 0x1f6   : > { %v878_v39 = vpop.permute.xlu0 %877 }
 0x1f7   : > { %1218 = vrot.lane.b32.xlu1 %v858_v40, %s2266_s13 }
 0x1f8   : > { %1186 = vrot.lane.b32.xlu0 %v4441_v1, %s2266_s13 }
 0x1f9   : > { %v1006_v6 = vpop.permute.xlu1 %1005 }
 0x1fa   : > { %v974_v31 = vpop.permute.xlu0 %973 }
 0x1fb   : > { %921 = vrot.lane.b32.xlu1 %v858_v40, %s2263_s11  ;;  %v1365_v40 = vsel %vm1355_vm5, %v3221_v9, %v3816_v36 }
 0x1fc   : > { %889 = vrot.lane.b32.xlu0 %v4441_v1, %s2263_s11  ;;  %v1414_v1 = vsel %vm1388_vm6, %v1381_v24, %v910_v51 }
 0x1fd   : > { %v1008_v45 = vpop.permute.xlu1 %1007 }
 0x1fe   : > { %v976_v58 = vpop.permute.xlu0 %975 }
 0x1ff   : > { %1017 = vrot.lane.b32.xlu1 %v249_v60, %s2264_s23 }
 0x200   : > { %985 = vrot.lane.b32.xlu0 %v3588_v0, %s2264_s23  ;;  %v4442_v0 = vld [vmem:[#allocation15_spill] sm:$0xff] }
 0x201   : > { %v1108_v14 = vpop.permute.xlu1 %1107 }
 0x202   : > { %v1076_v27 = vpop.permute.xlu0 %1075 }
 0x203   : > { %1019 = vrot.lane.b32.xlu1 %v250_v15, %s2264_s23 }
 0x204   : > { %987 = vrot.lane.b32.xlu0 %v3636_v62, %s2264_s23  ;;  %v1380_v62 = vsel %vm1355_vm5, %v3360_v47, %v3780_v21  ;;  %v1430_v47 = vsel %vm1421_vm7, %v1397_v59, %v974_v31  ;;  %v1447_v31 = vsel %vm1421_vm7, %v1414_v1, %v1008_v45 }
 0x205   : > { %v811_v23 = vpop.permute.xlu1 %810  ;;  %v1413_v3 = vsel %vm1388_vm6, %v1380_v62, %v908_v17  ;;  %v1463_v30 = vsel %vm1454_vm8, %v1430_v47, %v1076_v27 }
 0x206   : > { %v3860_v10 = vpop.permute.xlu0 %778  ;;  %v1446_v35 = vsel %vm1421_vm7, %v1413_v3, %v1006_v6  ;;  %v1398_v6 = vsel %vm1388_vm6, %v1365_v40, %v878_v39  ;;  %v1382_v7 = vsel %vm1355_vm5, %v3380_v19, %v811_v23 }
 0x207   : > { %1119 = vrot.lane.b32.xlu1 %v1056_v55, %s2265_s7  ;;  %v1479_v21 = vsel %vm1454_vm8, %v1446_v35, %v1108_v14  ;;  %v1431_v60 = vsel %vm1421_vm7, %v1398_v6, %v976_v58 }
 0x208   : > { %1087 = vrot.lane.b32.xlu0 %v4442_v0, %s2265_s7 }
 0x209   : > { %v1110_v13 = vpop.permute.xlu1 %1109 }
 0x20a   : > { %v1078_v2 = vpop.permute.xlu0 %1077  ;;  %v1480_v15 = vsel %vm1454_vm8, %v1447_v31, %v1110_v13  ;;  %v3954_v31 = vld [vmem:[%s4162_s3] ss:$0 sm:$0xff] }
 0x20b   : > { %1121 = vrot.lane.b32.xlu1 %v1058_v32, %s2265_s7  ;;  %v1464_v18 = vsel %vm1454_vm8, %v1431_v60, %v1078_v2  ;;  %v1366_v32 = vsel %vm1355_vm5, %v3244_v38, %v3860_v10 }
 0x20c   : > { %1089 = vrot.lane.b32.xlu0 %v4443_v57, %s2265_s7 }
 0x20d   : > { %v1209_v34 = vpop.permute.xlu1 %1208 }
 0x20e   : > { %v1512_v20 = vsel %vm1487_vm9, %v1479_v21, %v1209_v34  ;;  %v1177_v17 = vpop.permute.xlu0 %1176 }
 0x20f   : > { %v1496_v25 = vsel %vm1487_vm9, %v1463_v30, %v1177_v17  ;;  %1220 = vrot.lane.b32.xlu1 %v1157_v29, %s2266_s13  ;;  %2152 = vmatprep.mubr.msk.f32.mxu1 %vm1520_vm10, %v1512_v20 }
 0x210   : > { %1188 = vrot.lane.b32.xlu0 %v4444_v63, %s2266_s13  ;;  %2128 = vmatprep.mubr.msk.f32.mxu0 %vm1520_vm10, %v1496_v25 }
 0x211   : > { %v813_v4 = vpop.permute.xlu1 %812 }
 0x212   : > { %v781_v44 = vpop.permute.xlu0 %780  ;;  %v1383_v48 = vsel %vm1355_vm5, %v3377_v33, %v813_v4 }
 0x213   : > { %1222 = vrot.lane.b32.xlu1 %v1159_v8, %s2266_s13  ;;  %v1367_v21 = vsel %vm1355_vm5, %v3241_v43, %v781_v44 }
 0x214   : > { %1190 = vrot.lane.b32.xlu0 %v4445_v61, %s2266_s13 }
 0x215   : > { %v912_v50 = vpop.permute.xlu1 %911 }
 0x216   : > { %v880_v28 = vpop.permute.xlu0 %879  ;;  %v1415_v13 = vsel %vm1388_vm6, %v1382_v7, %v912_v50 }
 0x217   : > { %v1399_v62 = vsel %vm1388_vm6, %v1366_v32, %v880_v28  ;;  %v3949_v28 = vld [vmem:[%s4161_s2] ss:$0 sm:$0xff] }
 0x219   : > { %v1211_v41 = vpop.permute.xlu1 %1210 }
 0x21a   : > { %v1513_v52 = vsel %vm1487_vm9, %v1480_v15, %v1211_v41  ;;  %v1179_v26 = vpop.permute.xlu0 %1178 }
 0x21b   : > { %v1497_v14 = vsel %vm1487_vm9, %v1464_v18, %v1179_v26  ;;  %2153 = vmatmul.mubr.msk.f32.gmra.mrb[8].mxu1 %vm1520_vm10, %v1513_v52 }
 0x21c   : > { %2129 = vmatmul.mubr.msk.f32.gmra.mrb[8].mxu0 %vm1520_vm10, %v1497_v14 }
 0x21d   : > { %v914_v9 = vpop.permute.xlu1 %913 }
 0x21e   : > { %v882_v36 = vpop.permute.xlu0 %881  ;;  %v1416_v34 = vsel %vm1388_vm6, %v1383_v48, %v914_v9 }
 0x21f   : > { %v1400_v30 = vsel %vm1388_vm6, %v1367_v21, %v882_v36 }
 0x221   : > { %v1010_v51 = vpop.permute.xlu1 %1009 }
 0x222   : > { %v978_v39 = vpop.permute.xlu0 %977  ;;  %v1448_v2 = vsel %vm1421_vm7, %v1415_v13, %v1010_v51 }
 0x223   : > { %v1432_v56 = vsel %vm1421_vm7, %v1399_v62, %v978_v39 }
 0x225   : > { %v1012_v45 = vpop.permute.xlu1 %1011 }
 0x226   : > { %v980_v58 = vpop.permute.xlu0 %979  ;;  %v1449_v20 = vsel %vm1421_vm7, %v1416_v34, %v1012_v45 }
 0x227   : > { %v1433_v17 = vsel %vm1421_vm7, %v1400_v30, %v980_v58 }
 0x229   : > { %v1112_v37 = vpop.permute.xlu1 %1111 }
 0x22a   : > { %v1080_v27 = vpop.permute.xlu0 %1079  ;;  %v1481_v3 = vsel %vm1454_vm8, %v1448_v2, %v1112_v37 }
 0x22b   : > { %v1465_v35 = vsel %vm1454_vm8, %v1432_v56, %v1080_v27 }
 0x22d   : > { %v3909_v55 = vpop.permute.xlu1 %814 }
 0x22e   : > { %v3911_v53 = vpop.permute.xlu0 %782  ;;  %v1384_v62 = vsel %vm1355_vm5, %v3400_v5, %v3909_v55 }
 0x22f   : > { %v1368_v56 = vsel %vm1355_vm5, %v3264_v46, %v3911_v53 }
 0x231   : > { %v1114_v22 = vpop.permute.xlu1 %1113 }
 0x232   : > { %v1082_v0 = vpop.permute.xlu0 %1081  ;;  %v1482_v25 = vsel %vm1454_vm8, %v1449_v20, %v1114_v22 }
 0x233   : > { %v1466_v8 = vsel %vm1454_vm8, %v1433_v17, %v1082_v0 }
 0x235   : > { %v1213_v59 = vpop.permute.xlu1 %1212 }
 0x236   : > { %v1514_v19 = vsel %vm1487_vm9, %v1481_v3, %v1213_v59  ;;  %v1181_v23 = vpop.permute.xlu0 %1180 }
 0x237   : > { %v1498_v57 = vsel %vm1487_vm9, %v1465_v35, %v1181_v23  ;;  %2155 = vmatprep.mubr.msk.f32.mxu1 %vm1520_vm10, %v1514_v19 }
 0x238   : > { %2131 = vmatprep.mubr.msk.f32.mxu0 %vm1520_vm10, %v1498_v57 }
 0x239   : > { %v3928_v38 = vpop.permute.xlu1 %816 }
 0x23a   : > { %v3930_v10 = vpop.permute.xlu0 %784  ;;  %v1385_v21 = vsel %vm1355_vm5, %v3397_v49, %v3928_v38 }
 0x23b   : > { %v1369_v30 = vsel %vm1355_vm5, %v3261_v42, %v3930_v10 }
 0x23d   : > { %v916_v29 = vpop.permute.xlu1 %915 }
 0x23e   : > { %v884_v47 = vpop.permute.xlu0 %883  ;;  %v1417_v3 = vsel %vm1388_vm6, %v1384_v62, %v916_v29 }
 0x23f   : > { %v1401_v59 = vsel %vm1388_vm6, %v1368_v56, %v884_v47 }
 0x241   : > { %v1215_v63 = vpop.permute.xlu1 %1214 }
 0x242   : > { %v1515_v33 = vsel %vm1487_vm9, %v1482_v25, %v1215_v63  ;;  %v1183_v4 = vpop.permute.xlu0 %1182 }
 0x243   : > { %v1499_v61 = vsel %vm1487_vm9, %v1466_v8, %v1183_v4  ;;  %2156 = vmatmul.mubr.msk.f32.gmra.mrb[10].mxu1 %vm1520_vm10, %v1515_v33 }
 0x244   : > { %2132 = vmatmul.mubr.msk.f32.gmra.mrb[10].mxu0 %vm1520_vm10, %v1499_v61 }
 0x245   : > { %v918_v43 = vpop.permute.xlu1 %917 }
 0x246   : > { %v886_v44 = vpop.permute.xlu0 %885  ;;  %v1418_v20 = vsel %vm1388_vm6, %v1385_v21, %v918_v43 }
 0x247   : > { %v1402_v17 = vsel %vm1388_vm6, %v1369_v30, %v886_v44 }
 0x249   : > { %v1014_v50 = vpop.permute.xlu1 %1013 }
 0x24a   : > { %v982_v24 = vpop.permute.xlu0 %981  ;;  %v1450_v35 = vsel %vm1421_vm7, %v1417_v3, %v1014_v50 }
 0x24b   : > { %v1434_v19 = vsel %vm1421_vm7, %v1401_v59, %v982_v24 }
 0x24d   : > { %v1016_v40 = vpop.permute.xlu1 %1015 }
 0x24e   : > { %v984_v1 = vpop.permute.xlu0 %983  ;;  %v2118_v6 = vpop.f32.mrb[0].mxu0  ;;  %v1451_v25 = vsel %vm1421_vm7, %v1418_v20, %v1016_v40 }
 0x24f   : > { %v1802_v60 = vmul.f32 %v2118_v6, %v3949_v28  ;;  %v1635_v15 = vpop.f32.mrb[1].mxu0  ;;  %v1435_v63 = vsel %vm1421_vm7, %v1402_v17, %v984_v1 }
 0x250   : > { %v1801_v41 = vmul.f32 %v3949_v28, %v1635_v15 }
 0x251   : > { %v1841_v18 = vadd.f32 %v3954_v31, %v1802_v60  ;;  %v1116_v52 = vpop.permute.xlu1 %1115 }
 0x252   : > { %v1840_v26 = vadd.f32 %v3954_v31, %v1801_v41  ;;  %v1084_v14 = vpop.permute.xlu0 %1083  ;;  %v1483_v23 = vsel %vm1454_vm8, %v1450_v35, %v1116_v52 }
 0x253   : > { %v1873_v9 = vmax.f32 %v1841_v18, 0.0  ;;  %v2142_v36 = vpop.f32.mrb[0].mxu1  ;;  %v1467_v55 = vsel %vm1454_vm8, %v1434_v19, %v1084_v14 }
 0x254   : > { %v1872_v51 = vmax.f32 %v1840_v26, 0.0  ;;  %v1818_v39 = vmul.f32 %v2142_v36, %v3949_v28  ;;  %v1715_v45 = vpop.f32.mrb[1].mxu1 }
 0x255   : > { %1905 = vst.msk [vmem:[%s3963_s21 + $0x8] sm:$0xff] %vm1289_vm3, %v1873_v9  ;;  %v1817_v58 = vmul.f32 %v3949_v28, %v1715_v45  ;;  %v3970_v37 = vpop.permute.xlu1 %818 }
 0x256   : > { %1904 = vst.msk [vmem:[%s3963_s21] sm:$0xff] %vm1289_vm3, %v1872_v51  ;;  %v1857_v27 = vadd.f32 %v3954_v31, %v1818_v39  ;;  %v3975_v22 = vpop.permute.xlu0 %786 }
 0x257   : > { %v1856_v7 = vadd.f32 %v3954_v31, %v1817_v58  ;;  %v1370_v62 = vsel %vm1355_vm5, %v3284_v54, %v3975_v22 }
 0x258   : > { %v1889_v0 = vmax.f32 %v1857_v27, 0.0 }
 0x259   : > { %v1888_v32 = vmax.f32 %v1856_v7, 0.0  ;;  %v1118_v13 = vpop.permute.xlu1 %1117 }
 0x25a   : > { %1921 = vst.msk [vmem:[%s3963_s21 + $0x88] sm:$0xff] %vm1289_vm3, %v1889_v0  ;;  %v1086_v2 = vpop.permute.xlu0 %1085  ;;  %v1484_v8 = vsel %vm1454_vm8, %v1451_v25, %v1118_v13 }
 0x25b   : > { %1920 = vst.msk [vmem:[%s3963_s21 + $0x80] sm:$0xff] %vm1289_vm3, %v1888_v32  ;;  %v1468_v4 = vsel %vm1454_vm8, %v1435_v63, %v1086_v2  ;;  %v1386_v32 = vsel %vm1355_vm5, %v3420_v12, %v3970_v37 }
 0x25d   : > { %v1217_v5 = vpop.permute.xlu1 %1216 }
 0x25e   : > { %v1516_v57 = vsel %vm1487_vm9, %v1483_v23, %v1217_v5  ;;  %v1185_v48 = vpop.permute.xlu0 %1184 }
 0x25f   : > { %v1500_v46 = vsel %vm1487_vm9, %v1467_v55, %v1185_v48  ;;  %2158 = vmatprep.mubr.msk.f32.mxu1 %vm1520_vm10, %v1516_v57 }
 0x260   : > { %2134 = vmatprep.mubr.msk.f32.mxu0 %vm1520_vm10, %v1500_v46 }
 0x261   : > { %v821_v53 = vpop.permute.xlu1 %820 }
 0x262   : > { %v789_v29 = vpop.permute.xlu0 %788  ;;  %v1387_v35 = vsel %vm1355_vm5, %v3417_v11, %v821_v53 }
 0x263   : > { %v1371_v23 = vsel %vm1355_vm5, %v3281_v16, %v789_v29 }
 0x265   : > { %v920_v47 = vpop.permute.xlu1 %919 }
 0x266   : > { %v888_v34 = vpop.permute.xlu0 %887  ;;  %v1419_v2 = vsel %vm1388_vm6, %v1386_v32, %v920_v47 }
 0x267   : > { %v1403_v56 = vsel %vm1388_vm6, %v1370_v62, %v888_v34 }
 0x269   : > { %v1219_v33 = vpop.permute.xlu1 %1218 }
 0x26a   : > { %v1517_v49 = vsel %vm1487_vm9, %v1484_v8, %v1219_v33  ;;  %v1187_v38 = vpop.permute.xlu0 %1186 }
 0x26b   : > { %v1501_v61 = vsel %vm1487_vm9, %v1468_v4, %v1187_v38  ;;  %2159 = vmatmul.mubr.msk.f32.gmra.mrb[12].mxu1 %vm1520_vm10, %v1517_v49 }
 0x26c   : > { %2135 = vmatmul.mubr.msk.f32.gmra.mrb[12].mxu0 %vm1520_vm10, %v1501_v61 }
 0x26d   : > { %v922_v42 = vpop.permute.xlu1 %921 }
 0x26e   : > { %v890_v10 = vpop.permute.xlu0 %889  ;;  %v1420_v5 = vsel %vm1388_vm6, %v1387_v35, %v922_v42 }
 0x26f   : > { %v1404_v57 = vsel %vm1388_vm6, %v1371_v23, %v890_v10 }
 0x271   : > { %v1018_v43 = vpop.permute.xlu1 %1017 }
 0x272   : > { %v986_v44 = vpop.permute.xlu0 %985  ;;  %v1452_v3 = vsel %vm1421_vm7, %v1419_v2, %v1018_v43 }
 0x273   : > { %v1436_v59 = vsel %vm1421_vm7, %v1403_v56, %v986_v44 }
 0x275   : > { %v1020_v50 = vpop.permute.xlu1 %1019 }
 0x276   : > { %v988_v24 = vpop.permute.xlu0 %987  ;;  %v2145_v40 = vpop.f32.mrb[2].mxu1  ;;  %v1453_v48 = vsel %vm1421_vm7, %v1420_v5, %v1020_v50 }
 0x277   : > { %v2121_v1 = vpop.f32.mrb[2].mxu0  ;;  %v1820_v6 = vmul.f32 %v2145_v40, %v3949_v28  ;;  %v1725_v60 = vpop.f32.mrb[3].mxu1  ;;  %v1437_v11 = vsel %vm1421_vm7, %v1404_v57, %v988_v24 }
 0x278   : > { %v1804_v15 = vmul.f32 %v2121_v1, %v3949_v28  ;;  %v1645_v41 = vpop.f32.mrb[3].mxu0  ;;  %v1819_v18 = vmul.f32 %v3949_v28, %v1725_v60 }
 0x279   : > { %v1859_v52 = vadd.f32 %v3954_v31, %v1820_v6  ;;  %v1803_v26 = vmul.f32 %v3949_v28, %v1645_v41  ;;  %v1120_v14 = vpop.permute.xlu1 %1119 }
 0x27a   : > { %v1843_v9 = vadd.f32 %v3954_v31, %v1804_v15  ;;  %v1858_v36 = vadd.f32 %v3954_v31, %v1819_v18  ;;  %v1088_v51 = vpop.permute.xlu0 %1087  ;;  %v1485_v12 = vsel %vm1454_vm8, %v1452_v3, %v1120_v14 }
 0x27b   : > { %v1891_v39 = vmax.f32 %v1859_v52, 0.0  ;;  %v1842_v45 = vadd.f32 %v3954_v31, %v1803_v26  ;;  %v1469_v19 = vsel %vm1454_vm8, %v1436_v59, %v1088_v51 }
 0x27c   : > { %v1875_v58 = vmax.f32 %v1843_v9, 0.0  ;;  %v1890_v27 = vmax.f32 %v1858_v36, 0.0 }
 0x27d   : > { %1923 = vst.msk [vmem:[%s3963_s21 + $0x98] sm:$0xff] %vm1289_vm3, %v1891_v39  ;;  %v1874_v7 = vmax.f32 %v1842_v45, 0.0  ;;  %v1122_v0 = vpop.permute.xlu1 %1121 }
 0x27e   : > { %1907 = vst.msk [vmem:[%s3963_s21 + $0x18] sm:$0xff] %vm1289_vm3, %v1875_v58  ;;  %1922 = vst.msk [vmem:[%s3963_s21 + $0x90] sm:$0xff] %vm1289_vm3, %v1890_v27  ;;  %v1090_v13 = vpop.permute.xlu0 %1089  ;;  %v1486_v46 = vsel %vm1454_vm8, %v1453_v48, %v1122_v0 }
 0x27f   : > { %1906 = vst.msk [vmem:[%s3963_s21 + $0x10] sm:$0xff] %vm1289_vm3, %v1874_v7  ;;  %v1470_v47 = vsel %vm1454_vm8, %v1437_v11, %v1090_v13 }
 0x281   : > { %v1221_v37 = vpop.permute.xlu1 %1220 }
 0x282   : > { %v1518_v54 = vsel %vm1487_vm9, %v1485_v12, %v1221_v37  ;;  %v1189_v22 = vpop.permute.xlu0 %1188 }
 0x283   : > { %v1502_v55 = vsel %vm1487_vm9, %v1469_v19, %v1189_v22  ;;  %2161 = vmatprep.mubr.msk.f32.mxu1 %vm1520_vm10, %v1518_v54 }
 0x284   : > { %2137 = vmatprep.mubr.msk.f32.mxu0 %vm1520_vm10, %v1502_v55 }
 0x285   : > { %v1223_v53 = vpop.permute.xlu1 %1222 }
 0x286   : > { %v1519_v16 = vsel %vm1487_vm9, %v1486_v46, %v1223_v53  ;;  %v1191_v29 = vpop.permute.xlu0 %1190 }
 0x287   : > { %v1503_v21 = vsel %vm1487_vm9, %v1470_v47, %v1191_v29  ;;  %2162 = vmatmul.mubr.msk.f32.gmra.mrb[14].mxu1 %vm1520_vm10, %v1519_v16 }
 0x288   : > { %2138 = vmatmul.mubr.msk.f32.gmra.mrb[14].mxu0 %vm1520_vm10, %v1503_v21 }
 0x29e   : > { %v2148_v34 = vpop.f32.mrb[4].mxu1 }
 0x29f   : > { %v2124_v30 = vpop.f32.mrb[4].mxu0  ;;  %v1822_v20 = vmul.f32 %v2148_v34, %v3949_v28  ;;  %v1735_v17 = vpop.f32.mrb[5].mxu1 }
 0x2a0   : > { %v1806_v25 = vmul.f32 %v2124_v30, %v3949_v28  ;;  %v1655_v63 = vpop.f32.mrb[5].mxu0  ;;  %v1821_v8 = vmul.f32 %v3949_v28, %v1735_v17 }
 0x2a1   : > { %v1861_v33 = vadd.f32 %v3954_v31, %v1822_v20  ;;  %v1805_v4 = vmul.f32 %v3949_v28, %v1655_v63 }
 0x2a2   : > { %v1845_v49 = vadd.f32 %v3954_v31, %v1806_v25  ;;  %v1860_v38 = vadd.f32 %v3954_v31, %v1821_v8 }
 0x2a3   : > { %v1893_v61 = vmax.f32 %v1861_v33, 0.0  ;;  %v1844_v42 = vadd.f32 %v3954_v31, %v1805_v4 }
 0x2a4   : > { %v1877_v10 = vmax.f32 %v1845_v49, 0.0  ;;  %v1892_v43 = vmax.f32 %v1860_v38, 0.0 }
 0x2a5   : > { %1925 = vst.msk [vmem:[%s3963_s21 + $0xa8] sm:$0xff] %vm1289_vm3, %v1893_v61  ;;  %v1876_v44 = vmax.f32 %v1844_v42, 0.0 }
 0x2a6   : > { %1909 = vst.msk [vmem:[%s3963_s21 + $0x28] sm:$0xff] %vm1289_vm3, %v1877_v10  ;;  %1924 = vst.msk [vmem:[%s3963_s21 + $0xa0] sm:$0xff] %vm1289_vm3, %v1892_v43 }
 0x2a7   : > { %1908 = vst.msk [vmem:[%s3963_s21 + $0x20] sm:$0xff] %vm1289_vm3, %v1876_v44 }
 0x2c6   : > { %v2151_v50 = vpop.f32.mrb[6].mxu1 }
 0x2c7   : > { %v2127_v24 = vpop.f32.mrb[6].mxu0  ;;  %v1824_v40 = vmul.f32 %v2151_v50, %v3949_v28  ;;  %v1745_v1 = vpop.f32.mrb[7].mxu1 }
 0x2c8   : > { %v1808_v6 = vmul.f32 %v2127_v24, %v3949_v28  ;;  %v1665_v60 = vpop.f32.mrb[7].mxu0  ;;  %v1823_v15 = vmul.f32 %v3949_v28, %v1745_v1 }
 0x2c9   : > { %v1863_v41 = vadd.f32 %v3954_v31, %v1824_v40  ;;  %v1807_v18 = vmul.f32 %v3949_v28, %v1665_v60 }
 0x2ca   : > { %v1847_v52 = vadd.f32 %v3954_v31, %v1808_v6  ;;  %v1862_v26 = vadd.f32 %v3954_v31, %v1823_v15 }
 0x2cb   : > { %v1895_v14 = vmax.f32 %v1863_v41, 0.0  ;;  %v1846_v9 = vadd.f32 %v3954_v31, %v1807_v18 }
 0x2cc   : > { %v1879_v36 = vmax.f32 %v1847_v52, 0.0  ;;  %v1894_v51 = vmax.f32 %v1862_v26, 0.0 }
 0x2cd   : > { %1927 = vst.msk [vmem:[%s3963_s21 + $0xb8] sm:$0xff] %vm1289_vm3, %v1895_v14  ;;  %v1878_v39 = vmax.f32 %v1846_v9, 0.0 }
 0x2ce   : > { %1911 = vst.msk [vmem:[%s3963_s21 + $0x38] sm:$0xff] %vm1289_vm3, %v1879_v36  ;;  %1926 = vst.msk [vmem:[%s3963_s21 + $0xb0] sm:$0xff] %vm1289_vm3, %v1894_v51 }
 0x2cf   : > { %1910 = vst.msk [vmem:[%s3963_s21 + $0x30] sm:$0xff] %vm1289_vm3, %v1878_v39 }
 0x2ee   : > { %v2154_v45 = vpop.f32.mrb[8].mxu1 }
 0x2ef   : > { %v2130_v58 = vpop.f32.mrb[8].mxu0  ;;  %v1826_v27 = vmul.f32 %v2154_v45, %v3949_v28  ;;  %v1755_v7 = vpop.f32.mrb[9].mxu1 }
 0x2f0   : > { %v1810_v0 = vmul.f32 %v2130_v58, %v3949_v28  ;;  %v1675_v32 = vpop.f32.mrb[9].mxu0  ;;  %v1825_v13 = vmul.f32 %v3949_v28, %v1755_v7 }
 0x2f1   : > { %v1865_v62 = vadd.f32 %v3954_v31, %v1826_v27  ;;  %v1809_v2 = vmul.f32 %v3949_v28, %v1675_v32 }
 0x2f2   : > { %v1849_v56 = vadd.f32 %v3954_v31, %v1810_v0  ;;  %v1864_v3 = vadd.f32 %v3954_v31, %v1825_v13 }
 0x2f3   : > { %v1897_v59 = vmax.f32 %v1865_v62, 0.0  ;;  %v1848_v12 = vadd.f32 %v3954_v31, %v1809_v2 }
 0x2f4   : > { %v1881_v37 = vmax.f32 %v1849_v56, 0.0  ;;  %v1896_v35 = vmax.f32 %v1864_v3, 0.0 }
 0x2f5   : > { %1929 = vst.msk [vmem:[%s3963_s21 + $0xc8] sm:$0xff] %vm1289_vm3, %v1897_v59  ;;  %v1880_v19 = vmax.f32 %v1848_v12, 0.0 }
 0x2f6   : > { %1913 = vst.msk [vmem:[%s3963_s21 + $0x48] sm:$0xff] %vm1289_vm3, %v1881_v37  ;;  %1928 = vst.msk [vmem:[%s3963_s21 + $0xc0] sm:$0xff] %vm1289_vm3, %v1896_v35 }
 0x2f7   : > { %1912 = vst.msk [vmem:[%s3963_s21 + $0x40] sm:$0xff] %vm1289_vm3, %v1880_v19 }
 0x316   : > { %v2157_v54 = vpop.f32.mrb[10].mxu1 }
 0x317   : > { %v2133_v22 = vpop.f32.mrb[10].mxu0  ;;  %v1828_v23 = vmul.f32 %v2157_v54, %v3949_v28  ;;  %v1765_v5 = vpop.f32.mrb[11].mxu1 }
 0x318   : > { %v1812_v55 = vmul.f32 %v2133_v22, %v3949_v28  ;;  %v1685_v57 = vpop.f32.mrb[11].mxu0  ;;  %v1827_v48 = vmul.f32 %v3949_v28, %v1765_v5 }
 0x319   : > { %v1867_v11 = vadd.f32 %v3954_v31, %v1828_v23  ;;  %v1811_v46 = vmul.f32 %v3949_v28, %v1685_v57 }
 0x31a   : > { %v1851_v53 = vadd.f32 %v3954_v31, %v1812_v55  ;;  %v1866_v47 = vadd.f32 %v3954_v31, %v1827_v48 }
 0x31b   : > { %v1899_v16 = vmax.f32 %v1867_v11, 0.0  ;;  %v1850_v29 = vadd.f32 %v3954_v31, %v1811_v46 }
 0x31c   : > { %v1883_v21 = vmax.f32 %v1851_v53, 0.0  ;;  %v1898_v34 = vmax.f32 %v1866_v47, 0.0 }
 0x31d   : > { %1931 = vst.msk [vmem:[%s3963_s21 + $0xd8] sm:$0xff] %vm1289_vm3, %v1899_v16  ;;  %v1882_v30 = vmax.f32 %v1850_v29, 0.0 }
 0x31e   : > { %1915 = vst.msk [vmem:[%s3963_s21 + $0x58] sm:$0xff] %vm1289_vm3, %v1883_v21  ;;  %1930 = vst.msk [vmem:[%s3963_s21 + $0xd0] sm:$0xff] %vm1289_vm3, %v1898_v34 }
 0x31f   : > { %1914 = vst.msk [vmem:[%s3963_s21 + $0x50] sm:$0xff] %vm1289_vm3, %v1882_v30 }
 0x33e   : > { %v2160_v20 = vpop.f32.mrb[12].mxu1 }
 0x33f   : > { %v2136_v17 = vpop.f32.mrb[12].mxu0  ;;  %v1830_v25 = vmul.f32 %v2160_v20, %v3949_v28  ;;  %v1775_v63 = vpop.f32.mrb[13].mxu1 }
 0x340   : > { %v1814_v8 = vmul.f32 %v2136_v17, %v3949_v28  ;;  %v1695_v33 = vpop.f32.mrb[13].mxu0  ;;  %v1829_v4 = vmul.f32 %v3949_v28, %v1775_v63 }
 0x341   : > { %v1869_v49 = vadd.f32 %v3954_v31, %v1830_v25  ;;  %v1813_v38 = vmul.f32 %v3949_v28, %v1695_v33 }
 0x342   : > { %v1853_v61 = vadd.f32 %v3954_v31, %v1814_v8  ;;  %v1868_v42 = vadd.f32 %v3954_v31, %v1829_v4 }
 0x343   : > { %v1901_v10 = vmax.f32 %v1869_v49, 0.0  ;;  %v1852_v43 = vadd.f32 %v3954_v31, %v1813_v38 }
 0x344   : > { %v1885_v44 = vmax.f32 %v1853_v61, 0.0  ;;  %v1900_v50 = vmax.f32 %v1868_v42, 0.0 }
 0x345   : > { %1933 = vst.msk [vmem:[%s3963_s21 + $0xe8] sm:$0xff] %vm1289_vm3, %v1901_v10  ;;  %v1884_v24 = vmax.f32 %v1852_v43, 0.0 }
 0x346   : > { %1917 = vst.msk [vmem:[%s3963_s21 + $0x68] sm:$0xff] %vm1289_vm3, %v1885_v44  ;;  %1932 = vst.msk [vmem:[%s3963_s21 + $0xe0] sm:$0xff] %vm1289_vm3, %v1900_v50 }
 0x347   : > { %1916 = vst.msk [vmem:[%s3963_s21 + $0x60] sm:$0xff] %vm1289_vm3, %v1884_v24 }
 0x35a   : > { %v2163_v40 = vpop.f32.mrb[14].mxu1 }
 0x35b   : > { %v2139_v1 = vpop.f32.mrb[14].mxu0  ;;  %v1832_v6 = vmul.f32 %v2163_v40, %v3949_v28  ;;  %v1785_v60 = vpop.f32.mrb[15].mxu1 }
 0x35c   : > { %v1816_v15 = vmul.f32 %v2139_v1, %v3949_v28  ;;  %v1705_v41 = vpop.f32.mrb[15].mxu0  ;;  %v1831_v18 = vmul.f32 %v3949_v28, %v1785_v60 }
 0x35d   : > { %v1871_v52 = vadd.f32 %v3954_v31, %v1832_v6  ;;  %v1815_v26 = vmul.f32 %v3949_v28, %v1705_v41 }
 0x35e   : > { %v1855_v14 = vadd.f32 %v3954_v31, %v1816_v15  ;;  %v1870_v9 = vadd.f32 %v3954_v31, %v1831_v18 }
 0x35f   : > { %v1903_v36 = vmax.f32 %v1871_v52, 0.0  ;;  %v1854_v51 = vadd.f32 %v3954_v31, %v1815_v26 }
 0x360   : > { %v1887_v39 = vmax.f32 %v1855_v14, 0.0  ;;  %v1902_v45 = vmax.f32 %v1870_v9, 0.0 }
 0x361   : > { %1935 = vst.msk [vmem:[%s3963_s21 + $0xf8] sm:$0xff] %vm1289_vm3, %v1903_v36  ;;  %v1886_v58 = vmax.f32 %v1854_v51, 0.0 }
 0x362   : > { %1919 = vst.msk [vmem:[%s3963_s21 + $0x78] sm:$0xff] %vm1289_vm3, %v1887_v39  ;;  %1934 = vst.msk [vmem:[%s3963_s21 + $0xf0] sm:$0xff] %vm1289_vm3, %v1902_v45 }
 0x363   : > { %1918 = vst.msk [vmem:[%s3963_s21 + $0x70] sm:$0xff] %vm1289_vm3, %v1886_v58 }
 0x364 PF: > { %s14_s15 = sadd.s32 1, %s2257_s15  }
 0x365   : > { %p11_p4 = scmp.ge.s32.totalorder %s14_s15, 4  }
 0x367   :  { %13 = sbr.rel (!%p11_p4) target bundleno = 1 (0x1), region = 66 }

// kernel: conv_bn_relu.2
= control target key start
LH: loop header
LB: loop body
LE: loop exit
PB: predicated region body
PF: predicated region fallthrough
CT: control target
= control target key end

     0   :  { %s2243_s12 = smov 0   ;;  %s3795_s0 = inlined_call_operand.vmem [shape: f32[2,18,18,4], index: 0, kind: input, shape index: {}]   ;;  %s3796_s1 = inlined_call_operand.vmem [shape: f32[128,128], index: 1, kind: input, shape index: {}]   ;;  %s3797_s2 = inlined_call_operand.vmem [shape: f32[2,1,128], index: 2, kind: output, shape index: {0}]   ;;  %s3798_s3 = inlined_call_operand.vmem [shape: f32[2,1,128], index: 3, kind: output, shape index: {1}]  }
   0x1 LB: > { %s1952_s13 = sadd.s32 4294967295, %s2213_s12   ;;  %p1956_p0 = scmp.ge.s32.totalorder %s2213_s12, 1  ;;  %s2213_s12 = sphi %s2243_s12, %s14_s12  }
   0x2   : > { %p140_p1 = scmp.lt.s32.totalorder %s2213_s12, 3 }
   0x4   : > { %p141_p2 = pnand %p1956_p0, %p140_p1 }
   0x6   : > { %144 = sbr.rel (%p141_p2) target bundleno = 881 (0x371), region = 28 }
   0xd   : > { %p165_p3 = scmp.lt.s32.totalorder %s1952_s13, 1  ;;  %vm278_vm0 = vcmask 1046528   ;;  %s2215_s18 = smov 4   ;;  %vm455_vm1 = vcmask 1045504   ;;  %vm1234_vm2 = vcmask 31744   ;;  %vm1267_vm3 = vcmask 64512  }
   0xe   : > { %s2216_s19 = smov 8   ;;  %s2217_s20 = smov 12   ;;  %vm1300_vm4 = vcmask 97280   ;;  %vm1333_vm5 = vcmask 130048   ;;  %vm1366_vm6 = vcmask 162816   ;;  %vm1399_vm7 = vcmask 195584  }
   0xf   : > { %s4008_s13 = smov (!%p165_p3, %s1952_s13), 1  ;;  %s2218_s22 = smov 16   ;;  %vm1432_vm8 = vcmask 228352   ;;  %vm1465_vm9 = vcmask 261120   ;;  %vm1498_vm10 = vcmask 293888  }
  0x10   : > { %s2168_s14 = smul.u32 432, %s4008_s13  ;;  %s2219_s27 = smov 20  }
  0x11   : > { %s2220_s5 = smov 24   ;;  %s2221_s6 = smov 28  }
  0x12   : > { %s2257_s17 = scalar_lea.vmem %s3795_s0, %s2168_s14  ;;  %s2222_s7 = smov 32  }
  0x13   : > { %v2260_v0 = vld [vmem:[%s2257_s17 + $0x18] sm:$0xff]  ;;  %v2263_v1 = vld [vmem:[%s2257_s17 + $0x20] sm:$0xff]  ;;  %v2271_v5 = vld [vmem:[%s2257_s17 + $0x8] sm:$0xff]  ;;  %s172_s8 = scalar_lea.vmem %s3797_s2, %s4008_s13  ;;  %s175_s11 = scalar_lea.vmem %s3798_s3, %s4008_s13 }
  0x14   : > { %v2266_v2 = vld [vmem:[%s2257_s17] sm:$0xff]  ;;  %v284_v3 = vrot.slane %v2260_v0, 1  ;;  %v285_v4 = vrot.slane %v2263_v1, 1  ;;  %v2275_v7 = vld [vmem:[%s2257_s17 + $0x28] sm:$0x3]  ;;  %v280_v8 = vrot.slane %v2271_v5, 1 }
  0x15   : > { %v279_v6 = vrot.slane %v2266_v2, 1  ;;  %v287_v9 = vrot.slane %v2275_v7, 1  ;;  %v2280_v10 = vld [vmem:[%s2257_s17 + $0x10] sm:$0x3]  ;;  %v2283_v11 = vld [vmem:[%s2257_s17 + $0x38] sm:$0xff]  ;;  %v2313_v24 = vld [vmem:[%s2257_s17 + $0x48] sm:$0xff] }
  0x16   : > { %v2286_v12 = vsel %vm278_vm0, %v284_v3, %v285_v4  ;;  %v282_v13 = vrot.slane %v2280_v10, 1  ;;  %v2290_v14 = vld [vmem:[%s2257_s17 + $0x40] sm:$0x3]  ;;  %v2293_v15 = vld [vmem:[%s2257_s17 + $0x30] sm:$0xff]  ;;  %v290_v18 = vrot.slane %v2283_v11, 1  ;;  %v294_v29 = vrot.slane %v2313_v24, 1 }
  0x17   : > { %363 = vrot.lane.b32.xlu1 %v2286_v12, %s2215_s18  ;;  %v281_v16 = vsel %vm278_vm0, %v279_v6, %v280_v8  ;;  %v2300_v17 = vsel %vm278_vm0, %v285_v4, %v287_v9  ;;  %v292_v19 = vrot.slane %v2290_v14, 1  ;;  %v289_v21 = vrot.slane %v2293_v15, 1  ;;  %v2307_v22 = vld [vmem:[%s2257_s17 + $0x50] sm:$0xff]  ;;  %v2310_v23 = vld [vmem:[%s2257_s17 + $0x58] sm:$0x3]  ;;  %v2328_v30 = vld [vmem:[%s2257_s17 + $0x68] sm:$0xff] }
  0x18   : > { %359 = vrot.lane.b32.xlu0 %v281_v16, %s2215_s18  ;;  %v283_v20 = vsel %vm278_vm0, %v280_v8, %v282_v13  ;;  %v295_v26 = vrot.slane %v2307_v22, 1  ;;  %v297_v27 = vrot.slane %v2310_v23, 1  ;;  %v2331_v31 = vld [vmem:[%s2257_s17 + $0x70] sm:$0x3]  ;;  %v2334_v32 = vld [vmem:[%s2257_s17 + $0x60] sm:$0xff]  ;;  %v300_v34 = vrot.slane %v2328_v30, 1 }
  0x19   : > { %v2319_v25 = vsel %vm278_vm0, %v290_v18, %v292_v19  ;;  %v2324_v28 = vsel %vm278_vm0, %v289_v21, %v290_v18  ;;  %v302_v35 = vrot.slane %v2331_v31, 1  ;;  %v299_v37 = vrot.slane %v2334_v32, 1  ;;  %v2350_v38 = vld [vmem:[%s2257_s17 + $0x80] sm:$0xff]  ;;  %v2353_v39 = vld [vmem:[%s2257_s17 + $0x88] sm:$0x3]  ;;  %v2356_v40 = vld [vmem:[%s2257_s17 + $0x78] sm:$0xff] }
  0x1a   : > { %v2341_v33 = vsel %vm278_vm0, %v295_v26, %v297_v27  ;;  %v2346_v36 = vsel %vm278_vm0, %v294_v29, %v295_v26  ;;  %v305_v42 = vrot.slane %v2350_v38, 1  ;;  %v307_v43 = vrot.slane %v2353_v39, 1  ;;  %v2372_v46 = vld [vmem:[%s2257_s17 + $0x98] sm:$0xff]  ;;  %v2375_v47 = vld [vmem:[%s2257_s17 + $0xa0] sm:$0x3]  ;;  %v2378_v48 = vld [vmem:[%s2257_s17 + $0x90] sm:$0xff] }
  0x1b   : > { %365 = vrot.lane.b32.xlu1 %v2300_v17, %s2215_s18  ;;  %3889 = vst [vmem:[#allocation2_spill] sm:$0xff] %v2341_v33  ;;  %v2363_v41 = vsel %vm278_vm0, %v300_v34, %v302_v35  ;;  %v2368_v44 = vsel %vm278_vm0, %v299_v37, %v300_v34  ;;  %v304_v45 = vrot.slane %v2356_v40, 1  ;;  %v310_v50 = vrot.slane %v2372_v46, 1  ;;  %v2394_v54 = vld [vmem:[%s2257_s17 + $0xb0] sm:$0xff]  ;;  %v2397_v55 = vld [vmem:[%s2257_s17 + $0xb8] sm:$0x3] }
  0x1c   : > { %361 = vrot.lane.b32.xlu0 %v283_v20, %s2215_s18  ;;  %3890 = vst [vmem:[#allocation3_spill] sm:$0xff] %v2363_v41  ;;  %3891 = vst [vmem:[#allocation4_spill] sm:$0xff] %v2368_v44  ;;  %v2385_v49 = vsel %vm278_vm0, %v305_v42, %v307_v43  ;;  %v312_v51 = vrot.slane %v2375_v47, 1  ;;  %v309_v53 = vrot.slane %v2378_v48, 1  ;;  %v2400_v56 = vld [vmem:[%s2257_s17 + $0xa8] sm:$0xff]  ;;  %v315_v58 = vrot.slane %v2394_v54, 1 }
  0x1d   : > { %3892 = vst [vmem:[#allocation5_spill] sm:$0xff] %v2385_v49  ;;  %v2390_v52 = vsel %vm278_vm0, %v304_v45, %v305_v42  ;;  %v317_v59 = vrot.slane %v2397_v55, 1  ;;  %v314_v61 = vrot.slane %v2400_v56, 1  ;;  %v2416_v62 = vld [vmem:[%s2257_s17 + $0xc8] sm:$0xff]  ;;  %v2419_v63 = vld [vmem:[%s2257_s17 + $0xd0] sm:$0x3] }
  0x1e   : > { %3893 = vst [vmem:[#allocation6_spill] sm:$0xff] %v2390_v52  ;;  %v2407_v57 = vsel %vm278_vm0, %v310_v50, %v312_v51  ;;  %v2412_v60 = vsel %vm278_vm0, %v309_v53, %v310_v50  ;;  %v2422_v3 = vld [vmem:[%s2257_s17 + $0xc0] sm:$0xff]  ;;  %v320_v6 = vrot.slane %v2416_v62, 1  ;;  %v322_v8 = vrot.slane %v2419_v63, 1  ;;  %v2441_v18 = vld [vmem:[%s2257_s17 + $0xe8] sm:$0x3] }
  0x1f   : > { %369 = vrot.lane.b32.xlu1 %v2319_v25, %s2215_s18  ;;  %3894 = vst [vmem:[#allocation7_spill] sm:$0xff] %v2407_v57  ;;  %3895 = vst [vmem:[#allocation8_spill] sm:$0xff] %v2412_v60  ;;  %v2429_v4 = vsel %vm278_vm0, %v315_v58, %v317_v59  ;;  %v2434_v9 = vsel %vm278_vm0, %v314_v61, %v315_v58  ;;  %v319_v13 = vrot.slane %v2422_v3, 1  ;;  %v2438_v16 = vld [vmem:[%s2257_s17 + $0xe0] sm:$0xff]  ;;  %v2444_v19 = vld [vmem:[%s2257_s17 + $0xd8] sm:$0xff]  ;;  %v327_v26 = vrot.slane %v2441_v18, 1 }
  0x20   : > { %367 = vrot.lane.b32.xlu0 %v2324_v28, %s2215_s18  ;;  %3896 = vst [vmem:[#allocation9_spill] sm:$0xff] %v2429_v4  ;;  %3897 = vst [vmem:[#allocation10_spill] sm:$0xff] %v2434_v9  ;;  %v2451_v20 = vsel %vm278_vm0, %v320_v6, %v322_v8  ;;  %v325_v21 = vrot.slane %v2438_v16, 1  ;;  %v324_v29 = vrot.slane %v2444_v19, 1  ;;  %v2460_v34 = vld [vmem:[%s2257_s17 + $0xf8] sm:$0xff]  ;;  %v2466_v37 = vld [vmem:[%s2257_s17 + $0xf0] sm:$0xff] }
  0x21   : > { %3898 = vst [vmem:[#allocation11_spill] sm:$0xff] %v2451_v20  ;;  %v2456_v27 = vsel %vm278_vm0, %v319_v13, %v320_v6  ;;  %v2463_v35 = vld [vmem:[%s2257_s17 + $0x100] sm:$0x3]  ;;  %v330_v43 = vrot.slane %v2460_v34, 1  ;;  %v329_v51 = vrot.slane %v2466_v37, 1  ;;  %v2482_v53 = vld [vmem:[%s2257_s17 + $0x110] sm:$0xff] }
  0x22   : > { %3899 = vst [vmem:[#allocation12_spill] sm:$0xff] %v2456_v27  ;;  %v2473_v42 = vsel %vm278_vm0, %v325_v21, %v327_v26  ;;  %v332_v45 = vrot.slane %v2463_v35, 1  ;;  %v2478_v50 = vsel %vm278_vm0, %v324_v29, %v325_v21  ;;  %v2485_v58 = vld [vmem:[%s2257_s17 + $0x118] sm:$0x3]  ;;  %v2488_v59 = vld [vmem:[%s2257_s17 + $0x108] sm:$0xff]  ;;  %v335_v6 = vrot.slane %v2482_v53, 1 }
  0x23   : > { %373 = vrot.lane.b32.xlu1 %v2341_v33, %s2215_s18  ;;  %3900 = vst [vmem:[#allocation13_spill] sm:$0xff] %v2473_v42  ;;  %3901 = vst [vmem:[#allocation14_spill] sm:$0xff] %v2478_v50  ;;  %v337_v8 = vrot.slane %v2485_v58, 1  ;;  %v2500_v13 = vsel %vm278_vm0, %v329_v51, %v330_v43  ;;  %v334_v21 = vrot.slane %v2488_v59, 1  ;;  %v2504_v26 = vld [vmem:[%s2257_s17 + $0x128] sm:$0xff] }
  0x24   : > { %371 = vrot.lane.b32.xlu0 %v2346_v36, %s2215_s18  ;;  %v2495_v61 = vsel %vm278_vm0, %v330_v43, %v332_v45  ;;  %3903 = vst [vmem:[#allocation16_spill] sm:$0xff] %v2500_v13  ;;  %v2507_v29 = vld [vmem:[%s2257_s17 + $0x130] sm:$0x3]  ;;  %v340_v43 = vrot.slane %v2504_v26, 1 }
  0x25   : > { %3902 = vst [vmem:[#allocation15_spill] sm:$0xff] %v2495_v61  ;;  %v2517_v45 = vsel %vm278_vm0, %v335_v6, %v337_v8  ;;  %v342_v51 = vrot.slane %v2507_v29, 1 }
  0x26   : > { %3904 = vst [vmem:[#allocation17_spill] sm:$0xff] %v2517_v45 }
  0x27   : > { %377 = vrot.lane.b32.xlu1 %v2363_v41, %s2215_s18  ;;  %v2539_v8 = vsel %vm278_vm0, %v340_v43, %v342_v51  ;;  %v2573_v41 = vld [vmem:[%s2257_s17 + $0x178] sm:$0x3] }
  0x28   : > { %375 = vrot.lane.b32.xlu0 %v2368_v44, %s2215_s18  ;;  %3906 = vst [vmem:[#allocation19_spill] sm:$0xff] %v2539_v8 }
  0x2b   : > { %381 = vrot.lane.b32.xlu1 %v2385_v49, %s2215_s18 }
  0x2c   : > { %379 = vrot.lane.b32.xlu0 %v2390_v52, %s2215_s18  ;;  %v2570_v52 = vld [vmem:[%s2257_s17 + $0x170] sm:$0xff] }
  0x2f   : > { %385 = vrot.lane.b32.xlu1 %v2407_v57, %s2215_s18  ;;  %v2548_v57 = vld [vmem:[%s2257_s17 + $0x158] sm:$0xff] }
  0x30   : > { %383 = vrot.lane.b32.xlu0 %v2412_v60, %s2215_s18 }
  0x33   : > { %389 = vrot.lane.b32.xlu1 %v2429_v4, %s2215_s18 }
  0x34   : > { %387 = vrot.lane.b32.xlu0 %v2434_v9, %s2215_s18 }
  0x37   : > { %393 = vrot.lane.b32.xlu1 %v2451_v20, %s2215_s18 }
  0x38   : > { %391 = vrot.lane.b32.xlu0 %v2456_v27, %s2215_s18  ;;  %v2526_v27 = vld [vmem:[%s2257_s17 + $0x140] sm:$0xff] }
  0x3b   : > { %397 = vrot.lane.b32.xlu1 %v2473_v42, %s2215_s18  ;;  %v2510_v42 = vld [vmem:[%s2257_s17 + $0x120] sm:$0xff] }
  0x3c   : > { %395 = vrot.lane.b32.xlu0 %v2478_v50, %s2215_s18  ;;  %v2522_v50 = vsel %vm278_vm0, %v334_v21, %v335_v6  ;;  %v339_v20 = vrot.slane %v2510_v42, 1  ;;  %v345_v6 = vrot.slane %v2526_v27, 1 }
  0x3d   : > { %3905 = vst [vmem:[#allocation18_spill] sm:$0xff] %v2522_v50 }
  0x3e   : > { %v2544_v4 = vsel %vm278_vm0, %v339_v20, %v340_v43  ;;  %v350_v20 = vrot.slane %v2548_v57, 1 }
  0x3f   : > { %401 = vrot.lane.b32.xlu1 %v2495_v61, %s2215_s18  ;;  %v2529_v61 = vld [vmem:[%s2257_s17 + $0x148] sm:$0x3]  ;;  %3907 = vst [vmem:[#allocation20_spill] sm:$0xff] %v2544_v4 }
  0x40   : > { %399 = vrot.lane.b32.xlu0 %v2500_v13, %s2215_s18  ;;  %v2532_v13 = vld [vmem:[%s2257_s17 + $0x138] sm:$0xff]  ;;  %v347_v21 = vrot.slane %v2529_v61, 1 }
  0x41   : > { %v344_v9 = vrot.slane %v2532_v13, 1 }
  0x42   : > { %v2561_v51 = vsel %vm278_vm0, %v345_v6, %v347_v21 }
  0x43   : > { %405 = vrot.lane.b32.xlu1 %v2517_v45, %s2215_s18  ;;  %v2551_v45 = vld [vmem:[%s2257_s17 + $0x160] sm:$0x3]  ;;  %3908 = vst [vmem:[#allocation21_spill] sm:$0xff] %v2561_v51  ;;  %v2566_v60 = vsel %vm278_vm0, %v344_v9, %v345_v6  ;;  %v355_v9 = vrot.slane %v2570_v52, 1  ;;  %v357_v6 = vrot.slane %v2573_v41, 1 }
  0x44   : > { %403 = vrot.lane.b32.xlu0 %v2522_v50, %s2215_s18  ;;  %v2554_v50 = vld [vmem:[%s2257_s17 + $0x150] sm:$0xff]  ;;  %v352_v43 = vrot.slane %v2551_v45, 1  ;;  %3909 = vst [vmem:[#allocation22_spill] sm:$0xff] %v2566_v60 }
  0x45   : > { %v349_v49 = vrot.slane %v2554_v50, 1 }
  0x46   : > { %v2583_v21 = vsel %vm278_vm0, %v350_v20, %v352_v43  ;;  %v457_v43 = vrot.slane %v2271_v5, 2  ;;  %v464_v5 = vrot.slane %v2275_v7, 2  ;;  %v466_v7 = vrot.slane %v2293_v15, 2 }
  0x47   : > { %409 = vrot.lane.b32.xlu1 %v2539_v8, %s2215_s18  ;;  %v2576_v8 = vld [vmem:[%s2257_s17 + $0x168] sm:$0xff]  ;;  %3910 = vst [vmem:[#allocation23_spill] sm:$0xff] %v2583_v21 }
  0x48   : > { %407 = vrot.lane.b32.xlu0 %v2544_v4, %s2215_s18  ;;  %v2588_v4 = vsel %vm278_vm0, %v349_v49, %v350_v20  ;;  %v354_v44 = vrot.slane %v2576_v8, 1  ;;  %v456_v49 = vrot.slane %v2266_v2, 2 }
  0x49   : > { %3911 = vst [vmem:[#allocation24_spill] sm:$0xff] %v2588_v4 }
  0x4a   : > { %v2601_v33 = vsel %vm278_vm0, %v354_v44, %v355_v9  ;;  %v461_v44 = vrot.slane %v2260_v0, 2 }
  0x4b   : > { %413 = vrot.lane.b32.xlu1 %v2561_v51, %s2215_s18  ;;  %v2596_v51 = vsel %vm278_vm0, %v355_v9, %v357_v6  ;;  %3913 = vst [vmem:[#allocation26_spill] sm:$0xff] %v2601_v33  ;;  %v462_v6 = vrot.slane %v2263_v1, 2  ;;  %v467_v9 = vrot.slane %v2283_v11, 2 }
  0x4c   : > { %411 = vrot.lane.b32.xlu0 %v2566_v60, %s2215_s18  ;;  %3912 = vst [vmem:[#allocation25_spill] sm:$0xff] %v2596_v51  ;;  %v459_v60 = vrot.slane %v2280_v10, 2  ;;  %v458_v10 = vsel %vm455_vm1, %v456_v49, %v457_v43  ;;  %v472_v49 = vrot.slane %v2307_v22, 2 }
  0x4d   : > { %v2616_v2 = vsel %vm455_vm1, %v462_v6, %v464_v5 }
  0x4e   : > { %v460_v20 = vsel %vm455_vm1, %v457_v43, %v459_v60  ;;  %v469_v60 = vrot.slane %v2290_v14, 2  ;;  %v2634_v14 = vsel %vm455_vm1, %v466_v7, %v467_v9  ;;  %v482_v7 = vrot.slane %v2350_v38, 2 }
  0x4f   : > { %417 = vrot.lane.b32.xlu1 %v2583_v21, %s2215_s18  ;;  %v494_v21 = vrot.slane %v2397_v55, 2 }
  0x50   : > { %415 = vrot.lane.b32.xlu0 %v2588_v4, %s2215_s18  ;;  %v2629_v43 = vsel %vm455_vm1, %v467_v9, %v469_v60  ;;  %v476_v9 = vrot.slane %v2334_v32, 2  ;;  %v499_v4 = vrot.slane %v2419_v63, 2 }
  0x53   : > { %421 = vrot.lane.b32.xlu1 %v2596_v51, %s2215_s18  ;;  %v2621_v51 = vsel %vm455_vm1, %v461_v44, %v462_v6  ;;  %v471_v6 = vrot.slane %v2313_v24, 2  ;;  %v479_v44 = vrot.slane %v2331_v31, 2 }
  0x54   : > { %419 = vrot.lane.b32.xlu0 %v2601_v33, %s2215_s18  ;;  %v489_v33 = vrot.slane %v2375_v47, 2 }
  0x57   : > { %538 = vrot.lane.b32.xlu1 %v460_v20, %s2216_s19  ;;  %v474_v20 = vrot.slane %v2310_v23, 2  ;;  %v2647_v23 = vsel %vm455_vm1, %v471_v6, %v472_v49 }
  0x58   : > { %536 = vrot.lane.b32.xlu0 %v458_v10, %s2216_s19  ;;  %v477_v10 = vrot.slane %v2328_v30, 2 }
  0x59   : > { %v2642_v5 = vsel %vm455_vm1, %v472_v49, %v474_v20  ;;  %v484_v20 = vrot.slane %v2353_v39, 2  ;;  %v481_v49 = vrot.slane %v2356_v40, 2 }
  0x5a   : > { %v2655_v60 = vsel %vm455_vm1, %v477_v10, %v479_v44  ;;  %v2660_v31 = vsel %vm455_vm1, %v476_v9, %v477_v10  ;;  %v487_v44 = vrot.slane %v2372_v46, 2  ;;  %v486_v10 = vrot.slane %v2378_v48, 2 }
  0x5b   : > { %542 = vrot.lane.b32.xlu1 %v2616_v2, %s2216_s19  ;;  %v2668_v6 = vsel %vm455_vm1, %v482_v7, %v484_v20  ;;  %v2673_v39 = vsel %vm455_vm1, %v481_v49, %v482_v7  ;;  %v492_v20 = vrot.slane %v2394_v54, 2  ;;  %v491_v7 = vrot.slane %v2400_v56, 2 }
  0x5c   : > { %540 = vrot.lane.b32.xlu0 %v2621_v51, %s2216_s19  ;;  %v2681_v9 = vsel %vm455_vm1, %v487_v44, %v489_v33  ;;  %v2686_v47 = vsel %vm455_vm1, %v486_v10, %v487_v44  ;;  %v497_v33 = vrot.slane %v2416_v62, 2  ;;  %v496_v44 = vrot.slane %v2422_v3, 2 }
  0x5d   : > { %3914 = vst [vmem:[#allocation27_spill] sm:$0xff] %v2681_v9  ;;  %3915 = vst [vmem:[#allocation28_spill] sm:$0xff] %v2686_v47  ;;  %v2694_v49 = vsel %vm455_vm1, %v492_v20, %v494_v21  ;;  %v2699_v55 = vsel %vm455_vm1, %v491_v7, %v492_v20  ;;  %v502_v21 = vrot.slane %v2438_v16, 2  ;;  %v501_v20 = vrot.slane %v2444_v19, 2 }
  0x5e   : > { %3916 = vst [vmem:[#allocation29_spill] sm:$0xff] %v2694_v49  ;;  %3917 = vst [vmem:[#allocation30_spill] sm:$0xff] %v2699_v55  ;;  %v2707_v10 = vsel %vm455_vm1, %v497_v33, %v499_v4  ;;  %v2712_v63 = vsel %vm455_vm1, %v496_v44, %v497_v33  ;;  %v507_v4 = vrot.slane %v2460_v34, 2  ;;  %v506_v33 = vrot.slane %v2466_v37, 2 }
  0x5f   : > { %546 = vrot.lane.b32.xlu1 %v2629_v43, %s2216_s19  ;;  %3918 = vst [vmem:[#allocation31_spill] sm:$0xff] %v2707_v10  ;;  %3919 = vst [vmem:[#allocation32_spill] sm:$0xff] %v2712_v63 }
  0x60   : > { %544 = vrot.lane.b32.xlu0 %v2634_v14, %s2216_s19 }
  0x63   : > { %550 = vrot.lane.b32.xlu1 %v2642_v5, %s2216_s19 }
  0x64   : > { %548 = vrot.lane.b32.xlu0 %v2647_v23, %s2216_s19 }
  0x67   : > { %554 = vrot.lane.b32.xlu1 %v2655_v60, %s2216_s19 }
  0x68   : > { %552 = vrot.lane.b32.xlu0 %v2660_v31, %s2216_s19 }
  0x6b   : > { %558 = vrot.lane.b32.xlu1 %v2668_v6, %s2216_s19 }
  0x6c   : > { %556 = vrot.lane.b32.xlu0 %v2673_v39, %s2216_s19 }
  0x6f   : > { %562 = vrot.lane.b32.xlu1 %v2681_v9, %s2216_s19  ;;  %v504_v9 = vrot.slane %v2441_v18, 2  ;;  %v2725_v18 = vsel %vm455_vm1, %v501_v20, %v502_v21 }
  0x70   : > { %560 = vrot.lane.b32.xlu0 %v2686_v47, %s2216_s19  ;;  %3921 = vst [vmem:[#allocation34_spill] sm:$0xff] %v2725_v18  ;;  %v1545_v47 = vld [vmem:[%s3796_s1 + $0x70] sm:$0xff] }
  0x71   : > { %v2720_v7 = vsel %vm455_vm1, %v502_v21, %v504_v9  ;;  %v512_v9 = vrot.slane %v2482_v53, 2  ;;  %v511_v21 = vrot.slane %v2488_v59, 2 }
  0x72   : > { %3920 = vst [vmem:[#allocation33_spill] sm:$0xff] %v2720_v7 }
  0x73   : > { %566 = vrot.lane.b32.xlu1 %v2694_v49, %s2216_s19  ;;  %v509_v49 = vrot.slane %v2463_v35, 2  ;;  %v2738_v35 = vsel %vm455_vm1, %v506_v33, %v507_v4 }
  0x74   : > { %564 = vrot.lane.b32.xlu0 %v2699_v55, %s2216_s19  ;;  %3923 = vst [vmem:[#allocation36_spill] sm:$0xff] %v2738_v35  ;;  %v1543_v55 = vld [vmem:[%s3796_s1 + $0x60] sm:$0xff] }
  0x75   : > { %v2733_v44 = vsel %vm455_vm1, %v507_v4, %v509_v49  ;;  %v517_v49 = vrot.slane %v2504_v26, 2  ;;  %v516_v4 = vrot.slane %v2510_v42, 2 }
  0x76   : > { %3922 = vst [vmem:[#allocation35_spill] sm:$0xff] %v2733_v44 }
  0x77   : > { %570 = vrot.lane.b32.xlu1 %v2707_v10, %s2216_s19  ;;  %v514_v10 = vrot.slane %v2485_v58, 2  ;;  %v2751_v58 = vsel %vm455_vm1, %v511_v21, %v512_v9 }
  0x78   : > { %568 = vrot.lane.b32.xlu0 %v2712_v63, %s2216_s19  ;;  %3925 = vst [vmem:[#allocation38_spill] sm:$0xff] %v2751_v58  ;;  %v1540_v63 = vld [vmem:[%s3796_s1 + $0x48] sm:$0xff] }
  0x79   : > { %v2746_v20 = vsel %vm455_vm1, %v512_v9, %v514_v10  ;;  %v522_v10 = vrot.slane %v2526_v27, 2  ;;  %v521_v9 = vrot.slane %v2532_v13, 2 }
  0x7a   : > { %3924 = vst [vmem:[#allocation37_spill] sm:$0xff] %v2746_v20 }
  0x7b   : > { %574 = vrot.lane.b32.xlu1 %v2720_v7, %s2216_s19  ;;  %v519_v7 = vrot.slane %v2507_v29, 2  ;;  %v2764_v29 = vsel %vm455_vm1, %v516_v4, %v517_v49 }
  0x7c   : > { %572 = vrot.lane.b32.xlu0 %v2725_v18, %s2216_s19  ;;  %3927 = vst [vmem:[#allocation40_spill] sm:$0xff] %v2764_v29  ;;  %v1537_v18 = vld [vmem:[%s3796_s1 + $0x30] sm:$0xff] }
  0x7d   : > { %v2759_v33 = vsel %vm455_vm1, %v517_v49, %v519_v7  ;;  %v527_v7 = vrot.slane %v2548_v57, 2  ;;  %v526_v49 = vrot.slane %v2554_v50, 2 }
  0x7e   : > { %3926 = vst [vmem:[#allocation39_spill] sm:$0xff] %v2759_v33 }
  0x7f   : > { %578 = vrot.lane.b32.xlu1 %v2733_v44, %s2216_s19  ;;  %v524_v44 = vrot.slane %v2529_v61, 2  ;;  %v2779_v61 = vsel %vm455_vm1, %v521_v9, %v522_v10  ;;  %v531_v9 = vrot.slane %v2576_v8, 2 }
  0x80   : > { %576 = vrot.lane.b32.xlu0 %v2738_v35, %s2216_s19  ;;  %3930 = vst [vmem:[#allocation43_spill] sm:$0xff] %v2779_v61 }
  0x81   : > { %v2772_v21 = vsel %vm455_vm1, %v522_v10, %v524_v44  ;;  %v2796_v10 = vsel %vm455_vm1, %v526_v49, %v527_v7 }
  0x82   : > { %3928 = vst [vmem:[#allocation41_spill] sm:$0xff] %v2772_v21  ;;  %3934 = vst [vmem:[#allocation47_spill] sm:$0xff] %v2796_v10 }
  0x83   : > { %582 = vrot.lane.b32.xlu1 %v2746_v20, %s2216_s19  ;;  %v529_v20 = vrot.slane %v2551_v45, 2  ;;  %v532_v45 = vrot.slane %v2570_v52, 2 }
  0x84   : > { %580 = vrot.lane.b32.xlu0 %v2751_v58, %s2216_s19 }
  0x85   : > { %v2789_v44 = vsel %vm455_vm1, %v527_v7, %v529_v20 }
  0x86   : > { %3932 = vst [vmem:[#allocation45_spill] sm:$0xff] %v2789_v44 }
  0x87   : > { %586 = vrot.lane.b32.xlu1 %v2759_v33, %s2216_s19  ;;  %v534_v33 = vrot.slane %v2573_v41, 2  ;;  %v2811_v41 = vsel %vm455_vm1, %v531_v9, %v532_v45 }
  0x88   : > { %584 = vrot.lane.b32.xlu0 %v2764_v29, %s2216_s19  ;;  %3938 = vst [vmem:[#allocation51_spill] sm:$0xff] %v2811_v41 }
  0x89   : > { %v2776_v58 = vpop.permute.xlu1 %363  ;;  %v2806_v20 = vsel %vm455_vm1, %v532_v45, %v534_v33 }
  0x8a   : > { %3929 = vst [vmem:[#allocation42_spill] sm:$0xff] %v2776_v58  ;;  %v2782_v4 = vpop.permute.xlu0 %359  ;;  %3936 = vst [vmem:[#allocation49_spill] sm:$0xff] %v2806_v20  ;;  %v1539_v58 = vld [vmem:[%s3796_s1 + $0x40] sm:$0xff] }
  0x8b   : > { %3931 = vst [vmem:[#allocation44_spill] sm:$0xff] %v2782_v4  ;;  %590 = vrot.lane.b32.xlu1 %v2772_v21, %s2216_s19  ;;  %v1542_v4 = vld [vmem:[%s3796_s1 + $0x58] sm:$0xff] }
  0x8c   : > { %588 = vrot.lane.b32.xlu0 %v2779_v61, %s2216_s19  ;;  %v1533_v61 = vld [vmem:[%s3796_s1 + $0x10] sm:$0xff] }
  0x8d   : > { %v2793_v29 = vpop.permute.xlu1 %365 }
  0x8e   : > { %3933 = vst [vmem:[#allocation46_spill] sm:$0xff] %v2793_v29  ;;  %v2799_v35 = vpop.permute.xlu0 %361  ;;  %v1538_v29 = vld [vmem:[%s3796_s1 + $0x38] sm:$0xff] }
  0x8f   : > { %3935 = vst [vmem:[#allocation48_spill] sm:$0xff] %v2799_v35  ;;  %594 = vrot.lane.b32.xlu1 %v2789_v44, %s2216_s19  ;;  %v1541_v35 = vld [vmem:[%s3796_s1 + $0x50] sm:$0xff] }
  0x90   : > { %592 = vrot.lane.b32.xlu0 %v2796_v10, %s2216_s19 }
  0x91   : > { %v2808_v21 = vpop.permute.xlu1 %369 }
  0x92   : > { %3937 = vst [vmem:[#allocation50_spill] sm:$0xff] %v2808_v21  ;;  %v2813_v7 = vpop.permute.xlu0 %367  ;;  %v1535_v21 = vld [vmem:[%s3796_s1 + $0x20] sm:$0xff] }
  0x93   : > { %3939 = vst [vmem:[#allocation52_spill] sm:$0xff] %v2813_v7  ;;  %598 = vrot.lane.b32.xlu1 %v2806_v20, %s2216_s19  ;;  %v1531_v20 = vld [vmem:[%s3796_s1] sm:$0xff]  ;;  %v1536_v7 = vld [vmem:[%s3796_s1 + $0x28] sm:$0xff] }
  0x94   : > { %596 = vrot.lane.b32.xlu0 %v2811_v41, %s2216_s19 }
  0x95   : > { %v2819_v49 = vpop.permute.xlu1 %373 }
  0x96   : > { %3940 = vst [vmem:[#allocation53_spill] sm:$0xff] %v2819_v49  ;;  %v2821_v44 = vpop.permute.xlu0 %371  ;;  %v1534_v49 = vld [vmem:[%s3796_s1 + $0x18] sm:$0xff] }
  0x97   : > { %3941 = vst [vmem:[#allocation54_spill] sm:$0xff] %v2821_v44  ;;  %636 = vrot.lane.b32.xlu1 %v2263_v1, %s2217_s20 }
  0x98   : > { %634 = vrot.lane.b32.xlu0 %v2260_v0, %s2217_s20  ;;  %v1532_v0 = vld [vmem:[%s3796_s1 + $0x8] sm:$0xff] }
  0x99   : > { %v2827_v33 = vpop.permute.xlu1 %377  ;;  %v2120_v41 = vpack.c.bf16 %v1532_v0, %v1531_v20  ;;  %v2124_v0 = vpack.c.bf16 %v1534_v49, %v1533_v61 }
  0x9a   : > { %v2829_v45 = vpop.permute.xlu0 %375 }
  0x9b   : > { %640 = vrot.lane.b32.xlu1 %v2283_v11, %s2217_s20  ;;  %2121 = vmatprep.subr.bf16.mxu0 %v2120_v41 }
  0x9c   : > { %638 = vrot.lane.b32.xlu0 %v2293_v15, %s2217_s20  ;;  %2123 = vmatpush3.bf16.msra.mxu0 %v2120_v41 }
  0x9d   : > { %v2835_v9 = vpop.permute.xlu1 %381  ;;  %2152 = vmatprep.subr.bf16.mxu1 %v2120_v41  ;;  %2125 = vmatprep.subr.bf16.mxu0 %v2124_v0 }
  0x9e   : > { %v2843_v1 = vpop.permute.xlu0 %379  ;;  %2160 = vmatpush3.bf16.msra.mxu1 %v2120_v41  ;;  %v2128_v41 = vpack.c.bf16 %v1536_v7, %v1535_v21  ;;  %v2132_v7 = vpack.c.bf16 %v1538_v29, %v1537_v18  ;;  %v2136_v29 = vpack.c.bf16 %v1540_v63, %v1539_v58  ;;  %v2140_v58 = vpack.c.bf16 %v1542_v4, %v1541_v35  ;;  %v1544_v35 = vld [vmem:[%s3796_s1 + $0x68] sm:$0xff] }
  0x9f   : > { %644 = vrot.lane.b32.xlu1 %v2307_v22, %s2217_s20  ;;  %2153 = vmatprep.subr.bf16.mxu1 %v2124_v0 }
  0xa0   : > { %642 = vrot.lane.b32.xlu0 %v2313_v24, %s2217_s20  ;;  %2127 = vmatpush3.bf16.msra.mxu0 %v2124_v0 }
  0xa1   : > { %v2849_v10 = vpop.permute.xlu1 %385  ;;  %2129 = vmatprep.subr.bf16.mxu0 %v2128_v41 }
  0xa2   : > { %v2857_v20 = vpop.permute.xlu0 %383  ;;  %2161 = vmatpush3.bf16.msra.mxu1 %v2124_v0 }
  0xa3   : > { %648 = vrot.lane.b32.xlu1 %v2328_v30, %s2217_s20  ;;  %2154 = vmatprep.subr.bf16.mxu1 %v2128_v41 }
  0xa4   : > { %646 = vrot.lane.b32.xlu0 %v2334_v32, %s2217_s20  ;;  %2131 = vmatpush3.bf16.msra.mxu0 %v2128_v41 }
  0xa5   : > { %v2863_v44 = vpop.permute.xlu1 %389  ;;  %2133 = vmatprep.subr.bf16.mxu0 %v2132_v7 }
  0xa6   : > { %v2871_v61 = vpop.permute.xlu0 %387  ;;  %2162 = vmatpush3.bf16.msra.mxu1 %v2128_v41 }
  0xa7   : > { %652 = vrot.lane.b32.xlu1 %v2350_v38, %s2217_s20  ;;  %2155 = vmatprep.subr.bf16.mxu1 %v2132_v7 }
  0xa8   : > { %650 = vrot.lane.b32.xlu0 %v2356_v40, %s2217_s20  ;;  %2135 = vmatpush3.bf16.msra.mxu0 %v2132_v7 }
  0xa9   : > { %v2877_v49 = vpop.permute.xlu1 %393  ;;  %2137 = vmatprep.subr.bf16.mxu0 %v2136_v29 }
  0xaa   : > { %v2885_v21 = vpop.permute.xlu0 %391  ;;  %2163 = vmatpush3.bf16.msra.mxu1 %v2132_v7 }
  0xab   : > { %656 = vrot.lane.b32.xlu1 %v2372_v46, %s2217_s20  ;;  %2156 = vmatprep.subr.bf16.mxu1 %v2136_v29 }
  0xac   : > { %654 = vrot.lane.b32.xlu0 %v2378_v48, %s2217_s20  ;;  %2139 = vmatpush3.bf16.msra.mxu0 %v2136_v29 }
  0xad   : > { %v2891_v0 = vpop.permute.xlu1 %397  ;;  %2141 = vmatprep.subr.bf16.mxu0 %v2140_v58 }
  0xae   : > { %v2899_v18 = vpop.permute.xlu0 %395  ;;  %2164 = vmatpush3.bf16.msra.mxu1 %v2136_v29  ;;  %v2144_v29 = vpack.c.bf16 %v1544_v35, %v1543_v55  ;;  %v1546_v55 = vld [vmem:[%s3796_s1 + $0x78] sm:$0xff] }
  0xaf   : > { %660 = vrot.lane.b32.xlu1 %v2394_v54, %s2217_s20  ;;  %2157 = vmatprep.subr.bf16.mxu1 %v2140_v58  ;;  %v2148_v35 = vpack.c.bf16 %v1546_v55, %v1545_v47 }
  0xb0   : > { %658 = vrot.lane.b32.xlu0 %v2400_v56, %s2217_s20  ;;  %2143 = vmatpush3.bf16.msra.mxu0 %v2140_v58 }
  0xb1   : > { %v2905_v41 = vpop.permute.xlu1 %401  ;;  %2145 = vmatprep.subr.bf16.mxu0 %v2144_v29 }
  0xb2   : > { %v2913_v63 = vpop.permute.xlu0 %399  ;;  %2165 = vmatpush3.bf16.msra.mxu1 %v2140_v58 }
  0xb3   : > { %736 = vrot.lane.b32.xlu1 %v2286_v12, %s2218_s22  ;;  %2158 = vmatprep.subr.bf16.mxu1 %v2144_v29 }
  0xb4   : > { %662 = vrot.lane.b32.xlu0 %v2422_v3, %s2217_s20  ;;  %2147 = vmatpush3.bf16.msra.mxu0 %v2144_v29 }
  0xb5   : > { %v2919_v7 = vpop.permute.xlu1 %405  ;;  %2149 = vmatprep.subr.bf16.mxu0 %v2148_v35 }
  0xb6   : > { %v2927_v4 = vpop.permute.xlu0 %403  ;;  %2166 = vmatpush3.bf16.msra.mxu1 %v2144_v29 }
  0xb7   : > { %837 = vrot.lane.b32.xlu1 %v2621_v51, %s2219_s27  ;;  %2159 = vmatprep.subr.bf16.mxu1 %v2148_v35 }
  0xb8   : > { %738 = vrot.lane.b32.xlu0 %v2300_v17, %s2218_s22  ;;  %2151 = vmatpush3.bf16.msra.mxu0 %v2148_v35 }
  0xb9   : > { %v2933_v12 = vpop.permute.xlu1 %409 }
  0xba   : > { %v2941_v58 = vpop.permute.xlu0 %407  ;;  %2167 = vmatpush3.bf16.msra.mxu1 %v2148_v35 }
  0xbb   : > { %935 = vrot.lane.b32.xlu1 %v2293_v15, %s2220_s5 }
  0xbc   : > { %839 = vrot.lane.b32.xlu0 %v2616_v2, %s2219_s27 }
  0xbd   : > { %v2947_v17 = vpop.permute.xlu1 %413 }
  0xbe   : > { %v2949_v51 = vpop.permute.xlu0 %411 }
  0xbf   : > { %1037 = vrot.lane.b32.xlu1 %v2324_v28, %s2221_s6 }
  0xc0   : > { %937 = vrot.lane.b32.xlu0 %v2283_v11, %s2220_s5 }
  0xc1   : > { %v2955_v47 = vpop.permute.xlu1 %417 }
  0xc2   : > { %v2957_v15 = vpop.permute.xlu0 %415 }
  0xc3   : > { %1039 = vrot.lane.b32.xlu1 %v2319_v25, %s2221_s6 }
  0xc4   : > { %740 = vrot.lane.b32.xlu0 %v2324_v28, %s2218_s22 }
  0xc5   : > { %v2963_v2 = vpop.permute.xlu1 %421 }
  0xc6   : > { %v2965_v29 = vpop.permute.xlu0 %419 }
  0xc7   : > { %742 = vrot.lane.b32.xlu1 %v2319_v25, %s2218_s22 }
  0xc8   : > { %1138 = vrot.lane.b32.xlu0 %v2634_v14, %s2222_s7 }
  0xc9   : > { %v2971_v11 = vpop.permute.xlu1 %538 }
  0xca   : > { %3942 = vst [vmem:[#allocation55_spill] sm:$0xff] %v2971_v11  ;;  %v2973_v55 = vpop.permute.xlu0 %536 }
  0xcb   : > { %1140 = vrot.lane.b32.xlu1 %v2629_v43, %s2222_s7 }
  0xcc   : > { %841 = vrot.lane.b32.xlu0 %v2634_v14, %s2219_s27 }
  0xcd   : > { %v2979_v28 = vpop.permute.xlu1 %542 }
  0xce   : > { %3943 = vst [vmem:[#allocation56_spill] sm:$0xff] %v2979_v28  ;;  %v2981_v35 = vpop.permute.xlu0 %540 }
  0xcf   : > { %3944 = vst [vmem:[#allocation57_spill] sm:$0xff] %v2981_v35  ;;  %939 = vrot.lane.b32.xlu1 %v2313_v24, %s2220_s5  ;;  %v3948_v35 = vld [vmem:[#allocation2_spill] sm:$0xff]  ;;  %v1244_v24 = vsel %vm1234_vm2, %v2328_v30, %v2827_v33 }
  0xd0   : > { %843 = vrot.lane.b32.xlu0 %v2629_v43, %s2219_s27 }
  0xd1   : > { %v2987_v25 = vpop.permute.xlu1 %546 }
  0xd2   : > { %3945 = vst [vmem:[#allocation58_spill] sm:$0xff] %v2987_v25  ;;  %v2989_v11 = vpop.permute.xlu0 %544 }
  0xd3   : > { %1041 = vrot.lane.b32.xlu1 %v2346_v36, %s2221_s6 }
  0xd4   : > { %941 = vrot.lane.b32.xlu0 %v2307_v22, %s2220_s5  ;;  %v1243_v22 = vsel %vm1234_vm2, %v2334_v32, %v2829_v45  ;;  %v1245_v45 = vsel %vm1234_vm2, %v2356_v40, %v2843_v1  ;;  %v1247_v1 = vsel %vm1234_vm2, %v2378_v48, %v2857_v20  ;;  %v1249_v20 = vsel %vm1234_vm2, %v2400_v56, %v2871_v61 }
  0xd5   : > { %v2995_v14 = vpop.permute.xlu1 %550  ;;  %v1251_v61 = vsel %vm1234_vm2, %v2422_v3, %v2885_v21  ;;  %v1253_v21 = vsel %vm1234_vm2, %v2444_v19, %v2899_v18  ;;  %v1255_v19 = vsel %vm1234_vm2, %v2466_v37, %v2913_v63  ;;  %v1257_v37 = vsel %vm1234_vm2, %v2488_v59, %v2927_v4 }
  0xd6   : > { %3946 = vst [vmem:[#allocation59_spill] sm:$0xff] %v2995_v14  ;;  %v2997_v28 = vpop.permute.xlu0 %548  ;;  %v1259_v59 = vsel %vm1234_vm2, %v2510_v42, %v2941_v58  ;;  %v1261_v42 = vsel %vm1234_vm2, %v2532_v13, %v2949_v51  ;;  %v1263_v13 = vsel %vm1234_vm2, %v2554_v50, %v2957_v15  ;;  %v1265_v50 = vsel %vm1234_vm2, %v2576_v8, %v2965_v29  ;;  %v3953_v29 = vld [vmem:[#allocation8_spill] sm:$0xff] }
  0xd7   : > { %3947 = vst [vmem:[#allocation60_spill] sm:$0xff] %v2997_v28  ;;  %1043 = vrot.lane.b32.xlu1 %v3948_v35, %s2221_s6 }
  0xd8   : > { %744 = vrot.lane.b32.xlu0 %v2346_v36, %s2218_s22  ;;  %v1246_v36 = vsel %vm1234_vm2, %v2350_v38, %v2835_v9  ;;  %v1248_v9 = vsel %vm1234_vm2, %v2372_v46, %v2849_v10 }
  0xd9   : > { %v555_v43 = vpop.permute.xlu1 %554 }
  0xda   : > { %v3010_v14 = vsel %vm1267_vm3, %v1244_v24, %v555_v43  ;;  %v553_v28 = vpop.permute.xlu0 %552 }
  0xdb   : > { %v3013_v25 = vsel %vm1267_vm3, %v1243_v22, %v553_v28  ;;  %746 = vrot.lane.b32.xlu1 %v3948_v35, %s2218_s22 }
  0xdc   : > { %1142 = vrot.lane.b32.xlu0 %v2647_v23, %s2222_s7 }
  0xdd   : > { %v559_v33 = vpop.permute.xlu1 %558 }
  0xde   : > { %v3026_v24 = vsel %vm1267_vm3, %v1246_v36, %v559_v33  ;;  %v557_v28 = vpop.permute.xlu0 %556 }
  0xdf   : > { %v3029_v43 = vsel %vm1267_vm3, %v1245_v45, %v557_v28  ;;  %1144 = vrot.lane.b32.xlu1 %v2642_v5, %s2222_s7 }
  0xe0   : > { %845 = vrot.lane.b32.xlu0 %v2647_v23, %s2219_s27  ;;  %v1250_v23 = vsel %vm1234_vm2, %v2394_v54, %v2863_v44 }
  0xe1   : > { %v563_v35 = vpop.permute.xlu1 %562 }
  0xe2   : > { %v3042_v22 = vsel %vm1267_vm3, %v1248_v9, %v563_v35  ;;  %v561_v36 = vpop.permute.xlu0 %560 }
  0xe3   : > { %v3045_v33 = vsel %vm1267_vm3, %v1247_v1, %v561_v36  ;;  %943 = vrot.lane.b32.xlu1 %v2334_v32, %s2220_s5  ;;  %v3949_v32 = vld [vmem:[#allocation4_spill] sm:$0xff] }
  0xe4   : > { %847 = vrot.lane.b32.xlu0 %v2642_v5, %s2219_s27  ;;  %v1252_v5 = vsel %vm1234_vm2, %v2416_v62, %v2877_v49 }
  0xe5   : > { %v567_v10 = vpop.permute.xlu1 %566 }
  0xe6   : > { %v3058_v45 = vsel %vm1267_vm3, %v1250_v23, %v567_v10  ;;  %v565_v28 = vpop.permute.xlu0 %564  ;;  %v3950_v23 = vld [vmem:[#allocation3_spill] sm:$0xff] }
  0xe7   : > { %v3061_v9 = vsel %vm1267_vm3, %v1249_v20, %v565_v28  ;;  %1045 = vrot.lane.b32.xlu1 %v3949_v32, %s2221_s6 }
  0xe8   : > { %945 = vrot.lane.b32.xlu0 %v2328_v30, %s2220_s5  ;;  %v1254_v30 = vsel %vm1234_vm2, %v2438_v16, %v2891_v0  ;;  %v1256_v16 = vsel %vm1234_vm2, %v2460_v34, %v2905_v41  ;;  %v1258_v34 = vsel %vm1234_vm2, %v2482_v53, %v2919_v7  ;;  %v1260_v53 = vsel %vm1234_vm2, %v2504_v26, %v2933_v12 }
  0xe9   : > { %v571_v44 = vpop.permute.xlu1 %570  ;;  %v1262_v26 = vsel %vm1234_vm2, %v2526_v27, %v2947_v17 }
  0xea   : > { %v3074_v35 = vsel %vm1267_vm3, %v1252_v5, %v571_v44  ;;  %v569_v1 = vpop.permute.xlu0 %568 }
  0xeb   : > { %v3077_v36 = vsel %vm1267_vm3, %v1251_v61, %v569_v1  ;;  %1047 = vrot.lane.b32.xlu1 %v3950_v23, %s2221_s6 }
  0xec   : > { %748 = vrot.lane.b32.xlu0 %v3949_v32, %s2218_s22 }
  0xed   : > { %v575_v49 = vpop.permute.xlu1 %574 }
  0xee   : > { %v3090_v10 = vsel %vm1267_vm3, %v1254_v30, %v575_v49  ;;  %v573_v20 = vpop.permute.xlu0 %572  ;;  %v3952_v30 = vld [vmem:[#allocation5_spill] sm:$0xff] }
  0xef   : > { %v3093_v28 = vsel %vm1267_vm3, %v1253_v21, %v573_v20  ;;  %750 = vrot.lane.b32.xlu1 %v3950_v23, %s2218_s22 }
  0xf0   : > { %1146 = vrot.lane.b32.xlu0 %v2660_v31, %s2222_s7 }
  0xf1   : > { %v579_v0 = vpop.permute.xlu1 %578 }
  0xf2   : > { %v3106_v18 = vsel %vm1267_vm3, %v1256_v16, %v579_v0  ;;  %v577_v32 = vpop.permute.xlu0 %576 }
  0xf3   : > { %v3109_v5 = vsel %vm1267_vm3, %v1255_v19, %v577_v32  ;;  %1148 = vrot.lane.b32.xlu1 %v2655_v60, %s2222_s7  ;;  %v3954_v19 = vld [vmem:[#allocation7_spill] sm:$0xff]  ;;  %v3955_v32 = vld [vmem:[#allocation28_spill] sm:$0xff] }
  0xf4   : > { %849 = vrot.lane.b32.xlu0 %v2660_v31, %s2219_s27 }
  0xf5   : > { %v583_v41 = vpop.permute.xlu1 %582 }
  0xf6   : > { %v3122_v63 = vsel %vm1267_vm3, %v1258_v34, %v583_v41  ;;  %v581_v44 = vpop.permute.xlu0 %580  ;;  %v3956_v41 = vld [vmem:[#allocation27_spill] sm:$0xff] }
  0xf7   : > { %v3125_v61 = vsel %vm1267_vm3, %v1257_v37, %v581_v44  ;;  %947 = vrot.lane.b32.xlu1 %v2356_v40, %s2220_s5  ;;  %v3951_v40 = vld [vmem:[#allocation6_spill] sm:$0xff] }
  0xf8   : > { %851 = vrot.lane.b32.xlu0 %v2655_v60, %s2219_s27 }
  0xf9   : > { %v587_v31 = vpop.permute.xlu1 %586 }
  0xfa   : > { %v3138_v7 = vsel %vm1267_vm3, %v1260_v53, %v587_v31  ;;  %v585_v4 = vpop.permute.xlu0 %584 }
  0xfb   : > { %v3141_v1 = vsel %vm1267_vm3, %v1259_v59, %v585_v4  ;;  %1049 = vrot.lane.b32.xlu1 %v3951_v40, %s2221_s6  ;;  %v3957_v59 = vld [vmem:[#allocation10_spill] sm:$0xff] }
  0xfc   : > { %949 = vrot.lane.b32.xlu0 %v2350_v38, %s2220_s5  ;;  %v1264_v38 = vsel %vm1234_vm2, %v2548_v57, %v2955_v47  ;;  %v1266_v57 = vsel %vm1234_vm2, %v2570_v52, %v2963_v2 }
  0xfd   : > { %v591_v60 = vpop.permute.xlu1 %590 }
  0xfe   : > { %v3154_v12 = vsel %vm1267_vm3, %v1262_v26, %v591_v60  ;;  %v589_v58 = vpop.permute.xlu0 %588  ;;  %v3958_v26 = vld [vmem:[#allocation9_spill] sm:$0xff] }
  0xff   : > { %v3157_v23 = vsel %vm1267_vm3, %v1261_v42, %v589_v58  ;;  %1051 = vrot.lane.b32.xlu1 %v3952_v30, %s2221_s6  ;;  %v3959_v42 = vld [vmem:[#allocation30_spill] sm:$0xff] }
 0x100   : > { %752 = vrot.lane.b32.xlu0 %v3951_v40, %s2218_s22 }
 0x101   : > { %v595_v27 = vpop.permute.xlu1 %594 }
 0x102   : > { %v3170_v17 = vsel %vm1267_vm3, %v1264_v38, %v595_v27  ;;  %v593_v51 = vpop.permute.xlu0 %592 }
 0x103   : > { %v3173_v49 = vsel %vm1267_vm3, %v1263_v13, %v593_v51  ;;  %754 = vrot.lane.b32.xlu1 %v3952_v30, %s2218_s22  ;;  %v3960_v30 = vld [vmem:[#allocation29_spill] sm:$0xff]  ;;  %v2185_v13 = vld [vmem:[%s2257_s17] sm:$0xff]  ;;  %v3961_v51 = vld [vmem:[#allocation44_spill] sm:$0xff] }
 0x104   : > { %1150 = vrot.lane.b32.xlu0 %v2673_v39, %s2222_s7 }
 0x105   : > { %v599_v47 = vpop.permute.xlu1 %598 }
 0x106   : > { %v3186_v15 = vsel %vm1267_vm3, %v1266_v57, %v599_v47  ;;  %v597_v21 = vpop.permute.xlu0 %596  ;;  %v1235_v57 = vsel %vm1234_vm2, %v2185_v13, %v3961_v51 }
 0x107   : > { %v3189_v20 = vsel %vm1267_vm3, %v1265_v50, %v597_v21  ;;  %1152 = vrot.lane.b32.xlu1 %v2668_v6, %s2222_s7  ;;  %v1268_v47 = vsel %vm1267_vm3, %v1235_v57, %v2973_v55 }
 0x108   : > { %853 = vrot.lane.b32.xlu0 %v2673_v39, %s2219_s27 }
 0x109   : > { %v3195_v16 = vpop.permute.xlu1 %636 }
 0x10a   : > { %v635_v52 = vpop.permute.xlu0 %634 }
 0x10b   : > { %951 = vrot.lane.b32.xlu1 %v2378_v48, %s2220_s5  ;;  %v1301_v21 = vsel %vm1300_vm4, %v1268_v47, %v635_v52 }
 0x10c   : > { %855 = vrot.lane.b32.xlu0 %v2668_v6, %s2219_s27 }
 0x10d   : > { %v3201_v8 = vpop.permute.xlu1 %640 }
 0x10e   : > { %v3203_v2 = vpop.permute.xlu0 %638 }
 0x10f   : > { %1053 = vrot.lane.b32.xlu1 %v3953_v29, %s2221_s6 }
 0x110   : > { %953 = vrot.lane.b32.xlu0 %v2372_v46, %s2220_s5 }
 0x111   : > { %v3209_v39 = vpop.permute.xlu1 %644 }
 0x112   : > { %v3211_v0 = vpop.permute.xlu0 %642 }
 0x113   : > { %1055 = vrot.lane.b32.xlu1 %v3954_v19, %s2221_s6 }
 0x114   : > { %756 = vrot.lane.b32.xlu0 %v3953_v29, %s2218_s22 }
 0x115   : > { %v3217_v48 = vpop.permute.xlu1 %648 }
 0x116   : > { %v3219_v6 = vpop.permute.xlu0 %646 }
 0x117   : > { %758 = vrot.lane.b32.xlu1 %v3954_v19, %s2218_s22  ;;  %v2186_v19 = vld [vmem:[%s2257_s17 + $0x8] sm:$0xff] }
 0x118   : > { %1154 = vrot.lane.b32.xlu0 %v3955_v32, %s2222_s7 }
 0x119   : > { %v3225_v46 = vpop.permute.xlu1 %652 }
 0x11a   : > { %v3227_v34 = vpop.permute.xlu0 %650 }
 0x11b   : > { %1156 = vrot.lane.b32.xlu1 %v3956_v41, %s2222_s7 }
 0x11c   : > { %857 = vrot.lane.b32.xlu0 %v3955_v32, %s2219_s27  ;;  %v3962_v32 = vld [vmem:[#allocation48_spill] sm:$0xff] }
 0x11d   : > { %v3233_v37 = vpop.permute.xlu1 %656 }
 0x11e   : > { %v3235_v44 = vpop.permute.xlu0 %654 }
 0x11f   : > { %955 = vrot.lane.b32.xlu1 %v2400_v56, %s2220_s5 }
 0x120   : > { %859 = vrot.lane.b32.xlu0 %v3956_v41, %s2219_s27 }
 0x121   : > { %v3241_v53 = vpop.permute.xlu1 %660 }
 0x122   : > { %v3243_v31 = vpop.permute.xlu0 %658 }
 0x123   : > { %1057 = vrot.lane.b32.xlu1 %v3957_v59, %s2221_s6 }
 0x124   : > { %957 = vrot.lane.b32.xlu0 %v2394_v54, %s2220_s5 }
 0x125   : > { %v737_v4 = vpop.permute.xlu1 %736 }
 0x126   : > { %v3249_v40 = vpop.permute.xlu0 %662  ;;  %v1334_v41 = vsel %vm1333_vm5, %v1301_v21, %v737_v4 }
 0x127   : > { %1059 = vrot.lane.b32.xlu1 %v3958_v26, %s2221_s6 }
 0x128   : > { %760 = vrot.lane.b32.xlu0 %v3957_v59, %s2218_s22  ;;  %v3963_v59 = vld [vmem:[#allocation12_spill] sm:$0xff] }
 0x129   : > { %v838_v56 = vpop.permute.xlu1 %837 }
 0x12a   : > { %v739_v60 = vpop.permute.xlu0 %738  ;;  %v1367_v55 = vsel %vm1366_vm6, %v1334_v41, %v838_v56  ;;  %v2187_v41 = vld [vmem:[%s2257_s17 + $0x18] sm:$0xff] }
 0x12b   : > { %762 = vrot.lane.b32.xlu1 %v3958_v26, %s2218_s22  ;;  %v3964_v26 = vld [vmem:[#allocation55_spill] sm:$0xff] }
 0x12c   : > { %1158 = vrot.lane.b32.xlu0 %v3959_v42, %s2222_s7 }
 0x12d   : > { %v936_v58 = vpop.permute.xlu1 %935 }
 0x12e   : > { %v840_v54 = vpop.permute.xlu0 %839 }
 0x12f   : > { %1160 = vrot.lane.b32.xlu1 %v3960_v30, %s2222_s7 }
 0x130   : > { %861 = vrot.lane.b32.xlu0 %v3959_v42, %s2219_s27 }
 0x131   : > { %v1038_v38 = vpop.permute.xlu1 %1037 }
 0x132   : > { %v938_v27 = vpop.permute.xlu0 %937 }
 0x133   : > { %959 = vrot.lane.b32.xlu1 %v2422_v3, %s2220_s5  ;;  %v1236_v3 = vsel %vm1234_vm2, %v2186_v19, %v3962_v32  ;;  %v3966_v19 = vld [vmem:[#allocation11_spill] sm:$0xff] }
 0x134   : > { %863 = vrot.lane.b32.xlu0 %v3960_v30, %s2219_s27  ;;  %v1269_v42 = vsel %vm1267_vm3, %v1236_v3, %v3964_v26  ;;  %v1400_v30 = vsel %vm1399_vm7, %v1367_v55, %v936_v58  ;;  %v3967_v3 = vld [vmem:[#allocation31_spill] sm:$0xff] }
 0x135   : > { %v1040_v50 = vpop.permute.xlu1 %1039  ;;  %v1302_v52 = vsel %vm1300_vm4, %v1269_v42, %v3195_v16  ;;  %v1433_v51 = vsel %vm1432_vm8, %v1400_v30, %v1038_v38  ;;  %v3969_v42 = vld [vmem:[#allocation57_spill] sm:$0xff] }
 0x136   : > { %v741_v29 = vpop.permute.xlu0 %740  ;;  %v1335_v4 = vsel %vm1333_vm5, %v1302_v52, %v739_v60 }
 0x137   : > { %1061 = vrot.lane.b32.xlu1 %v3963_v59, %s2221_s6  ;;  %v1368_v47 = vsel %vm1366_vm6, %v1335_v4, %v840_v54  ;;  %v3965_v54 = vld [vmem:[#allocation32_spill] sm:$0xff] }
 0x138   : > { %961 = vrot.lane.b32.xlu0 %v2416_v62, %s2220_s5  ;;  %v1401_v21 = vsel %vm1399_vm7, %v1368_v47, %v938_v27 }
 0x139   : > { %v743_v13 = vpop.permute.xlu1 %742  ;;  %v1434_v16 = vsel %vm1432_vm8, %v1401_v21, %v1040_v50  ;;  %v2189_v21 = vld [vmem:[%s2257_s17 + $0xd8] sm:$0xff] }
 0x13a   : > { %v1139_v57 = vpop.permute.xlu0 %1138 }
 0x13b   : > { %764 = vrot.lane.b32.xlu1 %v3963_v59, %s2218_s22  ;;  %v1466_v56 = vsel %vm1465_vm9, %v1433_v51, %v1139_v57  ;;  %v3968_v59 = vld [vmem:[#allocation42_spill] sm:$0xff] }
 0x13c   : > { %664 = vrot.lane.b32.xlu0 %v2416_v62, %s2217_s20  ;;  %2072 = vmatprep.mubr.msk.f32.mxu0 %vm1498_vm10, %v1466_v56  ;;  %v1237_v26 = vsel %vm1234_vm2, %v2187_v41, %v3968_v59  ;;  %v2188_v51 = vld [vmem:[%s2257_s17 + $0x20] sm:$0xff] }
 0x13d   : > { %v1141_v60 = vpop.permute.xlu1 %1140  ;;  %v1270_v55 = vsel %vm1267_vm3, %v1237_v26, %v3969_v42  ;;  %v3970_v57 = vld [vmem:[#allocation46_spill] sm:$0xff] }
 0x13e   : > { %v1467_v58 = vsel %vm1465_vm9, %v1434_v16, %v1141_v60  ;;  %v842_v38 = vpop.permute.xlu0 %841  ;;  %v1303_v30 = vsel %vm1300_vm4, %v1270_v55, %v3203_v2  ;;  %v1238_v47 = vsel %vm1234_vm2, %v2188_v51, %v3970_v57  ;;  %v3971_v16 = vld [vmem:[#allocation56_spill] sm:$0xff]  ;;  %v3972_v42 = vld [vmem:[#allocation14_spill] sm:$0xff]  ;;  %v3974_v51 = vld [vmem:[#allocation13_spill] sm:$0xff] }
 0x13f   : > { %1162 = vrot.lane.b32.xlu1 %v3965_v54, %s2222_s7  ;;  %2073 = vmatmul.mubr.msk.f32.vlgmr.msra.gmra.mrb[0].mxu0 %vm1498_vm10, %v1467_v58  ;;  %v1336_v56 = vsel %vm1333_vm5, %v1303_v30, %v741_v29  ;;  %v1271_v60 = vsel %vm1267_vm3, %v1238_v47, %v3971_v16  ;;  %v2190_v55 = vld [vmem:[%s2257_s17 + $0xe0] sm:$0xff]  ;;  %v2191_v47 = vld [vmem:[%s2257_s17 + $0x30] sm:$0xff] }
 0x140   : > { %1063 = vrot.lane.b32.xlu0 %v3966_v19, %s2221_s6  ;;  %v1369_v58 = vsel %vm1366_vm6, %v1336_v56, %v842_v38  ;;  %v1304_v2 = vsel %vm1300_vm4, %v1271_v60, %v3201_v8  ;;  %v3973_v30 = vld [vmem:[#allocation34_spill] sm:$0xff]  ;;  %v3975_v56 = vld [vmem:[#allocation52_spill] sm:$0xff] }
 0x141   : > { %v940_v27 = vpop.permute.xlu1 %939 }
 0x142   : > { %v844_v62 = vpop.permute.xlu0 %843 }
 0x143   : > { %865 = vrot.lane.b32.xlu1 %v3965_v54, %s2219_s27  ;;  %v1402_v54 = vsel %vm1399_vm7, %v1369_v58, %v940_v27 }
 0x144   : > { %766 = vrot.lane.b32.xlu0 %v3966_v19, %s2218_s22 }
 0x145   : > { %v1042_v50 = vpop.permute.xlu1 %1041 }
 0x146   : > { %v942_v32 = vpop.permute.xlu0 %941  ;;  %v1435_v29 = vsel %vm1432_vm8, %v1402_v54, %v1042_v50  ;;  %v2192_v54 = vld [vmem:[%s2257_s17 + $0x38] sm:$0xff] }
 0x147   : > { %867 = vrot.lane.b32.xlu1 %v3967_v3, %s2219_s27 }
 0x148   : > { %1164 = vrot.lane.b32.xlu0 %v3967_v3, %s2222_s7  ;;  %v1337_v3 = vsel %vm1333_vm5, %v1304_v2, %v743_v13 }
 0x149   : > { %v1044_v52 = vpop.permute.xlu1 %1043  ;;  %v1370_v59 = vsel %vm1366_vm6, %v1337_v3, %v844_v62  ;;  %v3976_v3 = vld [vmem:[#allocation50_spill] sm:$0xff] }
 0x14a   : > { %v745_v4 = vpop.permute.xlu0 %744  ;;  %v1403_v38 = vsel %vm1399_vm7, %v1370_v59, %v942_v32  ;;  %v3977_v59 = vld [vmem:[#allocation33_spill] sm:$0xff] }
 0x14b   : > { %666 = vrot.lane.b32.xlu1 %v2189_v21, %s2217_s20  ;;  %v1436_v8 = vsel %vm1432_vm8, %v1403_v38, %v1044_v52 }
 0x14c   : > { %963 = vrot.lane.b32.xlu0 %v2189_v21, %s2220_s5  ;;  %v1239_v21 = vsel %vm1234_vm2, %v2191_v47, %v3975_v56  ;;  %v2194_v47 = vld [vmem:[%s2257_s17 + $0xf8] sm:$0xff] }
 0x14d   : > { %v747_v19 = vpop.permute.xlu1 %746  ;;  %v1272_v16 = vsel %vm1267_vm3, %v1239_v21, %v2989_v11 }
 0x14e   : > { %v1143_v41 = vpop.permute.xlu0 %1142  ;;  %v1305_v58 = vsel %vm1300_vm4, %v1272_v16, %v3211_v0 }
 0x14f   : > { %v1468_v26 = vsel %vm1465_vm9, %v1435_v29, %v1143_v41  ;;  %1065 = vrot.lane.b32.xlu1 %v3972_v42, %s2221_s6  ;;  %v1240_v29 = vsel %vm1234_vm2, %v2192_v54, %v3976_v3  ;;  %v1338_v41 = vsel %vm1333_vm5, %v1305_v58, %v745_v4  ;;  %v2195_v58 = vld [vmem:[%s2257_s17 + $0x48] sm:$0xff]  ;;  %v3981_v54 = vld [vmem:[#allocation54_spill] sm:$0xff] }
 0x150   : > { %965 = vrot.lane.b32.xlu0 %v2190_v55, %s2220_s5  ;;  %2075 = vmatprep.mubr.msk.f32.mxu0 %vm1498_vm10, %v1468_v26  ;;  %v3978_v26 = vld [vmem:[#allocation58_spill] sm:$0xff]  ;;  %v1241_v3 = vsel %vm1234_vm2, %v2195_v58, %v3981_v54  ;;  %v2198_v54 = vld [vmem:[%s2257_s17 + $0x110] sm:$0xff] }
 0x151   : > { %v1145_v13 = vpop.permute.xlu1 %1144  ;;  %v3987_v58 = vld [vmem:[#allocation18_spill] sm:$0xff] }
 0x152   : > { %v1469_v27 = vsel %vm1465_vm9, %v1436_v8, %v1145_v13  ;;  %v846_v50 = vpop.permute.xlu0 %845 }
 0x153   : > { %768 = vrot.lane.b32.xlu1 %v3972_v42, %s2218_s22  ;;  %2076 = vmatmul.mubr.msk.f32.gmra.mrb[2].mxu0 %vm1498_vm10, %v1469_v27  ;;  %v1273_v42 = vsel %vm1267_vm3, %v1240_v29, %v3978_v26  ;;  %v1371_v11 = vsel %vm1366_vm6, %v1338_v41, %v846_v50  ;;  %v2193_v50 = vld [vmem:[%s2257_s17 + $0xf0] sm:$0xff]  ;;  %v3982_v29 = vld [vmem:[#allocation15_spill] sm:$0xff] }
 0x154   : > { %668 = vrot.lane.b32.xlu0 %v2190_v55, %s2217_s20  ;;  %v1306_v0 = vsel %vm1300_vm4, %v1273_v42, %v3209_v39  ;;  %v3983_v41 = vld [vmem:[#allocation60_spill] sm:$0xff] }
 0x155   : > { %v944_v62 = vpop.permute.xlu1 %943  ;;  %v1339_v8 = vsel %vm1333_vm5, %v1306_v0, %v747_v19  ;;  %v2196_v0 = vld [vmem:[%s2257_s17 + $0x50] sm:$0xff] }
 0x156   : > { %v848_v32 = vpop.permute.xlu0 %847  ;;  %v1404_v38 = vsel %vm1399_vm7, %v1371_v11, %v944_v62 }
 0x157   : > { %1166 = vrot.lane.b32.xlu1 %v3973_v30, %s2222_s7  ;;  %v1372_v27 = vsel %vm1366_vm6, %v1339_v8, %v848_v32  ;;  %v3979_v32 = vld [vmem:[#allocation16_spill] sm:$0xff] }
 0x158   : > { %1067 = vrot.lane.b32.xlu0 %v3974_v51, %s2221_s6 }
 0x159   : > { %v1046_v52 = vpop.permute.xlu1 %1045 }
 0x15a   : > { %v946_v57 = vpop.permute.xlu0 %945  ;;  %v1437_v4 = vsel %vm1432_vm8, %v1404_v38, %v1046_v52  ;;  %v3984_v38 = vld [vmem:[#allocation53_spill] sm:$0xff] }
 0x15b   : > { %869 = vrot.lane.b32.xlu1 %v3973_v30, %s2219_s27  ;;  %v1242_v8 = vsel %vm1234_vm2, %v2196_v0, %v3984_v38  ;;  %v3988_v0 = vld [vmem:[#allocation38_spill] sm:$0xff] }
 0x15c   : > { %770 = vrot.lane.b32.xlu0 %v3974_v51, %s2218_s22  ;;  %v1405_v51 = vsel %vm1399_vm7, %v1372_v27, %v946_v57 }
 0x15d   : > { %v1048_v60 = vpop.permute.xlu1 %1047 }
 0x15e   : > { %v749_v2 = vpop.permute.xlu0 %748  ;;  %v1438_v39 = vsel %vm1432_vm8, %v1405_v51, %v1048_v60  ;;  %v3980_v60 = vld [vmem:[#allocation36_spill] sm:$0xff] }
 0x15f   : > { %871 = vrot.lane.b32.xlu1 %v3977_v59, %s2219_s27 }
 0x160   : > { %1168 = vrot.lane.b32.xlu0 %v3977_v59, %s2222_s7  ;;  %v1274_v59 = vsel %vm1267_vm3, %v1241_v3, %v3983_v41 }
 0x161   : > { %v751_v55 = vpop.permute.xlu1 %750  ;;  %v1307_v42 = vsel %vm1300_vm4, %v1274_v59, %v3219_v6  ;;  %v1309_v59 = vsel %vm1300_vm4, %v3013_v25, %v3227_v34 }
 0x162   : > { %v1147_v13 = vpop.permute.xlu0 %1146 }
 0x163   : > { %v1470_v30 = vsel %vm1465_vm9, %v1437_v4, %v1147_v13  ;;  %670 = vrot.lane.b32.xlu1 %v2193_v50, %s2217_s20  ;;  %v1340_v4 = vsel %vm1333_vm5, %v1307_v42, %v749_v2  ;;  %v3985_v13 = vld [vmem:[#allocation59_spill] sm:$0xff] }
 0x164   : > { %967 = vrot.lane.b32.xlu0 %v2193_v50, %s2220_s5  ;;  %2078 = vmatprep.mubr.msk.f32.mxu0 %vm1498_vm10, %v1470_v30  ;;  %v1275_v27 = vsel %vm1267_vm3, %v1242_v8, %v3985_v13  ;;  %v3989_v8 = vld [vmem:[#allocation17_spill] sm:$0xff] }
 0x165   : > { %v1149_v19 = vpop.permute.xlu1 %1148  ;;  %v1308_v6 = vsel %vm1300_vm4, %v1275_v27, %v3217_v48 }
 0x166   : > { %v1471_v62 = vsel %vm1465_vm9, %v1438_v39, %v1149_v19  ;;  %v850_v52 = vpop.permute.xlu0 %849  ;;  %v1341_v2 = vsel %vm1333_vm5, %v1308_v6, %v751_v55 }
 0x167   : > { %1069 = vrot.lane.b32.xlu1 %v3979_v32, %s2221_s6  ;;  %2079 = vmatmul.mubr.msk.f32.gmra.mrb[4].mxu0 %vm1498_vm10, %v1471_v62  ;;  %v1373_v30 = vsel %vm1366_vm6, %v1340_v4, %v850_v52  ;;  %v3986_v52 = vld [vmem:[#allocation35_spill] sm:$0xff]  ;;  %v1310_v4 = vsel %vm1300_vm4, %v3010_v14, %v3225_v46 }
 0x168   : > { %969 = vrot.lane.b32.xlu0 %v2194_v47, %s2220_s5 }
 0x169   : > { %v948_v57 = vpop.permute.xlu1 %947 }
 0x16a   : > { %v852_v56 = vpop.permute.xlu0 %851  ;;  %v1406_v50 = vsel %vm1399_vm7, %v1373_v30, %v948_v57 }
 0x16b   : > { %772 = vrot.lane.b32.xlu1 %v3979_v32, %s2218_s22  ;;  %v1374_v62 = vsel %vm1366_vm6, %v1341_v2, %v852_v56  ;;  %v2197_v56 = vld [vmem:[%s2257_s17 + $0x108] sm:$0xff] }
 0x16c   : > { %672 = vrot.lane.b32.xlu0 %v2194_v47, %s2217_s20 }
 0x16d   : > { %v1050_v21 = vpop.permute.xlu1 %1049 }
 0x16e   : > { %v950_v16 = vpop.permute.xlu0 %949  ;;  %v1439_v39 = vsel %vm1432_vm8, %v1406_v50, %v1050_v21 }
 0x16f   : > { %1170 = vrot.lane.b32.xlu1 %v3980_v60, %s2222_s7  ;;  %v1407_v47 = vsel %vm1399_vm7, %v1374_v62, %v950_v16 }
 0x170   : > { %1071 = vrot.lane.b32.xlu0 %v3982_v29, %s2221_s6 }
 0x171   : > { %v1052_v26 = vpop.permute.xlu1 %1051 }
 0x172   : > { %v753_v11 = vpop.permute.xlu0 %752  ;;  %v1440_v48 = vsel %vm1432_vm8, %v1407_v47, %v1052_v26 }
 0x173   : > { %873 = vrot.lane.b32.xlu1 %v3980_v60, %s2219_s27  ;;  %v1342_v42 = vsel %vm1333_vm5, %v1309_v59, %v753_v11 }
 0x174   : > { %774 = vrot.lane.b32.xlu0 %v3982_v29, %s2218_s22 }
 0x175   : > { %v755_v51 = vpop.permute.xlu1 %754 }
 0x176   : > { %v1151_v19 = vpop.permute.xlu0 %1150  ;;  %v1343_v25 = vsel %vm1333_vm5, %v1310_v4, %v755_v51 }
 0x177   : > { %v1472_v32 = vsel %vm1465_vm9, %v1439_v39, %v1151_v19  ;;  %875 = vrot.lane.b32.xlu1 %v3986_v52, %s2219_s27  ;;  %v3990_v39 = vld [vmem:[#allocation37_spill] sm:$0xff] }
 0x178   : > { %1172 = vrot.lane.b32.xlu0 %v3986_v52, %s2222_s7  ;;  %2081 = vmatprep.mubr.msk.f32.mxu0 %vm1498_vm10, %v1472_v32  ;;  %v2199_v32 = vld [vmem:[%s2257_s17 + $0x120] sm:$0xff] }
 0x179   : > { %v1153_v55 = vpop.permute.xlu1 %1152 }
 0x17a   : > { %v1473_v57 = vsel %vm1465_vm9, %v1440_v48, %v1153_v55  ;;  %v854_v21 = vpop.permute.xlu0 %853  ;;  %v3991_v48 = vld [vmem:[#allocation20_spill] sm:$0xff]  ;;  %v2200_v55 = vld [vmem:[%s2257_s17 + $0x128] sm:$0xff] }
 0x17b   : > { %674 = vrot.lane.b32.xlu1 %v2197_v56, %s2217_s20  ;;  %2082 = vmatmul.mubr.msk.f32.gmra.mrb[6].mxu0 %vm1498_vm10, %v1473_v57  ;;  %v1375_v38 = vsel %vm1366_vm6, %v1342_v42, %v854_v21  ;;  %v1311_v21 = vsel %vm1300_vm4, %v3029_v43, %v3235_v44 }
 0x17c   : > { %971 = vrot.lane.b32.xlu0 %v2197_v56, %s2220_s5 }
 0x17d   : > { %v952_v60 = vpop.permute.xlu1 %951 }
 0x17e   : > { %v856_v16 = vpop.permute.xlu0 %855  ;;  %v1408_v13 = vsel %vm1399_vm7, %v1375_v38, %v952_v60 }
 0x17f   : > { %1073 = vrot.lane.b32.xlu1 %v3987_v58, %s2221_s6  ;;  %v1376_v30 = vsel %vm1366_vm6, %v1343_v25, %v856_v16 }
 0x180   : > { %973 = vrot.lane.b32.xlu0 %v2198_v54, %s2220_s5 }
 0x181   : > { %v1054_v3 = vpop.permute.xlu1 %1053 }
 0x182   : > { %v954_v29 = vpop.permute.xlu0 %953  ;;  %v1441_v34 = vsel %vm1432_vm8, %v1408_v13, %v1054_v3 }
 0x183   : > { %776 = vrot.lane.b32.xlu1 %v3987_v58, %s2218_s22  ;;  %v1409_v50 = vsel %vm1399_vm7, %v1376_v30, %v954_v29  ;;  %v1312_v58 = vsel %vm1300_vm4, %v3026_v24, %v3233_v37  ;;  %v1313_v30 = vsel %vm1300_vm4, %v3045_v33, %v3243_v31 }
 0x184   : > { %676 = vrot.lane.b32.xlu0 %v2198_v54, %s2217_s20 }
 0x185   : > { %v1056_v41 = vpop.permute.xlu1 %1055 }
 0x186   : > { %v757_v26 = vpop.permute.xlu0 %756  ;;  %v1442_v14 = vsel %vm1432_vm8, %v1409_v50, %v1056_v41 }
 0x187   : > { %1174 = vrot.lane.b32.xlu1 %v3988_v0, %s2222_s7  ;;  %v1344_v60 = vsel %vm1333_vm5, %v1311_v21, %v757_v26  ;;  %v3992_v26 = vld [vmem:[#allocation40_spill] sm:$0xff]  ;;  %v3997_v21 = vld [vmem:[#allocation21_spill] sm:$0xff] }
 0x188   : > { %1075 = vrot.lane.b32.xlu0 %v3989_v8, %s2221_s6 }
 0x189   : > { %v759_v27 = vpop.permute.xlu1 %758 }
 0x18a   : > { %v1155_v11 = vpop.permute.xlu0 %1154  ;;  %v1345_v29 = vsel %vm1333_vm5, %v1312_v58, %v759_v27  ;;  %v3994_v27 = vld [vmem:[#allocation39_spill] sm:$0xff] }
 0x18b   : > { %v1474_v6 = vsel %vm1465_vm9, %v1441_v34, %v1155_v11  ;;  %877 = vrot.lane.b32.xlu1 %v3988_v0, %s2219_s27  ;;  %v3993_v0 = vld [vmem:[#allocation19_spill] sm:$0xff]  ;;  %v2201_v11 = vld [vmem:[%s2257_s17 + $0x138] sm:$0xff] }
 0x18c   : > { %778 = vrot.lane.b32.xlu0 %v3989_v8, %s2218_s22  ;;  %2084 = vmatprep.mubr.msk.f32.mxu0 %vm1498_vm10, %v1474_v6 }
 0x18d   : > { %v1157_v46 = vpop.permute.xlu1 %1156 }
 0x18e   : > { %v1475_v51 = vsel %vm1465_vm9, %v1442_v14, %v1157_v46  ;;  %v858_v2 = vpop.permute.xlu0 %857 }
 0x18f   : > { %879 = vrot.lane.b32.xlu1 %v3990_v39, %s2219_s27  ;;  %2085 = vmatmul.mubr.msk.f32.gmra.mrb[8].mxu0 %vm1498_vm10, %v1475_v51  ;;  %v1377_v16 = vsel %vm1366_vm6, %v1344_v60, %v858_v2  ;;  %v3995_v51 = vld [vmem:[#allocation22_spill] sm:$0xff] }
 0x190   : > { %1176 = vrot.lane.b32.xlu0 %v3990_v39, %s2222_s7  ;;  %v2202_v39 = vld [vmem:[%s2257_s17 + $0x140] sm:$0xff] }
 0x191   : > { %v956_v19 = vpop.permute.xlu1 %955 }
 0x192   : > { %v860_v62 = vpop.permute.xlu0 %859  ;;  %v1410_v54 = vsel %vm1399_vm7, %v1377_v16, %v956_v19 }
 0x193   : > { %678 = vrot.lane.b32.xlu1 %v2199_v32, %s2217_s20  ;;  %v1378_v41 = vsel %vm1366_vm6, %v1345_v29, %v860_v62 }
 0x194   : > { %975 = vrot.lane.b32.xlu0 %v2199_v32, %s2220_s5 }
 0x195   : > { %v1058_v52 = vpop.permute.xlu1 %1057 }
 0x196   : > { %v958_v47 = vpop.permute.xlu0 %957  ;;  %v1443_v43 = vsel %vm1432_vm8, %v1410_v54, %v1058_v52  ;;  %v1314_v52 = vsel %vm1300_vm4, %v3042_v22, %v3241_v53 }
 0x197   : > { %1077 = vrot.lane.b32.xlu1 %v3991_v48, %s2221_s6  ;;  %v1411_v42 = vsel %vm1399_vm7, %v1378_v41, %v958_v47  ;;  %v1315_v41 = vsel %vm1300_vm4, %v3061_v9, %v3249_v40 }
 0x198   : > { %977 = vrot.lane.b32.xlu0 %v2200_v55, %s2220_s5 }
 0x199   : > { %v1060_v57 = vpop.permute.xlu1 %1059 }
 0x19a   : > { %v761_v56 = vpop.permute.xlu0 %760  ;;  %v1444_v24 = vsel %vm1432_vm8, %v1411_v42, %v1060_v57 }
 0x19b   : > { %780 = vrot.lane.b32.xlu1 %v3991_v48, %s2218_s22  ;;  %v1346_v50 = vsel %vm1333_vm5, %v1313_v30, %v761_v56 }
 0x19c   : > { %680 = vrot.lane.b32.xlu0 %v2200_v55, %s2217_s20  ;;  %v3996_v55 = vld [vmem:[#allocation43_spill] sm:$0xff] }
 0x19d   : > { %v763_v3 = vpop.permute.xlu1 %762 }
 0x19e   : > { %v1159_v44 = vpop.permute.xlu0 %1158  ;;  %v1347_v48 = vsel %vm1333_vm5, %v1314_v52, %v763_v3  ;;  %v3998_v3 = vld [vmem:[#allocation41_spill] sm:$0xff] }
 0x19f   : > { %v1476_v59 = vsel %vm1465_vm9, %v1443_v43, %v1159_v44  ;;  %1178 = vrot.lane.b32.xlu1 %v3992_v26, %s2222_s7  ;;  %v2203_v44 = vld [vmem:[%s2257_s17 + $0x150] sm:$0xff] }
 0x1a0   : > { %1079 = vrot.lane.b32.xlu0 %v3993_v0, %s2221_s6  ;;  %2087 = vmatprep.mubr.msk.f32.mxu0 %vm1498_vm10, %v1476_v59 }
 0x1a1   : > { %v1161_v37 = vpop.permute.xlu1 %1160 }
 0x1a2   : > { %v1477_v38 = vsel %vm1465_vm9, %v1444_v24, %v1161_v37  ;;  %v862_v8 = vpop.permute.xlu0 %861  ;;  %v3999_v24 = vld [vmem:[#allocation24_spill] sm:$0xff] }
 0x1a3   : > { %881 = vrot.lane.b32.xlu1 %v3992_v26, %s2219_s27  ;;  %2088 = vmatmul.mubr.msk.f32.gmra.mrb[10].mxu0 %vm1498_vm10, %v1477_v38  ;;  %v1379_v46 = vsel %vm1366_vm6, %v1346_v50, %v862_v8  ;;  %v2204_v38 = vld [vmem:[%s2257_s17 + $0x158] sm:$0xff] }
 0x1a4   : > { %782 = vrot.lane.b32.xlu0 %v3993_v0, %s2218_s22 }
 0x1a5   : > { %v960_v4 = vpop.permute.xlu1 %959 }
 0x1a6   : > { %v864_v13 = vpop.permute.xlu0 %863  ;;  %v1412_v2 = vsel %vm1399_vm7, %v1379_v46, %v960_v4 }
 0x1a7   : > { %883 = vrot.lane.b32.xlu1 %v3994_v27, %s2219_s27  ;;  %v1380_v57 = vsel %vm1366_vm6, %v1347_v48, %v864_v13 }
 0x1a8   : > { %1180 = vrot.lane.b32.xlu0 %v3994_v27, %s2222_s7 }
 0x1a9   : > { %v1062_v25 = vpop.permute.xlu1 %1061 }
 0x1aa   : > { %v962_v34 = vpop.permute.xlu0 %961  ;;  %v1445_v19 = vsel %vm1432_vm8, %v1412_v2, %v1062_v25 }
 0x1ab   : > { %682 = vrot.lane.b32.xlu1 %v2201_v11, %s2217_s20  ;;  %v1413_v56 = vsel %vm1399_vm7, %v1380_v57, %v962_v34  ;;  %v4003_v57 = vld [vmem:[#allocation26_spill] sm:$0xff] }
 0x1ac   : > { %979 = vrot.lane.b32.xlu0 %v2201_v11, %s2220_s5  ;;  %v4000_v11 = vld [vmem:[#allocation47_spill] sm:$0xff] }
 0x1ad   : > { %v765_v6 = vpop.permute.xlu1 %764 }
 0x1ae   : > { %v665_v14 = vpop.permute.xlu0 %664  ;;  %v1348_v26 = vsel %vm1333_vm5, %v1315_v41, %v765_v6  ;;  %v4001_v6 = vld [vmem:[#allocation23_spill] sm:$0xff] }
 0x1af   : > { %1081 = vrot.lane.b32.xlu1 %v3995_v51, %s2221_s6  ;;  %v1316_v27 = vsel %vm1300_vm4, %v3058_v45, %v665_v14 }
 0x1b0   : > { %981 = vrot.lane.b32.xlu0 %v2202_v39, %s2220_s5 }
 0x1b1   : > { %v1163_v62 = vpop.permute.xlu1 %1162 }
 0x1b2   : > { %v1478_v32 = vsel %vm1465_vm9, %v1445_v19, %v1163_v62  ;;  %v1064_v33 = vpop.permute.xlu0 %1063  ;;  %v4002_v19 = vld [vmem:[#allocation45_spill] sm:$0xff] }
 0x1b3   : > { %784 = vrot.lane.b32.xlu1 %v3995_v51, %s2218_s22  ;;  %2090 = vmatprep.mubr.msk.f32.mxu0 %vm1498_vm10, %v1478_v32  ;;  %v1446_v16 = vsel %vm1432_vm8, %v1413_v56, %v1064_v33  ;;  %v2205_v33 = vld [vmem:[%s2257_s17 + $0x168] sm:$0xff]  ;;  %v2206_v56 = vld [vmem:[%s2257_s17 + $0x170] sm:$0xff] }
 0x1b4   : > { %684 = vrot.lane.b32.xlu0 %v2202_v39, %s2217_s20 }
 0x1b5   : > { %v866_v31 = vpop.permute.xlu1 %865 }
 0x1b6   : > { %v767_v47 = vpop.permute.xlu0 %766  ;;  %v1381_v0 = vsel %vm1366_vm6, %v1348_v26, %v866_v31 }
 0x1b7   : > { %1182 = vrot.lane.b32.xlu1 %v3996_v55, %s2222_s7  ;;  %v1349_v34 = vsel %vm1333_vm5, %v1316_v27, %v767_v47 }
 0x1b8   : > { %1083 = vrot.lane.b32.xlu0 %v3997_v21, %s2221_s6 }
 0x1b9   : > { %v868_v60 = vpop.permute.xlu1 %867 }
 0x1ba   : > { %v1165_v58 = vpop.permute.xlu0 %1164  ;;  %v1382_v30 = vsel %vm1366_vm6, %v1349_v34, %v868_v60 }
 0x1bb   : > { %v1479_v22 = vsel %vm1465_vm9, %v1446_v16, %v1165_v58  ;;  %885 = vrot.lane.b32.xlu1 %v3996_v55, %s2219_s27 }
 0x1bc   : > { %786 = vrot.lane.b32.xlu0 %v3997_v21, %s2218_s22  ;;  %2091 = vmatmul.mubr.msk.f32.gmra.mrb[12].mxu0 %vm1498_vm10, %v1479_v22 }
 0x1bd   : > { %v667_v53 = vpop.permute.xlu1 %666 }
 0x1be   : > { %v964_v54 = vpop.permute.xlu0 %963  ;;  %v1317_v31 = vsel %vm1300_vm4, %v3077_v36, %v667_v53 }
 0x1bf   : > { %887 = vrot.lane.b32.xlu1 %v3998_v3, %s2219_s27  ;;  %v1414_v37 = vsel %vm1399_vm7, %v1381_v0, %v964_v54 }
 0x1c0   : > { %1184 = vrot.lane.b32.xlu0 %v3998_v3, %s2222_s7 }
 0x1c1   : > { %v1066_v29 = vpop.permute.xlu1 %1065 }
 0x1c2   : > { %v966_v43 = vpop.permute.xlu0 %965  ;;  %v1447_v8 = vsel %vm1432_vm8, %v1414_v37, %v1066_v29  ;;  %v4004_v29 = vld [vmem:[#allocation51_spill] sm:$0xff] }
 0x1c3   : > { %686 = vrot.lane.b32.xlu1 %v2203_v44, %s2217_s20  ;;  %v1415_v50 = vsel %vm1399_vm7, %v1382_v30, %v966_v43  ;;  %v225_v37 = vld [vmem:[%s2257_s17 + $0x188] sm:$0xff] }
 0x1c4   : > { %983 = vrot.lane.b32.xlu0 %v2203_v44, %s2220_s5  ;;  %v4005_v44 = vld [vmem:[#allocation25_spill] sm:$0xff] }
 0x1c5   : > { %v769_v59 = vpop.permute.xlu1 %768 }
 0x1c6   : > { %v669_v42 = vpop.permute.xlu0 %668  ;;  %v1350_v47 = vsel %vm1333_vm5, %v1317_v31, %v769_v59 }
 0x1c7   : > { %1085 = vrot.lane.b32.xlu1 %v3999_v24, %s2221_s6  ;;  %v1318_v53 = vsel %vm1300_vm4, %v3074_v35, %v669_v42 }
 0x1c8   : > { %985 = vrot.lane.b32.xlu0 %v2204_v38, %s2220_s5 }
 0x1c9   : > { %v1167_v4 = vpop.permute.xlu1 %1166 }
 0x1ca   : > { %v1480_v13 = vsel %vm1465_vm9, %v1447_v8, %v1167_v4  ;;  %v1068_v9 = vpop.permute.xlu0 %1067  ;;  %v4006_v8 = vld [vmem:[#allocation49_spill] sm:$0xff] }
 0x1cb   : > { %788 = vrot.lane.b32.xlu1 %v3999_v24, %s2218_s22  ;;  %2093 = vmatprep.mubr.msk.f32.mxu0 %vm1498_vm10, %v1480_v13  ;;  %v1448_v51 = vsel %vm1432_vm8, %v1415_v50, %v1068_v9  ;;  %v224_v24 = vld [vmem:[%s2257_s17 + $0x180] sm:$0xff]  ;;  %v732_v13 = vrot.slane %v225_v37, 1 }
 0x1cc   : > { %688 = vrot.lane.b32.xlu0 %v2204_v38, %s2217_s20  ;;  %v731_v4 = vrot.slane %v224_v24, 1 }
 0x1cd   : > { %v870_v40 = vpop.permute.xlu1 %869 }
 0x1ce   : > { %v771_v25 = vpop.permute.xlu0 %770  ;;  %v1383_v55 = vsel %vm1366_vm6, %v1350_v47, %v870_v40  ;;  %v733_v27 = vsel %vm278_vm0, %v731_v4, %v732_v13 }
 0x1cf   : > { %1186 = vrot.lane.b32.xlu1 %v4000_v11, %s2222_s7  ;;  %v1351_v3 = vsel %vm1333_vm5, %v1318_v53, %v771_v25 }
 0x1d0   : > { %1087 = vrot.lane.b32.xlu0 %v4001_v6, %s2221_s6 }
 0x1d1   : > { %v872_v46 = vpop.permute.xlu1 %871 }
 0x1d2   : > { %v1169_v2 = vpop.permute.xlu0 %1168  ;;  %v1384_v43 = vsel %vm1366_vm6, %v1351_v3, %v872_v46 }
 0x1d3   : > { %v1481_v45 = vsel %vm1465_vm9, %v1448_v51, %v1169_v2  ;;  %889 = vrot.lane.b32.xlu1 %v4000_v11, %s2219_s27  ;;  %v832_v51 = vrot.slane %v224_v24, 2  ;;  %v833_v2 = vrot.slane %v225_v37, 2 }
 0x1d4   : > { %790 = vrot.lane.b32.xlu0 %v4001_v6, %s2218_s22  ;;  %2094 = vmatmul.mubr.msk.f32.gmra.mrb[14].mxu0 %vm1498_vm10, %v1481_v45  ;;  %v226_v6 = vld [vmem:[%s2257_s17 + $0x190] sm:$0x3] }
 0x1d5   : > { %v671_v14 = vpop.permute.xlu1 %670 }
 0x1d6   : > { %v968_v39 = vpop.permute.xlu0 %967  ;;  %v1319_v25 = vsel %vm1300_vm4, %v3093_v28, %v671_v14  ;;  %v734_v28 = vrot.slane %v226_v6, 1 }
 0x1d7   : > { %891 = vrot.lane.b32.xlu1 %v4002_v19, %s2219_s27  ;;  %v1416_v21 = vsel %vm1399_vm7, %v1383_v55, %v968_v39 }
 0x1d8   : > { %1188 = vrot.lane.b32.xlu0 %v4002_v19, %s2222_s7 }
 0x1d9   : > { %v1070_v62 = vpop.permute.xlu1 %1069 }
 0x1da   : > { %v970_v32 = vpop.permute.xlu0 %969  ;;  %v1449_v60 = vsel %vm1432_vm8, %v1416_v21, %v1070_v62  ;;  %v834_v62 = vsel %vm455_vm1, %v832_v51, %v833_v2 }
 0x1db   : > { %690 = vrot.lane.b32.xlu1 %v2205_v33, %s2217_s20  ;;  %v1417_v41 = vsel %vm1399_vm7, %v1384_v43, %v970_v32 }
 0x1dc   : > { %987 = vrot.lane.b32.xlu0 %v2205_v33, %s2220_s5  ;;  %v735_v33 = vsel %vm278_vm0, %v732_v13, %v734_v28 }
 0x1dd   : > { %v773_v52 = vpop.permute.xlu1 %772 }
 0x1de   : > { %v3599_v48 = vpop.permute.xlu0 %672  ;;  %v1352_v11 = vsel %vm1333_vm5, %v1319_v25, %v773_v52 }
 0x1df   : > { %1089 = vrot.lane.b32.xlu1 %v4003_v57, %s2221_s6  ;;  %v1320_v31 = vsel %vm1300_vm4, %v3090_v10, %v3599_v48 }
 0x1e0   : > { %989 = vrot.lane.b32.xlu0 %v2206_v56, %s2220_s5 }
 0x1e1   : > { %v1171_v16 = vpop.permute.xlu1 %1170 }
 0x1e2   : > { %v1072_v58 = vpop.permute.xlu0 %1071  ;;  %v1482_v36 = vsel %vm1465_vm9, %v1449_v60, %v1171_v16 }
 0x1e3   : > { %792 = vrot.lane.b32.xlu1 %v4003_v57, %s2218_s22  ;;  %2096 = vmatprep.mubr.msk.f32.mxu1 %vm1498_vm10, %v1482_v36  ;;  %v1450_v26 = vsel %vm1432_vm8, %v1417_v41, %v1072_v58  ;;  %v835_v57 = vrot.slane %v226_v6, 2  ;;  %v228_v36 = vld [vmem:[%s2257_s17 + $0x1a0] sm:$0xff] }
 0x1e4   : > { %692 = vrot.lane.b32.xlu0 %v2206_v56, %s2217_s20  ;;  %v1033_v3 = vrot.slane %v228_v36, 1 }
 0x1e5   : > { %v874_v22 = vpop.permute.xlu1 %873  ;;  %v836_v48 = vsel %vm455_vm1, %v833_v2, %v835_v57 }
 0x1e6   : > { %v775_v54 = vpop.permute.xlu0 %774  ;;  %v1385_v50 = vsel %vm1366_vm6, %v1352_v11, %v874_v22  ;;  %v229_v22 = vld [vmem:[%s2257_s17 + $0x1a8] sm:$0x3] }
 0x1e7   : > { %1190 = vrot.lane.b32.xlu1 %v4004_v29, %s2222_s7  ;;  %v1353_v47 = vsel %vm1333_vm5, %v1320_v31, %v775_v54  ;;  %v227_v54 = vld [vmem:[%s2257_s17 + $0x198] sm:$0xff] }
 0x1e8   : > { %1091 = vrot.lane.b32.xlu0 %v4005_v44, %s2221_s6 }
 0x1e9   : > { %v876_v59 = vpop.permute.xlu1 %875 }
 0x1ea   : > { %v1173_v0 = vpop.permute.xlu0 %1172  ;;  %v1386_v55 = vsel %vm1366_vm6, %v1353_v47, %v876_v59  ;;  %v1134_v59 = vrot.slane %v228_v36, 2 }
 0x1eb   : > { %v1483_v35 = vsel %vm1465_vm9, %v1450_v26, %v1173_v0  ;;  %893 = vrot.lane.b32.xlu1 %v4004_v29, %s2219_s27  ;;  %v1035_v29 = vrot.slane %v229_v22, 1  ;;  %v1136_v0 = vrot.slane %v229_v22, 2 }
 0x1ec   : > { %794 = vrot.lane.b32.xlu0 %v4005_v44, %s2218_s22  ;;  %2097 = vmatmul.mubr.msk.f32.vlgmr.msra.gmra.mrb[0].mxu1 %vm1498_vm10, %v1483_v35  ;;  %v1032_v44 = vrot.slane %v227_v54, 1 }
 0x1ed   : > { %v3629_v42 = vpop.permute.xlu1 %674  ;;  %v1036_v26 = vsel %vm278_vm0, %v1033_v3, %v1035_v29 }
 0x1ee   : > { %v972_v38 = vpop.permute.xlu0 %971  ;;  %v1321_v35 = vsel %vm1300_vm4, %v3109_v5, %v3629_v42 }
 0x1ef   : > { %895 = vrot.lane.b32.xlu1 %v4006_v8, %s2219_s27  ;;  %v1418_v46 = vsel %vm1399_vm7, %v1385_v50, %v972_v38  ;;  %v1034_v38 = vsel %vm278_vm0, %v1032_v44, %v1033_v3 }
 0x1f0   : > { %1192 = vrot.lane.b32.xlu0 %v4006_v8, %s2222_s7 }
 0x1f1   : > { %v1074_v9 = vpop.permute.xlu1 %1073 }
 0x1f2   : > { %v974_v40 = vpop.permute.xlu0 %973  ;;  %v1451_v45 = vsel %vm1432_vm8, %v1418_v46, %v1074_v9 }
 0x1f3   : > { %694 = vrot.lane.b32.xlu1 %v224_v24, %s2217_s20  ;;  %v1419_v21 = vsel %vm1399_vm7, %v1386_v55, %v974_v40  ;;  %v1137_v40 = vsel %vm455_vm1, %v1134_v59, %v1136_v0 }
 0x1f4   : > { %991 = vrot.lane.b32.xlu0 %v224_v24, %s2220_s5  ;;  %v1133_v24 = vrot.slane %v227_v54, 2 }
 0x1f5   : > { %v777_v34 = vpop.permute.xlu1 %776 }
 0x1f6   : > { %v3643_v30 = vpop.permute.xlu0 %676  ;;  %v1354_v8 = vsel %vm1333_vm5, %v1321_v35, %v777_v34  ;;  %v1135_v42 = vsel %vm455_vm1, %v1133_v24, %v1134_v59 }
 0x1f7   : > { %1093 = vrot.lane.b32.xlu1 %v733_v27, %s2221_s6 }
 0x1f8   : > { %993 = vrot.lane.b32.xlu0 %v225_v37, %s2220_s5 }
 0x1f9   : > { %v1175_v39 = vpop.permute.xlu1 %1174 }
 0x1fa   : > { %v1484_v14 = vsel %vm1465_vm9, %v1451_v45, %v1175_v39  ;;  %v1076_v19 = vpop.permute.xlu0 %1075  ;;  %v1322_v45 = vsel %vm1300_vm4, %v3106_v18, %v3643_v30 }
 0x1fb   : > { %796 = vrot.lane.b32.xlu1 %v733_v27, %s2218_s22  ;;  %2099 = vmatprep.mubr.msk.f32.mxu1 %vm1498_vm10, %v1484_v14  ;;  %v1452_v60 = vsel %vm1432_vm8, %v1419_v21, %v1076_v19 }
 0x1fc   : > { %696 = vrot.lane.b32.xlu0 %v225_v37, %s2217_s20 }
 0x1fd   : > { %v878_v32 = vpop.permute.xlu1 %877 }
 0x1fe   : > { %v779_v52 = vpop.permute.xlu0 %778  ;;  %v1387_v13 = vsel %vm1366_vm6, %v1354_v8, %v878_v32 }
 0x1ff   : > { %1194 = vrot.lane.b32.xlu1 %v834_v62, %s2222_s7  ;;  %v1355_v14 = vsel %vm1333_vm5, %v1322_v45, %v779_v52 }
 0x200   : > { %1095 = vrot.lane.b32.xlu0 %v735_v33, %s2221_s6 }
 0x201   : > { %v880_v56 = vpop.permute.xlu1 %879 }
 0x202   : > { %v1177_v16 = vpop.permute.xlu0 %1176  ;;  %v1388_v19 = vsel %vm1366_vm6, %v1355_v14, %v880_v56 }
 0x203   : > { %v1485_v10 = vsel %vm1465_vm9, %v1452_v60, %v1177_v16  ;;  %897 = vrot.lane.b32.xlu1 %v834_v62, %s2219_s27 }
 0x204   : > { %798 = vrot.lane.b32.xlu0 %v735_v33, %s2218_s22  ;;  %2100 = vmatmul.mubr.msk.f32.gmra.mrb[2].mxu1 %vm1498_vm10, %v1485_v10 }
 0x205   : > { %v679_v58 = vpop.permute.xlu1 %678 }
 0x206   : > { %v976_v53 = vpop.permute.xlu0 %975  ;;  %v1323_v30 = vsel %vm1300_vm4, %v3125_v61, %v679_v58 }
 0x207   : > { %899 = vrot.lane.b32.xlu1 %v836_v48, %s2219_s27  ;;  %v1420_v9 = vsel %vm1399_vm7, %v1387_v13, %v976_v53 }
 0x208   : > { %1196 = vrot.lane.b32.xlu0 %v836_v48, %s2222_s7 }
 0x209   : > { %v1078_v43 = vpop.permute.xlu1 %1077 }
 0x20a   : > { %v978_v41 = vpop.permute.xlu0 %977  ;;  %v1453_v27 = vsel %vm1432_vm8, %v1420_v9, %v1078_v43 }
 0x20b   : > { %997 = vrot.lane.b32.xlu1 %v228_v36, %s2220_s5  ;;  %v1421_v62 = vsel %vm1399_vm7, %v1388_v19, %v978_v41 }
 0x20c   : > { %995 = vrot.lane.b32.xlu0 %v227_v54, %s2220_s5 }
 0x20d   : > { %v781_v37 = vpop.permute.xlu1 %780 }
 0x20e   : > { %v681_v4 = vpop.permute.xlu0 %680  ;;  %v1356_v56 = vsel %vm1333_vm5, %v1323_v30, %v781_v37 }
 0x20f   : > { %1099 = vrot.lane.b32.xlu1 %v1036_v26, %s2221_s6  ;;  %v1324_v26 = vsel %vm1300_vm4, %v3122_v63, %v681_v4 }
 0x210   : > { %1097 = vrot.lane.b32.xlu0 %v1034_v38, %s2221_s6 }
 0x211   : > { %v1179_v5 = vpop.permute.xlu1 %1178 }
 0x212   : > { %v1486_v25 = vsel %vm1465_vm9, %v1453_v27, %v1179_v5  ;;  %v1080_v11 = vpop.permute.xlu0 %1079  ;;  %v2074_v34 = vpop.f32.mrb[0].mxu0 }
 0x213   : > { %v1811_v6 = vmul.f32 %v2074_v34, %v2074_v34  ;;  %1200 = vrot.lane.b32.xlu1 %v1137_v40, %s2222_s7  ;;  %v1613_v50 = vpop.f32.mrb[1].mxu0  ;;  %2102 = vmatprep.mubr.msk.f32.mxu1 %vm1498_vm10, %v1486_v25  ;;  %v1454_v33 = vsel %vm1432_vm8, %v1421_v62, %v1080_v11 }
 0x214   : > { %v1772_v46 = vadd.f32 %v2074_v34, %v1613_v50  ;;  %v1810_v51 = vmul.f32 %v1613_v50, %v1613_v50  ;;  %1198 = vrot.lane.b32.xlu0 %v1135_v42, %s2222_s7 }
 0x215   : > { %v882_v2 = vpop.permute.xlu1 %881 }
 0x216   : > { %v1842_v39 = vadd.f32 %v1811_v6, %v1810_v51  ;;  %v783_v28 = vpop.permute.xlu0 %782  ;;  %v1389_v10 = vsel %vm1366_vm6, %v1356_v56, %v882_v2 }
 0x217   : > { %v1357_v35 = vsel %vm1333_vm5, %v1324_v26, %v783_v28 }
 0x219   : > { %v884_v32 = vpop.permute.xlu1 %883 }
 0x21a   : > { %v1181_v31 = vpop.permute.xlu0 %1180  ;;  %v1390_v24 = vsel %vm1366_vm6, %v1357_v35, %v884_v32 }
 0x21b   : > { %v1487_v47 = vsel %vm1465_vm9, %v1454_v33, %v1181_v31 }
 0x21c   : > { %2103 = vmatmul.mubr.msk.f32.gmra.mrb[4].mxu1 %vm1498_vm10, %v1487_v47 }
 0x21d   : > { %v683_v55 = vpop.permute.xlu1 %682 }
 0x21e   : > { %v980_v57 = vpop.permute.xlu0 %979  ;;  %v1325_v34 = vsel %vm1300_vm4, %v3141_v1, %v683_v55 }
 0x21f   : > { %v1422_v36 = vsel %vm1399_vm7, %v1389_v10, %v980_v57 }
 0x221   : > { %v1082_v21 = vpop.permute.xlu1 %1081 }
 0x222   : > { %v982_v18 = vpop.permute.xlu0 %981  ;;  %v1455_v54 = vsel %vm1432_vm8, %v1422_v36, %v1082_v21 }
 0x223   : > { %v1423_v37 = vsel %vm1399_vm7, %v1390_v24, %v982_v18 }
 0x225   : > { %v785_v52 = vpop.permute.xlu1 %784 }
 0x226   : > { %v685_v60 = vpop.permute.xlu0 %684  ;;  %v2077_v16 = vpop.f32.mrb[2].mxu0  ;;  %v1358_v50 = vsel %vm1333_vm5, %v1325_v34, %v785_v52 }
 0x227   : > { %v1623_v48 = vpop.f32.mrb[3].mxu0  ;;  %v1813_v29 = vmul.f32 %v2077_v16, %v2077_v16  ;;  %v1326_v31 = vsel %vm1300_vm4, %v3138_v7, %v685_v60 }
 0x228   : > { %v1773_v22 = vadd.f32 %v1772_v46, %v1623_v48  ;;  %v1812_v53 = vmul.f32 %v1623_v48, %v1623_v48 }
 0x229   : > { %v1183_v3 = vpop.permute.xlu1 %1182 }
 0x22a   : > { %v1843_v43 = vadd.f32 %v1842_v39, %v1812_v53  ;;  %v1488_v44 = vsel %vm1465_vm9, %v1455_v54, %v1183_v3  ;;  %v1084_v61 = vpop.permute.xlu0 %1083  ;;  %v1774_v58 = vadd.f32 %v2077_v16, %v1773_v22 }
 0x22b   : > { %2105 = vmatprep.mubr.msk.f32.mxu1 %vm1498_vm10, %v1488_v44  ;;  %v1456_v8 = vsel %vm1432_vm8, %v1423_v37, %v1084_v61 }
 0x22c   : > { %v1844_v41 = vadd.f32 %v1843_v43, %v1813_v29 }
 0x22d   : > { %v886_v59 = vpop.permute.xlu1 %885 }
 0x22e   : > { %v787_v0 = vpop.permute.xlu0 %786  ;;  %v1391_v39 = vsel %vm1366_vm6, %v1358_v50, %v886_v59 }
 0x22f   : > { %v1359_v55 = vsel %vm1333_vm5, %v1326_v31, %v787_v0 }
 0x231   : > { %v888_v38 = vpop.permute.xlu1 %887 }
 0x232   : > { %v1185_v13 = vpop.permute.xlu0 %1184  ;;  %v1392_v57 = vsel %vm1366_vm6, %v1359_v55, %v888_v38 }
 0x233   : > { %v1489_v9 = vsel %vm1465_vm9, %v1456_v8, %v1185_v13 }
 0x234   : > { %2106 = vmatmul.mubr.msk.f32.gmra.mrb[6].mxu1 %vm1498_vm10, %v1489_v9 }
 0x235   : > { %v687_v40 = vpop.permute.xlu1 %686 }
 0x236   : > { %v984_v27 = vpop.permute.xlu0 %983  ;;  %v1327_v44 = vsel %vm1300_vm4, %v3157_v23, %v687_v40 }
 0x237   : > { %v1424_v28 = vsel %vm1399_vm7, %v1391_v39, %v984_v27 }
 0x239   : > { %v1086_v5 = vpop.permute.xlu1 %1085 }
 0x23a   : > { %v986_v42 = vpop.permute.xlu0 %985  ;;  %v2080_v63 = vpop.f32.mrb[4].mxu0  ;;  %v1457_v19 = vsel %vm1432_vm8, %v1424_v28, %v1086_v5 }
 0x23b   : > { %v1633_v4 = vpop.f32.mrb[5].mxu0  ;;  %v1815_v46 = vmul.f32 %v2080_v63, %v2080_v63  ;;  %v1425_v21 = vsel %vm1399_vm7, %v1392_v57, %v986_v42 }
 0x23c   : > { %v1775_v25 = vadd.f32 %v1774_v58, %v1633_v4  ;;  %v1814_v11 = vmul.f32 %v1633_v4, %v1633_v4 }
 0x23d   : > { %v789_v6 = vpop.permute.xlu1 %788 }
 0x23e   : > { %v1845_v51 = vadd.f32 %v1844_v41, %v1814_v11  ;;  %v689_v2 = vpop.permute.xlu0 %688  ;;  %v1776_v45 = vadd.f32 %v2080_v63, %v1775_v25  ;;  %v1360_v58 = vsel %vm1333_vm5, %v1327_v44, %v789_v6 }
 0x23f   : > { %v1328_v23 = vsel %vm1300_vm4, %v3154_v12, %v689_v2 }
 0x240   : > { %v1846_v14 = vadd.f32 %v1845_v51, %v1815_v46 }
 0x241   : > { %v1187_v62 = vpop.permute.xlu1 %1186 }
 0x242   : > { %v1490_v32 = vsel %vm1465_vm9, %v1457_v19, %v1187_v62  ;;  %v1088_v33 = vpop.permute.xlu0 %1087 }
 0x243   : > { %2108 = vmatprep.mubr.msk.f32.mxu1 %vm1498_vm10, %v1490_v32  ;;  %v1458_v30 = vsel %vm1432_vm8, %v1425_v21, %v1088_v33 }
 0x245   : > { %v890_v1 = vpop.permute.xlu1 %889 }
 0x246   : > { %v791_v47 = vpop.permute.xlu0 %790  ;;  %v1393_v59 = vsel %vm1366_vm6, %v1360_v58, %v890_v1 }
 0x247   : > { %v1361_v13 = vsel %vm1333_vm5, %v1328_v23, %v791_v47 }
 0x249   : > { %v892_v18 = vpop.permute.xlu1 %891 }
 0x24a   : > { %v1189_v52 = vpop.permute.xlu0 %1188  ;;  %v1394_v9 = vsel %vm1366_vm6, %v1361_v13, %v892_v18 }
 0x24b   : > { %v1491_v56 = vsel %vm1465_vm9, %v1458_v30, %v1189_v52 }
 0x24c   : > { %2109 = vmatmul.mubr.msk.f32.gmra.mrb[8].mxu1 %vm1498_vm10, %v1491_v56 }
 0x24d   : > { %v691_v16 = vpop.permute.xlu1 %690 }
 0x24e   : > { %v988_v10 = vpop.permute.xlu0 %987  ;;  %v2083_v48 = vpop.f32.mrb[6].mxu0  ;;  %v1329_v28 = vsel %vm1300_vm4, %v3173_v49, %v691_v16 }
 0x24f   : > { %v1643_v36 = vpop.f32.mrb[7].mxu0  ;;  %v1817_v53 = vmul.f32 %v2083_v48, %v2083_v48  ;;  %v1426_v26 = vsel %vm1399_vm7, %v1393_v59, %v988_v10 }
 0x250   : > { %v1777_v7 = vadd.f32 %v1776_v45, %v1643_v36  ;;  %v1816_v60 = vmul.f32 %v1643_v36, %v1643_v36 }
 0x251   : > { %v1090_v22 = vpop.permute.xlu1 %1089 }
 0x252   : > { %v1847_v54 = vadd.f32 %v1846_v14, %v1816_v60  ;;  %v990_v3 = vpop.permute.xlu0 %989  ;;  %v1778_v29 = vadd.f32 %v2083_v48, %v1777_v7  ;;  %v1459_v0 = vsel %vm1432_vm8, %v1426_v26, %v1090_v22 }
 0x253   : > { %v1427_v40 = vsel %vm1399_vm7, %v1394_v9, %v990_v3 }
 0x254   : > { %v1848_v43 = vadd.f32 %v1847_v54, %v1817_v53 }
 0x255   : > { %v793_v61 = vpop.permute.xlu1 %792 }
 0x256   : > { %v693_v41 = vpop.permute.xlu0 %692  ;;  %v1362_v19 = vsel %vm1333_vm5, %v1329_v28, %v793_v61 }
 0x257   : > { %v1330_v49 = vsel %vm1300_vm4, %v3170_v17, %v693_v41 }
 0x259   : > { %v1191_v35 = vpop.permute.xlu1 %1190 }
 0x25a   : > { %v1492_v24 = vsel %vm1465_vm9, %v1459_v0, %v1191_v35  ;;  %v1092_v37 = vpop.permute.xlu0 %1091 }
 0x25b   : > { %2111 = vmatprep.mubr.msk.f32.mxu1 %vm1498_vm10, %v1492_v24  ;;  %v1460_v5 = vsel %vm1432_vm8, %v1427_v40, %v1092_v37 }
 0x25d   : > { %v894_v38 = vpop.permute.xlu1 %893 }
 0x25e   : > { %v795_v8 = vpop.permute.xlu0 %794  ;;  %v1395_v32 = vsel %vm1366_vm6, %v1362_v19, %v894_v38 }
 0x25f   : > { %v1363_v30 = vsel %vm1333_vm5, %v1330_v49, %v795_v8 }
 0x261   : > { %v896_v27 = vpop.permute.xlu1 %895 }
 0x262   : > { %v1193_v42 = vpop.permute.xlu0 %1192  ;;  %v2086_v63 = vpop.f32.mrb[8].mxu0  ;;  %v1396_v56 = vsel %vm1366_vm6, %v1363_v30, %v896_v27 }
 0x263   : > { %v1493_v4 = vsel %vm1465_vm9, %v1460_v5, %v1193_v42  ;;  %v1653_v25 = vpop.f32.mrb[9].mxu0  ;;  %v1819_v6 = vmul.f32 %v2086_v63, %v2086_v63 }
 0x264   : > { %v1779_v11 = vadd.f32 %v1778_v29, %v1653_v25  ;;  %v1818_v34 = vmul.f32 %v1653_v25, %v1653_v25  ;;  %2112 = vmatmul.mubr.msk.f32.gmra.mrb[10].mxu1 %vm1498_vm10, %v1493_v4 }
 0x265   : > { %v695_v12 = vpop.permute.xlu1 %694 }
 0x266   : > { %v1849_v50 = vadd.f32 %v1848_v43, %v1818_v34  ;;  %v992_v46 = vpop.permute.xlu0 %991  ;;  %v1780_v51 = vadd.f32 %v2086_v63, %v1779_v11  ;;  %v1331_v58 = vsel %vm1300_vm4, %v3189_v20, %v695_v12 }
 0x267   : > { %v1428_v33 = vsel %vm1399_vm7, %v1395_v32, %v992_v46 }
 0x268   : > { %v1850_v2 = vadd.f32 %v1849_v50, %v1819_v6 }
 0x269   : > { %v1094_v45 = vpop.permute.xlu1 %1093 }
 0x26a   : > { %v994_v39 = vpop.permute.xlu0 %993  ;;  %v1461_v1 = vsel %vm1432_vm8, %v1428_v33, %v1094_v45 }
 0x26b   : > { %v1429_v48 = vsel %vm1399_vm7, %v1396_v56, %v994_v39 }
 0x26d   : > { %v797_v14 = vpop.permute.xlu1 %796 }
 0x26e   : > { %v697_v62 = vpop.permute.xlu0 %696  ;;  %v1364_v26 = vsel %vm1333_vm5, %v1331_v58, %v797_v14 }
 0x26f   : > { %v1332_v44 = vsel %vm1300_vm4, %v3186_v15, %v697_v62 }
 0x271   : > { %v1195_v31 = vpop.permute.xlu1 %1194 }
 0x272   : > { %v1494_v47 = vsel %vm1465_vm9, %v1461_v1, %v1195_v31  ;;  %v1096_v55 = vpop.permute.xlu0 %1095 }
 0x273   : > { %2114 = vmatprep.mubr.msk.f32.mxu1 %vm1498_vm10, %v1494_v47  ;;  %v1462_v7 = vsel %vm1432_vm8, %v1429_v48, %v1096_v55 }
 0x275   : > { %v898_v57 = vpop.permute.xlu1 %897 }
 0x276   : > { %v799_v21 = vpop.permute.xlu0 %798  ;;  %v2089_v18 = vpop.f32.mrb[10].mxu0  ;;  %v1397_v35 = vsel %vm1366_vm6, %v1364_v26, %v898_v57 }
 0x277   : > { %v1663_v52 = vpop.f32.mrb[11].mxu0  ;;  %v1821_v60 = vmul.f32 %v2089_v18, %v2089_v18  ;;  %v1365_v41 = vsel %vm1333_vm5, %v1332_v44, %v799_v21 }
 0x278   : > { %v1781_v16 = vadd.f32 %v1780_v51, %v1663_v52  ;;  %v1820_v10 = vmul.f32 %v1663_v52, %v1663_v52 }
 0x279   : > { %v900_v36 = vpop.permute.xlu1 %899 }
 0x27a   : > { %v1851_v22 = vadd.f32 %v1850_v2, %v1820_v10  ;;  %v1197_v53 = vpop.permute.xlu0 %1196  ;;  %v1782_v54 = vadd.f32 %v2089_v18, %v1781_v16  ;;  %v1398_v0 = vsel %vm1366_vm6, %v1365_v41, %v900_v36 }
 0x27b   : > { %v1495_v17 = vsel %vm1465_vm9, %v1462_v7, %v1197_v53 }
 0x27c   : > { %2115 = vmatmul.mubr.msk.f32.gmra.mrb[12].mxu1 %vm1498_vm10, %v1495_v17  ;;  %v1852_v3 = vadd.f32 %v1851_v22, %v1821_v60 }
 0x27d   : > { %v998_v29 = vpop.permute.xlu1 %997 }
 0x27e   : > { %v996_v43 = vpop.permute.xlu0 %995  ;;  %v1431_v24 = vsel %vm1399_vm7, %v1398_v0, %v998_v29 }
 0x27f   : > { %v1430_v37 = vsel %vm1399_vm7, %v1397_v35, %v996_v43 }
 0x281   : > { %v1100_v61 = vpop.permute.xlu1 %1099 }
 0x282   : > { %v1098_v59 = vpop.permute.xlu0 %1097  ;;  %v1464_v38 = vsel %vm1432_vm8, %v1431_v24, %v1100_v61 }
 0x283   : > { %v1463_v23 = vsel %vm1432_vm8, %v1430_v37, %v1098_v59 }
 0x285   : > { %v1201_v15 = vpop.permute.xlu1 %1200 }
 0x286   : > { %v1497_v20 = vsel %vm1465_vm9, %v1464_v38, %v1201_v15  ;;  %v1199_v8 = vpop.permute.xlu0 %1198 }
 0x287   : > { %v1496_v13 = vsel %vm1465_vm9, %v1463_v23, %v1199_v8 }
 0x288   : > { %2117 = vmatprep.mubr.msk.f32.mxu1 %vm1498_vm10, %v1496_v13 }
 0x289   : > { %2118 = vmatmul.mubr.msk.f32.gmra.mrb[14].mxu1 %vm1498_vm10, %v1497_v20 }
 0x28f   : > { %v2092_v9 = vpop.f32.mrb[12].mxu0 }
 0x290   : > { %v1673_v40 = vpop.f32.mrb[13].mxu0  ;;  %v1823_v42 = vmul.f32 %v2092_v9, %v2092_v9 }
 0x291   : > { %v1783_v27 = vadd.f32 %v1782_v54, %v1673_v40  ;;  %v1822_v5 = vmul.f32 %v1673_v40, %v1673_v40 }
 0x293   : > { %v1853_v63 = vadd.f32 %v1852_v3, %v1822_v5  ;;  %v1784_v4 = vadd.f32 %v2092_v9, %v1783_v27 }
 0x295   : > { %v1854_v25 = vadd.f32 %v1853_v63, %v1823_v42 }
 0x2a7   : > { %v2095_v11 = vpop.f32.mrb[14].mxu0 }
 0x2a8   : > { %v1683_v34 = vpop.f32.mrb[15].mxu0  ;;  %v1825_v50 = vmul.f32 %v2095_v11, %v2095_v11 }
 0x2a9   : > { %v1785_v12 = vadd.f32 %v1784_v4, %v1683_v34  ;;  %v1824_v6 = vmul.f32 %v1683_v34, %v1683_v34 }
 0x2ab   : > { %v1786_v46 = vadd.f32 %v2095_v11, %v1785_v12  ;;  %v1855_v51 = vadd.f32 %v1854_v25, %v1824_v6 }
 0x2ad   : > { %v1856_v2 = vadd.f32 %v1855_v51, %v1825_v50 }
 0x2bf   : > { %v2098_v45 = vpop.f32.mrb[0].mxu1 }
 0x2c0   : > { %v1693_v39 = vpop.f32.mrb[1].mxu1  ;;  %v1827_v19 = vmul.f32 %v2098_v45, %v2098_v45 }
 0x2c1   : > { %v1787_v28 = vadd.f32 %v1786_v46, %v1693_v39  ;;  %v1826_v14 = vmul.f32 %v1693_v39, %v1693_v39 }
 0x2c3   : > { %v1857_v62 = vadd.f32 %v1856_v2, %v1826_v14  ;;  %v1788_v32 = vadd.f32 %v2098_v45, %v1787_v28 }
 0x2c5   : > { %v1858_v33 = vadd.f32 %v1857_v62, %v1827_v19 }
 0x2d7   : > { %v2101_v1 = vpop.f32.mrb[2].mxu1 }
 0x2d8   : > { %v1703_v31 = vpop.f32.mrb[3].mxu1  ;;  %v1829_v57 = vmul.f32 %v2101_v1, %v2101_v1 }
 0x2d9   : > { %v1789_v47 = vadd.f32 %v1788_v32, %v1703_v31  ;;  %v1828_v55 = vmul.f32 %v1703_v31, %v1703_v31 }
 0x2db   : > { %v1859_v49 = vadd.f32 %v1858_v33, %v1828_v55  ;;  %v1790_v21 = vadd.f32 %v2101_v1, %v1789_v47 }
 0x2dd   : > { %v1860_v18 = vadd.f32 %v1859_v49, %v1829_v57 }
 0x2ef   : > { %v2104_v30 = vpop.f32.mrb[4].mxu1 }
 0x2f0   : > { %v1713_v52 = vpop.f32.mrb[5].mxu1  ;;  %v1831_v10 = vmul.f32 %v2104_v30, %v2104_v30 }
 0x2f1   : > { %v1791_v56 = vadd.f32 %v1790_v21, %v1713_v52  ;;  %v1830_v16 = vmul.f32 %v1713_v52, %v1713_v52 }
 0x2f3   : > { %v1861_v48 = vadd.f32 %v1860_v18, %v1830_v16  ;;  %v1792_v36 = vadd.f32 %v2104_v30, %v1791_v56 }
 0x2f5   : > { %v1862_v7 = vadd.f32 %v1861_v48, %v1831_v10 }
 0x307   : > { %v2107_v60 = vpop.f32.mrb[6].mxu1 }
 0x308   : > { %v1723_v22 = vpop.f32.mrb[7].mxu1  ;;  %v1833_v17 = vmul.f32 %v2107_v60, %v2107_v60 }
 0x309   : > { %v1793_v53 = vadd.f32 %v1792_v36, %v1723_v22  ;;  %v1832_v54 = vmul.f32 %v1723_v22, %v1723_v22 }
 0x30b   : > { %v1863_v3 = vadd.f32 %v1862_v7, %v1832_v54  ;;  %v1794_v29 = vadd.f32 %v2107_v60, %v1793_v53 }
 0x30d   : > { %v1864_v43 = vadd.f32 %v1863_v3, %v1833_v17 }
 0x31f   : > { %v2110_v44 = vpop.f32.mrb[8].mxu1 }
 0x320   : > { %v1733_v61 = vpop.f32.mrb[9].mxu1  ;;  %v1835_v59 = vmul.f32 %v2110_v44, %v2110_v44 }
 0x321   : > { %v1795_v58 = vadd.f32 %v1794_v29, %v1733_v61  ;;  %v1834_v41 = vmul.f32 %v1733_v61, %v1733_v61 }
 0x323   : > { %v1865_v26 = vadd.f32 %v1864_v43, %v1834_v41  ;;  %v1796_v0 = vadd.f32 %v2110_v44, %v1795_v58 }
 0x325   : > { %v1866_v35 = vadd.f32 %v1865_v26, %v1835_v59 }
 0x337   : > { %v2113_v24 = vpop.f32.mrb[10].mxu1 }
 0x338   : > { %v1743_v37 = vpop.f32.mrb[11].mxu1  ;;  %v1837_v23 = vmul.f32 %v2113_v24, %v2113_v24 }
 0x339   : > { %v1797_v38 = vadd.f32 %v1796_v0, %v1743_v37  ;;  %v1836_v15 = vmul.f32 %v1743_v37, %v1743_v37 }
 0x33b   : > { %v1867_v20 = vadd.f32 %v1866_v35, %v1836_v15  ;;  %v1798_v8 = vadd.f32 %v2113_v24, %v1797_v38 }
 0x33d   : > { %v1868_v13 = vadd.f32 %v1867_v20, %v1837_v23 }
 0x34f   : > { %v2116_v9 = vpop.f32.mrb[12].mxu1 }
 0x350   : > { %v1753_v40 = vpop.f32.mrb[13].mxu1  ;;  %v1839_v42 = vmul.f32 %v2116_v9, %v2116_v9 }
 0x351   : > { %v1799_v27 = vadd.f32 %v1798_v8, %v1753_v40  ;;  %v1838_v5 = vmul.f32 %v1753_v40, %v1753_v40 }
 0x353   : > { %v1869_v63 = vadd.f32 %v1868_v13, %v1838_v5  ;;  %v1800_v4 = vadd.f32 %v2116_v9, %v1799_v27 }
 0x355   : > { %v1870_v25 = vadd.f32 %v1869_v63, %v1839_v42 }
 0x35c   : > { %v2119_v11 = vpop.f32.mrb[14].mxu1 }
 0x35d   : > { %v1763_v34 = vpop.f32.mrb[15].mxu1  ;;  %v1841_v50 = vmul.f32 %v2119_v11, %v2119_v11 }
 0x35e   : > { %v1801_v12 = vadd.f32 %v1800_v4, %v1763_v34  ;;  %v1840_v6 = vmul.f32 %v1763_v34, %v1763_v34 }
 0x360   : > { %v1802_v46 = vadd.f32 %v2119_v11, %v1801_v12  ;;  %v1871_v51 = vadd.f32 %v1870_v25, %v1840_v6 }
 0x362   : > { %v1803_v2 = vrot.slane %v1802_v46, 4  ;;  %v1872_v45 = vadd.f32 %v1871_v51, %v1841_v50 }
 0x364   : > { %v1804_v39 = vadd.f32 %v1803_v2, %v1802_v46  ;;  %v1873_v28 = vrot.slane %v1872_v45, 4 }
 0x366   : > { %v1805_v14 = vrot.slane %v1804_v39, 2  ;;  %v1874_v19 = vadd.f32 %v1873_v28, %v1872_v45 }
 0x368   : > { %v1806_v62 = vadd.f32 %v1805_v14, %v1804_v39  ;;  %v1875_v32 = vrot.slane %v1874_v19, 2 }
 0x36a   : > { %v1807_v33 = vrot.slane %v1806_v62, 1  ;;  %v1876_v1 = vadd.f32 %v1875_v32, %v1874_v19 }
 0x36c   : > { %v1808_v31 = vadd.f32 %v1807_v33, %v1806_v62  ;;  %v1877_v47 = vrot.slane %v1876_v1, 1 }
 0x36e   : > { %1809 = vst [vmem:[%s172_s8] sm:$0x1] %v1808_v31  ;;  %v1878_v55 = vadd.f32 %v1877_v47, %v1876_v1 }
 0x370   : > { %1879 = vst [vmem:[%s175_s11] sm:$0x1] %v1878_v55 }
 0x371 PF: > { %s14_s12 = sadd.s32 1, %s2213_s12  }
 0x372   : > { %p11_p4 = scmp.ge.s32.totalorder %s14_s12, 4  }
 0x374   :  { %13 = sbr.rel (!%p11_p4) target bundleno = 1 (0x1), region = 70 }

</bundles_post_ra>
